<compile_context>
chip_gen: v7x
topology: tpu7x:2x2x1
jax: 0.10.0
libtpu: 0.0.40
codegen_flags: <defaults>
</compile_context>

<pallas_src>
import jax
import jax.numpy as jnp
from jax.experimental import pallas as pl
from jax.experimental.pallas import tpu as pltpu


_LANE = 128      # TPU vreg lane width (last dim)
_SUBLANE = 8     # TPU vreg sublane count (second-to-last dim)
# Below this many input elements, pallas_call launch / per-grid-step overhead
# (~0.35 us/step) dwarfs the MLP math; dispatch to plain XLA instead.
_PALLAS_MIN_ELEMENTS = 1 << 16


def _round_up(x, m):
    return ((x + m - 1) // m) * m


def _mlp_fused_kernel(x_ref, w1_ref, b1_ref, w2_ref, b2_ref, o_ref):
    # First linear on the MXU: bf16 operands, f32 accumulation.
    h = jnp.dot(x_ref[...], w1_ref[...], preferred_element_type=jnp.float32)
    # Bias + GELU kept in f32 (exp goes to the EUP; v5e has no bf16 VPU/EUP).
    h = jax.nn.gelu(h + b1_ref[...], approximate=True)
    # Second linear: downcast the activation to bf16 for the MXU.
    out = jnp.dot(h.astype(w2_ref.dtype), w2_ref[...],
                  preferred_element_type=jnp.float32)
    o_ref[...] = (out + b2_ref[...]).astype(o_ref.dtype)


def _mlp_xla(x, w1, b1, w2, b2):
    """Plain-XLA fallback for shapes too small to amortize a pallas_call."""
    h = jax.nn.gelu(jnp.dot(x, w1) + b1, approximate=True)
    return jnp.dot(h, w2) + b2


def ddp_mlp_forward(x, w1, b1, w2, b2, *, block_b=256, use_pallas=None):
    """Forward of DDP(MLP): identical math to the wrapped module's forward."""
    B, D_in = x.shape
    D_hidden = w1.shape[1]
    D_out = w2.shape[1]
    out_dtype = x.dtype

    if use_pallas is None:
        use_pallas = (B * D_in) >= _PALLAS_MIN_ELEMENTS
    if not use_pallas:
        return _mlp_xla(x, w1, b1, w2, b2)

    # Pad feature dims to lane multiples (128) so every matmul operand and the
    # output store are lane-dense (unmasked vst); pad batch to the tile size.
    # Zero padding is exact: gelu(0 + 0) = 0 and zero weight rows contribute 0.
    d_in_p = _round_up(D_in, _LANE)
    d_hid_p = _round_up(D_hidden, _LANE)
    d_out_p = _round_up(D_out, _LANE)
    tb = block_b if B >= block_b else _round_up(B, _SUBLANE)
    b_p = _round_up(B, tb)

    # bf16 matmul operands: MXU peak on v6e/v7x is bf16-only, and halving the
    # resident weight footprint matters on v7x's 64 MiB VMEM. Biases stay f32.
    xp = jnp.zeros((b_p, d_in_p), jnp.bfloat16).at[:B, :D_in].set(
        x.astype(jnp.bfloat16))
    w1p = jnp.zeros((d_in_p, d_hid_p), jnp.bfloat16).at[:D_in, :D_hidden].set(
        w1.astype(jnp.bfloat16))
    b1p = jnp.zeros((1, d_hid_p), jnp.float32).at[:, :D_hidden].set(
        b1.astype(jnp.float32))
    w2p = jnp.zeros((d_hid_p, d_out_p), jnp.bfloat16).at[:D_hidden, :D_out].set(
        w2.astype(jnp.bfloat16))
    b2p = jnp.zeros((1, d_out_p), jnp.float32).at[:, :D_out].set(
        b2.astype(jnp.float32))

    out = pl.pallas_call(
        _mlp_fused_kernel,
        out_shape=jax.ShapeDtypeStruct((b_p, d_out_p), out_dtype),
        grid_spec=pltpu.PrefetchScalarGridSpec(
            num_scalar_prefetch=0,
            grid=(b_p // tb,),
            in_specs=[
                pl.BlockSpec((tb, d_in_p), lambda i: (i, 0)),       # x: pipelined
                pl.BlockSpec((d_in_p, d_hid_p), lambda i: (0, 0)),  # W1: resident
                pl.BlockSpec((1, d_hid_p), lambda i: (0, 0)),       # b1: resident
                pl.BlockSpec((d_hid_p, d_out_p), lambda i: (0, 0)),  # W2: resident
                pl.BlockSpec((1, d_out_p), lambda i: (0, 0)),       # b2: resident
            ],
            out_specs=pl.BlockSpec((tb, d_out_p), lambda i: (i, 0)),
        ),
        compiler_params=pltpu.CompilerParams(
            # Batch tiles are independent -> megacore-shard on v7x (2 TCs);
            # harmless on single-TC v5e/v6e.
            dimension_semantics=("parallel",),
            # Cap below v7x's 64 MiB physical VMEM; ample for resident bf16
            # weights + double-buffered 256-row activation/output tiles.
            vmem_limit_bytes=48 << 20,
        ),
    )(xp, w1p, b1p, w2p, b2p)
    return out[:B, :D_out]


class DistributedDataParallelJAX:
    """Minimal JAX analogue of vescale's DDP wrapper (forward semantics only).

    Forward simply delegates to the wrapped module. Grad buffers are modelled as
    zeroed fp32 arrays (accumulate_allreduce_grads_in_fp32=True) but are never
    touched in forward, matching the PyTorch module's behaviour.
    """

    def __init__(self, params, accumulate_allreduce_grads_in_fp32=True):
        self.params = params
        grad_dtype = (jnp.float32 if accumulate_allreduce_grads_in_fp32
                      else params["w1"].dtype)
        total = sum(int(p.size) for p in params.values())
        # Contiguous per-dtype grad buffer (backward-only bookkeeping).
        self.grad_buffers = {grad_dtype: jnp.zeros((total,), grad_dtype)}
        # TODO(synk): bucketed async all-reduce / reduce-scatter of grad_buffers
        # (overlap_grad_reduce) belongs to the backward pass, not forward.

    def __call__(self, x):
        p = self.params
        return ddp_mlp_forward(x, p["w1"], p["b1"], p["w2"], p["b2"])


def _init_params(key, d_in, d_hidden, d_out, dtype=jnp.float32):
    k1, k2, k3, k4 = jax.random.split(key, 4)
    s1 = 1.0 / jnp.sqrt(d_in)
    s2 = 1.0 / jnp.sqrt(d_hidden)
    return {
        "w1": (jax.random.normal(k1, (d_in, d_hidden), dtype) * s1).astype(dtype),
        "b1": (jax.random.normal(k3, (1, d_hidden), dtype) * 0.1).astype(dtype),
        "w2": (jax.random.normal(k2, (d_hidden, d_out), dtype) * s2).astype(dtype),
        "b2": (jax.random.normal(k4, (1, d_out), dtype) * 0.1).astype(dtype),
    }


if __name__ == "__main__":
    key = jax.random.PRNGKey(0)
    kx, kp, kx2 = jax.random.split(key, 3)

    # Shapes large enough to hit the Pallas path (2 batch tiles of 256 rows),
    # lane-aligned feature dims.
    B, D_in, D_hidden, D_out = 512, 256, 512, 256
    x = jax.random.normal(kx, (B, D_in), jnp.float32)
    params = _init_params(kp, D_in, D_hidden, D_out)

    ddp = DistributedDataParallelJAX(params)
    out = jax.block_until_ready(ddp(x))

    # Pure-JAX reference with the same bf16 matmul operands / f32 accumulation.
    xb = x.astype(jnp.bfloat16)
    w1b = params["w1"].astype(jnp.bfloat16)
    w2b = params["w2"].astype(jnp.bfloat16)
    ref = jnp.dot(xb, w1b, preferred_element_type=jnp.float32) + params["b1"]
    ref = jax.nn.gelu(ref, approximate=True)
    ref = (jnp.dot(ref.astype(jnp.bfloat16), w2b,
                   preferred_element_type=jnp.float32) + params["b2"])
    ref = ref.astype(x.dtype)
    assert out.shape == (B, D_out)
    assert jnp.allclose(out, ref, atol=2e-2, rtol=2e-2), (
        float(jnp.max(jnp.abs(out - ref))))

    # Tiny-shape path: auto-dispatch falls back to XLA fusion (exact f32 math).
    x_small = jax.random.normal(kx2, (8, D_in), jnp.float32)
    out_small = jax.block_until_ready(ddp(x_small))
    ref_small = _mlp_xla(x_small, params["w1"], params["b1"],
                         params["w2"], params["b2"])
    assert jnp.allclose(out_small, ref_small, atol=1e-5, rtol=1e-5)

    print("KERNEL_OK")
</pallas_src>

<mosaic_0001>
module attributes {stable_mosaic.version = 11 : i64} {
  func.func @_mlp_fused_kernel(%arg0: i32, %arg1: memref<256x256xbf16, #tpu.memory_space<vmem>>, %arg2: memref<256x512xbf16, #tpu.memory_space<vmem>>, %arg3: memref<1x512xf32, #tpu.memory_space<vmem>>, %arg4: memref<512x256xbf16, #tpu.memory_space<vmem>>, %arg5: memref<1x256xf32, #tpu.memory_space<vmem>>, %arg6: memref<256x256xf32, #tpu.memory_space<vmem>>) attributes {dimension_semantics = [#tpu.dimension_semantics<parallel>], iteration_bounds = array<i64: 2>, scalar_prefetch = 0 : i64, scratch_operands = 0 : i64, tpu.core_type = #tpu.core_type<tc>, window_params = [{transform_indices = @transform_0, window_bounds = array<i64: 256, 256>}, {pipeline_mode = #tpu.pipeline_mode<synchronous>, transform_indices = @transform_1, window_bounds = array<i64: 256, 512>}, {pipeline_mode = #tpu.pipeline_mode<synchronous>, transform_indices = @transform_2, window_bounds = array<i64: 1, 512>}, {pipeline_mode = #tpu.pipeline_mode<synchronous>, transform_indices = @transform_3, window_bounds = array<i64: 512, 256>}, {pipeline_mode = #tpu.pipeline_mode<synchronous>, transform_indices = @transform_4, window_bounds = array<i64: 1, 256>}, {transform_indices = @transform_5, window_bounds = array<i64: 256, 256>}]} {
    %c0 = arith.constant 0 : index
    %c0_0 = arith.constant 0 : index
    %0 = vector.load %arg1[%c0, %c0_0] : memref<256x256xbf16, #tpu.memory_space<vmem>>, vector<256x256xbf16>
    %c0_1 = arith.constant 0 : index
    %c0_2 = arith.constant 0 : index
    %1 = vector.load %arg2[%c0_1, %c0_2] : memref<256x512xbf16, #tpu.memory_space<vmem>>, vector<256x512xbf16>
    %cst = arith.constant dense<0.000000e+00> : vector<256x512xf32>
    %2 = tpu.matmul %0, %1, %cst {dimension_numbers = #tpu.dot_dimension_numbers<[1], [0], [0], [1], [0, 0, 1, 1], [], []>} : vector<256x256xbf16>, vector<256x512xbf16>, vector<256x512xf32> -> vector<256x512xf32>
    %c0_3 = arith.constant 0 : index
    %c0_4 = arith.constant 0 : index
    %3 = vector.load %arg3[%c0_3, %c0_4] : memref<1x512xf32, #tpu.memory_space<vmem>>, vector<1x512xf32>
    %4 = vector.broadcast %3 : vector<1x512xf32> to vector<256x512xf32>
    %5 = arith.addf %2, %4 : vector<256x512xf32>
    %6 = arith.mulf %5, %5 : vector<256x512xf32>
    %7 = arith.mulf %5, %6 : vector<256x512xf32>
    %cst_5 = arith.constant 4.471500e-02 : f32
    %8 = vector.broadcast %cst_5 : f32 to vector<256x512xf32>
    %9 = arith.mulf %8, %7 : vector<256x512xf32>
    %10 = arith.addf %5, %9 : vector<256x512xf32>
    %cst_6 = arith.constant 0.797884583 : f32
    %11 = vector.broadcast %cst_6 : f32 to vector<256x512xf32>
    %12 = arith.mulf %11, %10 : vector<256x512xf32>
    %13 = math.tanh %12 : vector<256x512xf32>
    %cst_7 = arith.constant 1.000000e+00 : f32
    %14 = vector.broadcast %cst_7 : f32 to vector<256x512xf32>
    %15 = arith.addf %14, %13 : vector<256x512xf32>
    %cst_8 = arith.constant 5.000000e-01 : f32
    %16 = vector.broadcast %cst_8 : f32 to vector<256x512xf32>
    %17 = arith.mulf %16, %15 : vector<256x512xf32>
    %18 = arith.mulf %5, %17 : vector<256x512xf32>
    %19 = arith.truncf %18 : vector<256x512xf32> to vector<256x512xbf16>
    %c0_9 = arith.constant 0 : index
    %c0_10 = arith.constant 0 : index
    %20 = vector.load %arg4[%c0_9, %c0_10] : memref<512x256xbf16, #tpu.memory_space<vmem>>, vector<512x256xbf16>
    %cst_11 = arith.constant dense<0.000000e+00> : vector<256x256xf32>
    %21 = tpu.matmul %19, %20, %cst_11 {dimension_numbers = #tpu.dot_dimension_numbers<[1], [0], [0], [1], [0, 0, 1, 1], [], []>} : vector<256x512xbf16>, vector<512x256xbf16>, vector<256x256xf32> -> vector<256x256xf32>
    %c0_12 = arith.constant 0 : index
    %c0_13 = arith.constant 0 : index
    %22 = vector.load %arg5[%c0_12, %c0_13] : memref<1x256xf32, #tpu.memory_space<vmem>>, vector<1x256xf32>
    %23 = vector.broadcast %22 : vector<1x256xf32> to vector<256x256xf32>
    %24 = arith.addf %21, %23 : vector<256x256xf32>
    %c0_14 = arith.constant 0 : index
    %c0_15 = arith.constant 0 : index
    %25 = vector.load %arg6[%c0_14, %c0_15] : memref<256x256xf32, #tpu.memory_space<vmem>>, vector<256x256xf32>
    tpu.vector_store %arg6[%c0_14, %c0_15], %24 {strides = array<i32>} : memref<256x256xf32, #tpu.memory_space<vmem>>, vector<256x256xf32>,
    return
  }
  func.func @transform_0(%arg0: i32) -> (i32, i32) {
    %c0_i32 = arith.constant 0 : i32
    %c0_i32_0 = arith.constant 0 : i32
    return %arg0, %c0_i32 : i32, i32
  }
  func.func @transform_1(%arg0: i32) -> (i32, i32) {
    %c0_i32 = arith.constant 0 : i32
    %c0_i32_0 = arith.constant 0 : i32
    %c0_i32_1 = arith.constant 0 : i32
    return %c0_i32, %c0_i32_0 : i32, i32
  }
  func.func @transform_2(%arg0: i32) -> (i32, i32) {
    %c0_i32 = arith.constant 0 : i32
    %c0_i32_0 = arith.constant 0 : i32
    %c0_i32_1 = arith.constant 0 : i32
    return %c0_i32, %c0_i32_0 : i32, i32
  }
  func.func @transform_3(%arg0: i32) -> (i32, i32) {
    %c0_i32 = arith.constant 0 : i32
    %c0_i32_0 = arith.constant 0 : i32
    %c0_i32_1 = arith.constant 0 : i32
    return %c0_i32, %c0_i32_0 : i32, i32
  }
  func.func @transform_4(%arg0: i32) -> (i32, i32) {
    %c0_i32 = arith.constant 0 : i32
    %c0_i32_0 = arith.constant 0 : i32
    %c0_i32_1 = arith.constant 0 : i32
    return %c0_i32, %c0_i32_0 : i32, i32
  }
  func.func @transform_5(%arg0: i32) -> (i32, i32) {
    %c0_i32 = arith.constant 0 : i32
    %c0_i32_0 = arith.constant 0 : i32
    return %arg0, %c0_i32 : i32, i32
  }
}

</mosaic_0001>

<bundles_post_ra>
// kernel: tpu_custom_call.1
= control target key start
LH: loop header
LB: loop body
LE: loop exit
PB: predicated region body
PF: predicated region fallthrough
CT: control target
= control target key end

     0   :  { %10 = vsyncpa [#allocation3], 0  ;;  %s6731_s0 = inlined_call_operand.hbm [shape: bf16[512,256], index: 0, kind: input, shape index: {}]   ;;  %s6732_s1 = inlined_call_operand.hbm [shape: bf16[256,512], index: 1, kind: input, shape index: {}]   ;;  %s6733_s2 = inlined_call_operand.vmem [shape: f32[1,512], index: 2, kind: input, shape index: {}]   ;;  %s6734_s3 = inlined_call_operand.hbm [shape: bf16[512,256], index: 3, kind: input, shape index: {}]   ;;  %s6735_s4 = inlined_call_operand.vmem [shape: f32[1,256], index: 4, kind: input, shape index: {}]   ;;  %s6736_s5 = inlined_call_operand.hbm [shape: f32[512,256], index: 5, kind: output, shape index: {}]  }
   0x1   :  { %12 = vsyncpa [#allocation3 + $0x1], 0 }
   0x2   :  { %13 = vsyncpa [#allocation6], 0 }
   0x3   :  { %14 = vsyncpa [#allocation4], 0 }
   0x4   :  { %16 = vsyncpa [#allocation4 + $0x1], 0  ;;  %s4508_s18 = smov 0   ;;  %s4510_s19 = smov 0  }
   0x5   :  { %s4512_s20 = smov 0   ;;  %s4514_s21 = smov 0  }
   0x6 LB: > { %s4529_s22 = sadd.s32 4294967295, %s4466_s21   ;;  %s3428_s23 = sadd.s32 4294967294, %s4466_s21   ;;  %s4466_s21 = sphi %s4514_s21, %s6811_s21   ;;  %s4462_s20 = sphi %s4512_s20, %s6810_s20   ;;  %s4458_s19 = sphi %s4510_s19, %s6809_s19   ;;  %s4454_s18 = sphi %s4508_s18, %s6808_s18  }
   0x7   : > { %p42_p0 = scmp.ne.s32.totalorder %s4458_s19, %s4454_s18  ;;  %p6737_p1 = scmp.eq.s32.totalorder %s4529_s22, 0 }
   0x8   : > { %p156_p3 = scmp.eq.s32.totalorder %s3428_s23, 1  ;;  %p3429_p5 = scmp.ge.s32.totalorder %s4466_s21, 1 }
   0x9   : > { %p4538_p4 = por %p6737_p1, %p42_p0  ;;  %p163_p7 = scmp.lt.s32.totalorder %s4466_s21, 3 }
   0xa   : > { %p4543_p6 = por %p156_p3, %p42_p0  ;;  %s4468_s27 = smov [#allocation5]  }
   0xb   : > { %s6748_s24 = scalar_select %p4538_p4, 1, 0 }
   0xc   : > { %s6749_s25 = scalar_select %p4543_p6, 1, 0 }
   0xd   : > { %p4548_p8 = pnand %p3429_p5, %p163_p7  ;;  %s175_s28 = sshll.u32 %s4468_s27, 4  ;;  %s4552_s28 = int_to_ptr.vmem [resolvable:$true] %s175_s28 }
   0xe   : > { %s4469_s30 = smov [#allocation7]   ;;  %s4310_s9 = scalar_lea.hbm %s6732_s1, 8192 }
   0xf   : > { %p3752_p9 = pneg %p4548_p8  ;;  %s191_s6 = sshll.u32 %s4469_s30, 4  ;;  %s4563_s6 = int_to_ptr.vmem [resolvable:$true] %s191_s6 }
  0x10   : > { %p4311_p12 = scmp.ne.s32.totalorder %s6732_s1, %s4310_s9  ;;  %p4317_p5 = scmp.lt.u32.totalorder %s4310_s9, %s6732_s1 }
  0x11   : > { %p4559_p11 = pnand %p3752_p9, %p6737_p1 }
  0x13   : > { %p4312_p13 = pneg %p4559_p11 }
  0x15   : > { %p4313_p0 = pnand %p4312_p13, %p4311_p12 }
  0x17   : > { %p4314_p3 = pneg %p4313_p0 }
  0x19   : > { %p4319_p7 = pnand %p4317_p5, %p4314_p3 }
  0x1b   : > { %4322 = shalt.err (!%p4319_p7)
}
  0x1c   : > { %s4323_s14 = scalar_lea.vmem %s4552_s28, 8192  ;;  %p4331_p2 = scmp.lt.s32.totalorder %s4552_s28, %s4552_s28 }
  0x1d   : > { %p4324_p9 = scmp.ne.s32.totalorder %s4552_s28, %s4323_s14  ;;  %p4332_p12 = scmp.lt.s32.totalorder %s4323_s14, %s4323_s14 }
  0x1f   : > { %p4326_p10 = pnand %p4324_p9, %p4312_p13  ;;  %p4333_p0 = por %p4332_p12, %p4331_p2 }
  0x21   : > { %p4327_p1 = pneg %p4326_p10 }
  0x23   : > { %p4334_p6 = pnand %p4333_p0, %p4327_p1 }
  0x25   : > { %4337 = shalt.err (!%p4334_p6)
}
  0x26   : > { %s4470_s15 = smov 256   ;;  %s4471_s16 = smov 16  }
  0x27   : > { %3755 = dma.hbm_to_vmem [thread:$0]  (!%p4559_p11), %s6732_s1, 8192, %s4552_s28, [#allocation6], %s4470_s15, %s4470_s15, %s4471_s16  }
  0x28   : > { %s4338_s7 = scalar_lea.hbm %s6734_s3, 8192 }
  0x29   : > { %p4339_p2 = scmp.ne.s32.totalorder %s6734_s3, %s4338_s7  ;;  %p4345_p10 = scmp.lt.u32.totalorder %s4338_s7, %s6734_s3 }
  0x2b   : > { %p4341_p1 = pnand %p4339_p2, %p4312_p13 }
  0x2d   : > { %p4342_p6 = pneg %p4341_p1 }
  0x2f   : > { %p4347_p3 = pnand %p4345_p10, %p4342_p6 }
  0x31   : > { %4350 = shalt.err (!%p4347_p3)
}
  0x32   : > { %s4351_s28 = scalar_lea.vmem %s4563_s6, 8192  ;;  %p4359_p12 = scmp.lt.s32.totalorder %s4563_s6, %s4563_s6 }
  0x33   : > { %p4352_p5 = scmp.ne.s32.totalorder %s4563_s6, %s4351_s28  ;;  %p4360_p0 = scmp.lt.s32.totalorder %s4351_s28, %s4351_s28 }
  0x35   : > { %p4354_p7 = pnand %p4352_p5, %p4312_p13  ;;  %p4361_p2 = por %p4360_p0, %p4359_p12 }
  0x37   : > { %p4355_p9 = pneg %p4354_p7 }
  0x39   : > { %p4362_p1 = pnand %p4361_p2, %p4355_p9 }
  0x3b   : > { %4365 = shalt.err (!%p4362_p1)
}
  0x3c   : > { %s4472_s12 = smov 128   ;;  %s4473_s13 = smov 8  }
  0x3d   : > { %3758 = dma.hbm_to_vmem [thread:$0]  (!%p4559_p11), %s6734_s3, 8192, %s4563_s6, [#allocation6], %s4472_s12, %s4472_s12, %s4473_s13  }
  0x3e   : > { %s4621_s16 = sadd.s32 1, %s4466_s21   ;;  %s29_s23 = sadd.s32 1, %s4462_s20 }
  0x3f   : > { %s26_s17 = ssub.s32 %s4466_s21, %s4621_s16  ;;  %p36_p6 = scmp.ne.s32.totalorder %s4462_s20, %s4458_s19 }
  0x40   : > { %p27_p13 = scmp.eq.s32.totalorder %s26_s17, 0  ;;  %p37_p10 = scmp.eq.s32.totalorder %s4466_s21, 0 }
  0x41   : > { %p6752_p5 = scmp.eq.s32.totalorder %s4529_s22, 1  ;;  %p3769_p9 = scmp.lt.s32.totalorder %s4466_s21, 2 }
  0x42   : > { %s4630_s27 = scalar_select %p27_p13, %s4462_s20, %s29_s23  }
  0x43   : > { %p38_p3 = por %p37_p10, %p36_p6  ;;  %p4634_p7 = por %p6752_p5, %p36_p6 }
  0x44   : > { %s208_s30 = sand.u32 1, %s4462_s20   ;;  %s3609_s6 = sshll.u32 %s4466_s21, 12 }
  0x45   : > { %s6753_s29 = scalar_select %p4634_p7, 1, 0 }
  0x46   : > { %s3433_s7 = sshll.u32 %s208_s30, 8  ;;  %s4644_s10 = scalar_lea.hbm %s6731_s0, %s3609_s6 }
  0x47   : > { %s212_s11 = scalar_lea.vmem [#allocation2], %s3433_s7  ;;  %p4648_p11 = pnand %p3769_p9, %p38_p3 }
  0x48   : > { %s220_s28 = sshll.u32 %s212_s11, 4  ;;  %s4652_s15 = scalar_lea.sflag [#allocation3], %s208_s30  ;;  %s4646_s28 = int_to_ptr.vmem [resolvable:$true] %s220_s28 }
  0x49   : > { %s4366_s17 = scalar_lea.hbm %s4644_s10, 4096  ;;  %p4368_p0 = pneg %p4648_p11 }
  0x4a   : > { %p4367_p12 = scmp.ne.s32.totalorder %s4644_s10, %s4366_s17  ;;  %s4371_s6 = scalar_lea.hbm %s6731_s0, 8192 }
  0x4b   : > { %p4372_p13 = scmp.lt.u32.totalorder %s4644_s10, %s6731_s0  ;;  %p4373_p6 = scmp.lt.u32.totalorder %s4371_s6, %s4366_s17 }
  0x4c   : > { %p4369_p2 = pnand %p4368_p0, %p4367_p12  ;;  %p4375_p3 = scmp.lt.u32.totalorder %s4366_s17, %s4644_s10 }
  0x4d   : > { %p4374_p10 = por %p4373_p6, %p4372_p13 }
  0x4e   : > { %p4370_p1 = pneg %p4369_p2 }
  0x4f   : > { %p4376_p5 = por %p4375_p3, %p4374_p10 }
  0x51   : > { %p4377_p9 = pnand %p4376_p5, %p4370_p1 }
  0x53   : > { %4380 = shalt.err (!%p4377_p9)
}
  0x54   : > { %s4381_s30 = scalar_lea.vmem %s4646_s28, 4096  ;;  %s4474_s11 = smov [#allocation2]  }
  0x55   : > { %p4382_p12 = scmp.ne.s32.totalorder %s4646_s28, %s4381_s30  ;;  %s4386_s23 = sshll.u32 %s4474_s11, 4  ;;  %s4387_s23 = int_to_ptr.vmem [resolvable:$false] %s4386_s23 }
  0x56   : > { %s4388_s7 = scalar_lea.vmem %s4387_s23, 8192  ;;  %p4389_p4 = scmp.lt.s32.totalorder %s4646_s28, %s4387_s23 }
  0x57   : > { %p4384_p2 = pnand %p4382_p12, %p4368_p0  ;;  %p4390_p13 = scmp.lt.s32.totalorder %s4388_s7, %s4381_s30 }
  0x59   : > { %p4385_p7 = pneg %p4384_p2  ;;  %p4391_p6 = por %p4390_p13, %p4389_p4 }
  0x5b   : > { %p4392_p10 = pnand %p4391_p6, %p4385_p7 }
  0x5d   : > { %4395 = shalt.err (!%p4392_p10)
}
  0x5e   : > { %3762 = dma.hbm_to_vmem [thread:$0]  (!%p4648_p11), %s4644_s10, 4096, %s4646_s28, %s4652_s15, %s4472_s12, %s4472_s12, %s4473_s13  }
  0x5f   : > { %232 = sbr.rel (%p4548_p8) target bundleno = 981 (0x3d5), region = 40 }
  0x66   : > { %s4686_s17 = sand.u32 1, %s4458_s19   ;;  %p6755_p4 = scmp.ne.s32.totalorder %s6748_s24, 0 }
  0x67   : > { %s3438_s6 = sshll.u32 %s4686_s17, 8  ;;  %s235_s8 = scalar_lea.sflag [#allocation3], %s4686_s17 }
  0x68   : > { %s4690_s9 = scalar_lea.vmem [#allocation2], %s3438_s6 }
  0x69   : > { %4441 = dma.done.wait (%p6755_p4), %s235_s8, 4096  }
  0x6a   : > { %4443 = vsyncadd (%p6755_p4), %s235_s8, 4294963200  ;;  %p6756_p7 = scmp.eq.s32.totalorder %s4529_s22, 0 }
  0x6c   : > { %4445 = dma.done.wait (%p6756_p7), [#allocation6], 16384   ;;  %p6757_p8 = pmov %p6756_p7 }
  0x6d   : > { %v3813_v0 = vld [vmem:[#allocation5 + $0x4] ss:$16 sps:$4 sm:$0xff]   ;;  %v3815_v1 = vld [vmem:[#allocation5] ss:$16 sps:$4 sm:$0xff]   ;;  %v3866_v33 = vld [vmem:[#allocation5 + $0xc] ss:$16 sps:$4 sm:$0xff]  }
  0x6e   : > { %4447 = vsyncadd (%p6757_p8), [#allocation6], 4294950912  ;;  %873 = vmatprep.subr.bf16.mxu1 %v3813_v0  ;;  %v3816_v2 = vld [vmem:[#allocation5 + $0x24] ss:$16 sps:$4 sm:$0xff]   ;;  %v3818_v3 = vld [vmem:[#allocation5 + $0x20] ss:$16 sps:$4 sm:$0xff]  }
  0x6f   : > { %874 = vmatpush1.bf16.msra.mxu1 %v3815_v1  ;;  %v3819_v4 = vld [vmem:[#allocation5 + $0x44] ss:$16 sps:$4 sm:$0xff]   ;;  %v3821_v5 = vld [vmem:[#allocation5 + $0x40] ss:$16 sps:$4 sm:$0xff]   ;;  %v3864_v35 = vld [vmem:[#allocation5 + $0x8] ss:$16 sps:$4 sm:$0xff]  }
  0x70   : > { %875 = vmatprep.subr.bf16.mxu1 %v3816_v2  ;;  %v3822_v6 = vld [vmem:[#allocation5 + $0x64] ss:$16 sps:$4 sm:$0xff]   ;;  %v3824_v7 = vld [vmem:[#allocation5 + $0x60] ss:$16 sps:$4 sm:$0xff]   ;;  %v3872_v37 = vld [vmem:[#allocation5 + $0x2c] ss:$16 sps:$4 sm:$0xff]  }
  0x71   : > { %v3825_v8 = vld [vmem:[#allocation5 + $0x84] ss:$16 sps:$4 sm:$0xff]   ;;  %v3827_v9 = vld [vmem:[#allocation5 + $0x80] ss:$16 sps:$4 sm:$0xff]   ;;  %v3870_v38 = vld [vmem:[#allocation5 + $0x28] ss:$16 sps:$4 sm:$0xff]  }
  0x72   : > { %v3828_v10 = vld [vmem:[#allocation5 + $0xa4] ss:$16 sps:$4 sm:$0xff]   ;;  %v3830_v11 = vld [vmem:[#allocation5 + $0xa0] ss:$16 sps:$4 sm:$0xff]   ;;  %v3878_v39 = vld [vmem:[#allocation5 + $0x4c] ss:$16 sps:$4 sm:$0xff]  }
  0x73   : > { %876 = vmatpush1.bf16.msra.mxu1 %v3818_v3  ;;  %v3831_v12 = vld [vmem:[#allocation5 + $0xc4] ss:$16 sps:$4 sm:$0xff]   ;;  %v3833_v14 = vld [vmem:[#allocation5 + $0xc0] ss:$16 sps:$4 sm:$0xff]   ;;  %v3876_v42 = vld [vmem:[#allocation5 + $0x48] ss:$16 sps:$4 sm:$0xff]  }
  0x74   : > { %877 = vmatprep.subr.bf16.mxu1 %v3819_v4  ;;  %v4701_v13 = vld [vmem:[%s4690_s9 + $0x4] ss:$8 sps:$4 sm:$0xff]   ;;  %v3836_v16 = vld [vmem:[#allocation5 + $0xe0] ss:$16 sps:$4 sm:$0xff]   ;;  %v4708_v36 = vld [vmem:[%s4690_s9 + $0x14] ss:$8 sps:$4 sm:$0xff]  }
  0x75   : > { %v3834_v15 = vld [vmem:[#allocation5 + $0xe4] ss:$16 sps:$4 sm:$0xff]   ;;  %905 = vmatprep.mubr.bf16.mxu1 %v4701_v13  ;;  %v3839_v18 = vld [vmem:[#allocation5 + $0x100] ss:$16 sps:$4 sm:$0xff]   ;;  %v3884_v43 = vld [vmem:[#allocation5 + $0x6c] ss:$16 sps:$4 sm:$0xff]  }
  0x76   : > { %v3837_v17 = vld [vmem:[#allocation5 + $0x104] ss:$16 sps:$4 sm:$0xff]   ;;  %v3842_v20 = vld [vmem:[#allocation5 + $0x120] ss:$16 sps:$4 sm:$0xff]   ;;  %v3882_v44 = vld [vmem:[#allocation5 + $0x68] ss:$16 sps:$4 sm:$0xff]  }
  0x77   : > { %878 = vmatpush1.bf16.msra.mxu1 %v3821_v5  ;;  %v3840_v19 = vld [vmem:[#allocation5 + $0x124] ss:$16 sps:$4 sm:$0xff]   ;;  %v3845_v22 = vld [vmem:[#allocation5 + $0x140] ss:$16 sps:$4 sm:$0xff]   ;;  %v3890_v45 = vld [vmem:[#allocation5 + $0x8c] ss:$16 sps:$4 sm:$0xff]  }
  0x78   : > { %879 = vmatprep.subr.bf16.mxu1 %v3822_v6  ;;  %v3843_v21 = vld [vmem:[#allocation5 + $0x144] ss:$16 sps:$4 sm:$0xff]   ;;  %v3848_v24 = vld [vmem:[#allocation5 + $0x160] ss:$16 sps:$4 sm:$0xff]   ;;  %v3888_v48 = vld [vmem:[#allocation5 + $0x88] ss:$16 sps:$4 sm:$0xff]  }
  0x79   : > { %v3846_v23 = vld [vmem:[#allocation5 + $0x164] ss:$16 sps:$4 sm:$0xff]   ;;  %v3851_v26 = vld [vmem:[#allocation5 + $0x180] ss:$16 sps:$4 sm:$0xff]   ;;  %v3896_v49 = vld [vmem:[#allocation5 + $0xac] ss:$16 sps:$4 sm:$0xff]  }
  0x7a   : > { %v3849_v25 = vld [vmem:[#allocation5 + $0x184] ss:$16 sps:$4 sm:$0xff]   ;;  %v3854_v28 = vld [vmem:[#allocation5 + $0x1a0] ss:$16 sps:$4 sm:$0xff]   ;;  %v3894_v50 = vld [vmem:[#allocation5 + $0xa8] ss:$16 sps:$4 sm:$0xff]  }
  0x7b   : > { %880 = vmatpush1.bf16.msra.mxu1 %v3824_v7  ;;  %v3852_v27 = vld [vmem:[#allocation5 + $0x1a4] ss:$16 sps:$4 sm:$0xff]   ;;  %v3857_v30 = vld [vmem:[#allocation5 + $0x1c0] ss:$16 sps:$4 sm:$0xff]   ;;  %v3902_v51 = vld [vmem:[#allocation5 + $0xcc] ss:$16 sps:$4 sm:$0xff]  }
  0x7c   : > { %881 = vmatprep.subr.bf16.mxu1 %v3825_v8  ;;  %v3855_v29 = vld [vmem:[#allocation5 + $0x1c4] ss:$16 sps:$4 sm:$0xff]   ;;  %v3860_v32 = vld [vmem:[#allocation5 + $0x1e0] ss:$16 sps:$4 sm:$0xff]   ;;  %v3900_v54 = vld [vmem:[#allocation5 + $0xc8] ss:$16 sps:$4 sm:$0xff]  }
  0x7d   : > { %v3858_v31 = vld [vmem:[#allocation5 + $0x1e4] ss:$16 sps:$4 sm:$0xff]   ;;  %v4705_v34 = vld [vmem:[%s4690_s9] ss:$8 sps:$4 sm:$0xff]   ;;  %v4713_v40 = vld [vmem:[%s4690_s9 + $0x10] ss:$8 sps:$4 sm:$0xff]  }
  0x7e   : > { %v4716_v41 = vld [vmem:[%s4690_s9 + $0x24] ss:$8 sps:$4 sm:$0xff]   ;;  %v4721_v46 = vld [vmem:[%s4690_s9 + $0x20] ss:$8 sps:$4 sm:$0xff]   ;;  %v4724_v47 = vld [vmem:[%s4690_s9 + $0x34] ss:$8 sps:$4 sm:$0xff]  }
  0x7f   : > { %882 = vmatpush1.bf16.msra.mxu1 %v3827_v9  ;;  %v4729_v52 = vld [vmem:[%s4690_s9 + $0x30] ss:$8 sps:$4 sm:$0xff]   ;;  %v4732_v53 = vld [vmem:[%s4690_s9 + $0x44] ss:$8 sps:$4 sm:$0xff]   ;;  %v4737_v58 = vld [vmem:[%s4690_s9 + $0x40] ss:$8 sps:$4 sm:$0xff]  }
  0x80   : > { %883 = vmatprep.subr.bf16.mxu1 %v3828_v10  ;;  %v3908_v55 = vld [vmem:[#allocation5 + $0xec] ss:$16 sps:$4 sm:$0xff]   ;;  %v3906_v56 = vld [vmem:[#allocation5 + $0xe8] ss:$16 sps:$4 sm:$0xff]   ;;  %s3441_s14 = sshll.u32 %s4686_s17, 9  ;;  %s3611_s30 = sshll.u32 %s4529_s22, 13 }
  0x81   : > { %v3914_v57 = vld [vmem:[#allocation5 + $0x10c] ss:$16 sps:$4 sm:$0xff]   ;;  %v3912_v60 = vld [vmem:[#allocation5 + $0x108] ss:$16 sps:$4 sm:$0xff]   ;;  %s6552_s15 = scalar_lea.vmem [#allocation8], %s3441_s14  ;;  %s6681_s6 = scalar_lea.hbm %s6736_s5, %s3611_s30 }
  0x82   : > { %v4740_v59 = vld [vmem:[%s4690_s9 + $0x54] ss:$8 sps:$4 sm:$0xff]   ;;  %v3918_v62 = vld [vmem:[#allocation5 + $0x128] ss:$16 sps:$4 sm:$0xff]   ;;  %v4748_v1 = vld [vmem:[%s4690_s9 + $0x64] ss:$8 sps:$4 sm:$0xff]  }
  0x83   : > { %884 = vmatpush1.bf16.msra.mxu1 %v3830_v11  ;;  %v3920_v61 = vld [vmem:[#allocation5 + $0x12c] ss:$16 sps:$4 sm:$0xff]   ;;  %v4745_v0 = vld [vmem:[%s4690_s9 + $0x50] ss:$8 sps:$4 sm:$0xff]   ;;  %v4753_v6 = vld [vmem:[%s4690_s9 + $0x60] ss:$8 sps:$4 sm:$0xff]  }
  0x84   : > { %885 = vmatprep.subr.bf16.mxu1 %v3831_v12  ;;  %v3926_v63 = vld [vmem:[#allocation5 + $0x14c] ss:$16 sps:$4 sm:$0xff]   ;;  %v3924_v2 = vld [vmem:[#allocation5 + $0x148] ss:$16 sps:$4 sm:$0xff]   ;;  %s3336_s11 = sshll.u32 %s6552_s15, 4  ;;  %s3322_s22 = scalar_lea.sflag [#allocation4], %s4686_s17  ;;  %s6683_s11 = int_to_ptr.vmem [resolvable:$true] %s3336_s11 }
  0x85   : > { %v3932_v3 = vld [vmem:[#allocation5 + $0x16c] ss:$16 sps:$4 sm:$0xff]   ;;  %v3930_v4 = vld [vmem:[#allocation5 + $0x168] ss:$16 sps:$4 sm:$0xff]   ;;  %s4396_s8 = scalar_lea.vmem %s6683_s11, 8192  ;;  %p6805_p0 = scmp.ne.s32.totalorder %s6753_s29, 0 }
  0x86   : > { %v3938_v5 = vld [vmem:[#allocation5 + $0x18c] ss:$16 sps:$4 sm:$0xff]   ;;  %v3936_v8 = vld [vmem:[#allocation5 + $0x188] ss:$16 sps:$4 sm:$0xff]   ;;  %p4397_p11 = scmp.ne.s32.totalorder %s6683_s11, %s4396_s8 }
  0x87   : > { %886 = vmatpush1.bf16.msra.mxu1 %v3833_v14  ;;  %v4756_v7 = vld [vmem:[%s4690_s9 + $0x74] ss:$8 sps:$4 sm:$0xff]   ;;  %v3942_v10 = vld [vmem:[#allocation5 + $0x1a8] ss:$16 sps:$4 sm:$0xff]   ;;  %v3957_v11 = vld [vmem:[#allocation7 + $0x4] ss:$8 sps:$4 sm:$0xff]  }
  0x88   : > { %887 = vmatprep.subr.bf16.mxu1 %v3834_v15  ;;  %v3944_v9 = vld [vmem:[#allocation5 + $0x1ac] ss:$16 sps:$4 sm:$0xff]   ;;  %2871 = vmatprep.subr.bf16.mxu0 %v3957_v11  ;;  %v4761_v14 = vld [vmem:[%s4690_s9 + $0x70] ss:$8 sps:$4 sm:$0xff]   ;;  %v4001_v11 = vld [vmem:[#allocation7 + $0xe0] ss:$8 sps:$4 sm:$0xff]   ;;  %p4398_p1 = pnand %p4397_p11, %p6805_p0 }
  0x89   : > { %v3950_v12 = vld [vmem:[#allocation5 + $0x1cc] ss:$16 sps:$4 sm:$0xff]  }
  0x8a   : > { %v4764_v15 = vld [vmem:[%s4690_s9 + $0x84] ss:$8 sps:$4 sm:$0xff]   ;;  %p4399_p3 = pneg %p4398_p1 }
  0x8b   : > { %888 = vmatpush1.bf16.msra.mxu1 %v3836_v16  ;;  %v3948_v16 = vld [vmem:[#allocation5 + $0x1c8] ss:$16 sps:$4 sm:$0xff]  }
  0x8c   : > { %889 = vmatprep.subr.bf16.mxu1 %v3837_v17  ;;  %v3956_v17 = vld [vmem:[#allocation5 + $0x1ec] ss:$16 sps:$4 sm:$0xff]  }
  0x8f   : > { %890 = vmatpush1.bf16.msra.mxu1 %v3839_v18  ;;  %v3959_v18 = vld [vmem:[#allocation7] ss:$8 sps:$4 sm:$0xff]  }
  0x90   : > { %891 = vmatprep.subr.bf16.mxu1 %v3840_v19  ;;  %2872 = vmatpush1.bf16.msra.mxu0 %v3959_v18  ;;  %v3960_v19 = vld [vmem:[#allocation7 + $0x14] ss:$8 sps:$4 sm:$0xff]   ;;  %v4007_v18 = vld [vmem:[#allocation7 + $0x104] ss:$8 sps:$4 sm:$0xff]  }
  0x91   : > { %2873 = vmatprep.subr.bf16.mxu0 %v3960_v19 }
  0x93   : > { %892 = vmatpush1.bf16.msra.mxu1 %v3842_v20  ;;  %v3962_v20 = vld [vmem:[#allocation7 + $0x10] ss:$8 sps:$4 sm:$0xff]  }
  0x94   : > { %893 = vmatprep.subr.bf16.mxu1 %v3843_v21  ;;  %v3954_v21 = vld [vmem:[#allocation5 + $0x1e8] ss:$16 sps:$4 sm:$0xff]   ;;  %2874 = vmatpush1.bf16.msra.mxu0 %v3962_v20 }
  0x97   : > { %894 = vmatpush1.bf16.msra.mxu1 %v3845_v22  ;;  %v3963_v22 = vld [vmem:[#allocation7 + $0x24] ss:$8 sps:$4 sm:$0xff]  }
  0x98   : > { %895 = vmatprep.subr.bf16.mxu1 %v3846_v23  ;;  %v4769_v23 = vld [vmem:[%s4690_s9 + $0x80] ss:$8 sps:$4 sm:$0xff]   ;;  %2875 = vmatprep.subr.bf16.mxu0 %v3963_v22 }
  0x9b   : > { %896 = vmatpush1.bf16.msra.mxu1 %v3848_v24  ;;  %v4772_v24 = vld [vmem:[%s4690_s9 + $0x94] ss:$8 sps:$4 sm:$0xff]  }
  0x9c   : > { %897 = vmatprep.subr.bf16.mxu1 %v3849_v25  ;;  %v3965_v25 = vld [vmem:[#allocation7 + $0x20] ss:$8 sps:$4 sm:$0xff]  }
  0x9d   : > { %2876 = vmatpush1.bf16.msra.mxu0 %v3965_v25 }
  0x9f   : > { %898 = vmatpush1.bf16.msra.mxu1 %v3851_v26  ;;  %v3966_v26 = vld [vmem:[#allocation7 + $0x34] ss:$8 sps:$4 sm:$0xff]  }
  0xa0   : > { %899 = vmatprep.subr.bf16.mxu1 %v3852_v27  ;;  %v3968_v27 = vld [vmem:[#allocation7 + $0x30] ss:$8 sps:$4 sm:$0xff]   ;;  %2877 = vmatprep.subr.bf16.mxu0 %v3966_v26 }
  0xa1   : > { %2878 = vmatpush1.bf16.msra.mxu0 %v3968_v27 }
  0xa3   : > { %900 = vmatpush1.bf16.msra.mxu1 %v3854_v28  ;;  %v3969_v28 = vld [vmem:[#allocation7 + $0x44] ss:$8 sps:$4 sm:$0xff]  }
  0xa4   : > { %901 = vmatprep.subr.bf16.mxu1 %v3855_v29  ;;  %v4777_v29 = vld [vmem:[%s4690_s9 + $0x90] ss:$8 sps:$4 sm:$0xff]   ;;  %2879 = vmatprep.subr.bf16.mxu0 %v3969_v28 }
  0xa7   : > { %902 = vmatpush1.bf16.msra.mxu1 %v3857_v30  ;;  %v4780_v30 = vld [vmem:[%s4690_s9 + $0xa4] ss:$8 sps:$4 sm:$0xff]  }
  0xa8   : > { %903 = vmatprep.subr.bf16.mxu1 %v3858_v31  ;;  %v3971_v31 = vld [vmem:[#allocation7 + $0x40] ss:$8 sps:$4 sm:$0xff]  }
  0xa9   : > { %2880 = vmatpush1.bf16.msra.mxu0 %v3971_v31 }
  0xab   : > { %904 = vmatpush1.bf16.msra.mxu1 %v3860_v32  ;;  %v3972_v32 = vld [vmem:[#allocation7 + $0x54] ss:$8 sps:$4 sm:$0xff]  }
  0xac   : > { %1066 = vmatprep.subr.bf16.mxu1 %v3866_v33  ;;  %v3974_v33 = vld [vmem:[#allocation7 + $0x50] ss:$8 sps:$4 sm:$0xff]   ;;  %2881 = vmatprep.subr.bf16.mxu0 %v3972_v32 }
  0xad   : > { %2882 = vmatpush1.bf16.msra.mxu0 %v3974_v33 }
  0xae   : > { %906 = vmatmul.mubr.bf16.vlgmr.msra.gmra.mrb[0].mxu1 %v4705_v34 }
  0xaf   : > { %1067 = vmatpush1.bf16.msra.mxu1 %v3864_v35  ;;  %915 = vmatprep.mubr.bf16.mxu1 %v4708_v36  ;;  %v3975_v35 = vld [vmem:[#allocation7 + $0x64] ss:$8 sps:$4 sm:$0xff]  }
  0xb0   : > { %1068 = vmatprep.subr.bf16.mxu1 %v3872_v37  ;;  %v4785_v37 = vld [vmem:[%s4690_s9 + $0xa0] ss:$8 sps:$4 sm:$0xff]   ;;  %2883 = vmatprep.subr.bf16.mxu0 %v3975_v35 }
  0xb3   : > { %1069 = vmatpush1.bf16.msra.mxu1 %v3870_v38  ;;  %v4788_v38 = vld [vmem:[%s4690_s9 + $0xb4] ss:$8 sps:$4 sm:$0xff]  }
  0xb4   : > { %1070 = vmatprep.subr.bf16.mxu1 %v3878_v39  ;;  %v3977_v39 = vld [vmem:[#allocation7 + $0x60] ss:$8 sps:$4 sm:$0xff]  }
  0xb5   : > { %2884 = vmatpush1.bf16.msra.mxu0 %v3977_v39 }
  0xb6   : > { %916 = vmatmul.mubr.bf16.gmra.mrb[4].mxu1 %v4713_v40 }
  0xb7   : > { %925 = vmatprep.mubr.bf16.mxu1 %v4716_v41  ;;  %1071 = vmatpush1.bf16.msra.mxu1 %v3876_v42  ;;  %v3978_v42 = vld [vmem:[#allocation7 + $0x74] ss:$8 sps:$4 sm:$0xff]  }
  0xb8   : > { %1072 = vmatprep.subr.bf16.mxu1 %v3884_v43  ;;  %v3980_v43 = vld [vmem:[#allocation7 + $0x70] ss:$8 sps:$4 sm:$0xff]   ;;  %2885 = vmatprep.subr.bf16.mxu0 %v3978_v42 }
  0xb9   : > { %2886 = vmatpush1.bf16.msra.mxu0 %v3980_v43 }
  0xbb   : > { %1073 = vmatpush1.bf16.msra.mxu1 %v3882_v44  ;;  %v4793_v44 = vld [vmem:[%s4690_s9 + $0xb0] ss:$8 sps:$4 sm:$0xff]  }
  0xbc   : > { %1074 = vmatprep.subr.bf16.mxu1 %v3890_v45  ;;  %v4796_v45 = vld [vmem:[%s4690_s9 + $0xc4] ss:$8 sps:$4 sm:$0xff]  }
  0xbe   : > { %926 = vmatmul.mubr.bf16.gmra.mrb[8].mxu1 %v4721_v46 }
  0xbf   : > { %935 = vmatprep.mubr.bf16.mxu1 %v4724_v47  ;;  %1075 = vmatpush1.bf16.msra.mxu1 %v3888_v48  ;;  %v3981_v48 = vld [vmem:[#allocation7 + $0x84] ss:$8 sps:$4 sm:$0xff]  }
  0xc0   : > { %1076 = vmatprep.subr.bf16.mxu1 %v3896_v49  ;;  %v3983_v49 = vld [vmem:[#allocation7 + $0x80] ss:$8 sps:$4 sm:$0xff]   ;;  %2887 = vmatprep.subr.bf16.mxu0 %v3981_v48 }
  0xc1   : > { %2888 = vmatpush1.bf16.msra.mxu0 %v3983_v49 }
  0xc3   : > { %1077 = vmatpush1.bf16.msra.mxu1 %v3894_v50  ;;  %v3984_v50 = vld [vmem:[#allocation7 + $0x94] ss:$8 sps:$4 sm:$0xff]  }
  0xc4   : > { %1078 = vmatprep.subr.bf16.mxu1 %v3902_v51  ;;  %v3986_v51 = vld [vmem:[#allocation7 + $0x90] ss:$8 sps:$4 sm:$0xff]   ;;  %2889 = vmatprep.subr.bf16.mxu0 %v3984_v50 }
  0xc5   : > { %2890 = vmatpush1.bf16.msra.mxu0 %v3986_v51 }
  0xc6   : > { %936 = vmatmul.mubr.bf16.gmra.mrb[12].mxu1 %v4729_v52 }
  0xc7   : > { %945 = vmatprep.mubr.bf16.mxu1 %v4732_v53  ;;  %1079 = vmatpush1.bf16.msra.mxu1 %v3900_v54  ;;  %v4801_v54 = vld [vmem:[%s4690_s9 + $0xc0] ss:$8 sps:$4 sm:$0xff]  }
  0xc8   : > { %1080 = vmatprep.subr.bf16.mxu1 %v3908_v55  ;;  %v4804_v55 = vld [vmem:[%s4690_s9 + $0xd4] ss:$8 sps:$4 sm:$0xff]  }
  0xcb   : > { %1081 = vmatpush1.bf16.msra.mxu1 %v3906_v56  ;;  %v3987_v56 = vld [vmem:[#allocation7 + $0xa4] ss:$8 sps:$4 sm:$0xff]  }
  0xcc   : > { %1082 = vmatprep.subr.bf16.mxu1 %v3914_v57  ;;  %v3989_v57 = vld [vmem:[#allocation7 + $0xa0] ss:$8 sps:$4 sm:$0xff]   ;;  %2891 = vmatprep.subr.bf16.mxu0 %v3987_v56 }
  0xcd   : > { %2892 = vmatpush1.bf16.msra.mxu0 %v3989_v57 }
  0xce   : > { %946 = vmatmul.mubr.bf16.gmra.mrb[16].mxu1 %v4737_v58 }
  0xcf   : > { %955 = vmatprep.mubr.bf16.mxu1 %v4740_v59  ;;  %1083 = vmatpush1.bf16.msra.mxu1 %v3912_v60  ;;  %v3990_v60 = vld [vmem:[#allocation7 + $0xb4] ss:$8 sps:$4 sm:$0xff]  }
  0xd0   : > { %1084 = vmatprep.subr.bf16.mxu1 %v3920_v61  ;;  %v3992_v61 = vld [vmem:[#allocation7 + $0xb0] ss:$8 sps:$4 sm:$0xff]   ;;  %2893 = vmatprep.subr.bf16.mxu0 %v3990_v60 }
  0xd1   : > { %2894 = vmatpush1.bf16.msra.mxu0 %v3992_v61 }
  0xd3   : > { %1085 = vmatpush1.bf16.msra.mxu1 %v3918_v62  ;;  %v4809_v62 = vld [vmem:[%s4690_s9 + $0xd0] ss:$8 sps:$4 sm:$0xff]  }
  0xd4   : > { %1086 = vmatprep.subr.bf16.mxu1 %v3926_v63  ;;  %v4812_v63 = vld [vmem:[%s4690_s9 + $0xe4] ss:$8 sps:$4 sm:$0xff]  }
  0xd6   : > { %956 = vmatmul.mubr.bf16.gmra.mrb[20].mxu1 %v4745_v0 }
  0xd7   : > { %965 = vmatprep.mubr.bf16.mxu1 %v4748_v1  ;;  %1087 = vmatpush1.bf16.msra.mxu1 %v3924_v2  ;;  %v3993_v2 = vld [vmem:[#allocation7 + $0xc4] ss:$8 sps:$4 sm:$0xff]  }
  0xd8   : > { %1088 = vmatprep.subr.bf16.mxu1 %v3932_v3  ;;  %v3995_v3 = vld [vmem:[#allocation7 + $0xc0] ss:$8 sps:$4 sm:$0xff]   ;;  %2895 = vmatprep.subr.bf16.mxu0 %v3993_v2 }
  0xd9   : > { %2896 = vmatpush1.bf16.msra.mxu0 %v3995_v3 }
  0xdb   : > { %1089 = vmatpush1.bf16.msra.mxu1 %v3930_v4  ;;  %v3996_v4 = vld [vmem:[#allocation7 + $0xd4] ss:$8 sps:$4 sm:$0xff]  }
  0xdc   : > { %1090 = vmatprep.subr.bf16.mxu1 %v3938_v5  ;;  %v3998_v5 = vld [vmem:[#allocation7 + $0xd0] ss:$8 sps:$4 sm:$0xff]   ;;  %2897 = vmatprep.subr.bf16.mxu0 %v3996_v4 }
  0xdd   : > { %2898 = vmatpush1.bf16.msra.mxu0 %v3998_v5 }
  0xde   : > { %966 = vmatmul.mubr.bf16.gmra.mrb[24].mxu1 %v4753_v6 }
  0xdf   : > { %975 = vmatprep.mubr.bf16.mxu1 %v4756_v7  ;;  %1091 = vmatpush1.bf16.msra.mxu1 %v3936_v8  ;;  %v4817_v8 = vld [vmem:[%s4690_s9 + $0xe0] ss:$8 sps:$4 sm:$0xff]  }
  0xe0   : > { %1092 = vmatprep.subr.bf16.mxu1 %v3944_v9  ;;  %v4820_v9 = vld [vmem:[%s4690_s9 + $0xf4] ss:$8 sps:$4 sm:$0xff]  }
  0xe3   : > { %1093 = vmatpush1.bf16.msra.mxu1 %v3942_v10  ;;  %v3999_v10 = vld [vmem:[#allocation7 + $0xe4] ss:$8 sps:$4 sm:$0xff]  }
  0xe4   : > { %1094 = vmatprep.subr.bf16.mxu1 %v3950_v12  ;;  %2899 = vmatprep.subr.bf16.mxu0 %v3999_v10  ;;  %v4002_v12 = vld [vmem:[#allocation7 + $0xf4] ss:$8 sps:$4 sm:$0xff]  }
  0xe5   : > { %2900 = vmatpush1.bf16.msra.mxu0 %v4001_v11 }
  0xe6   : > { %976 = vmatmul.mubr.bf16.gmra.mrb[28].mxu1 %v4761_v14  ;;  %2901 = vmatprep.subr.bf16.mxu0 %v4002_v12 }
  0xe7   : > { %985 = vmatprep.mubr.bf16.mxu1 %v4764_v15  ;;  %1095 = vmatpush1.bf16.msra.mxu1 %v3948_v16  ;;  %v4004_v16 = vld [vmem:[#allocation7 + $0xf0] ss:$8 sps:$4 sm:$0xff]  }
  0xe8   : > { %1096 = vmatprep.subr.bf16.mxu1 %v3956_v17  ;;  %v4825_v17 = vld [vmem:[%s4690_s9 + $0xf0] ss:$8 sps:$4 sm:$0xff]   ;;  %s4475_s9 = smov [#allocation8]  }
  0xe9   : > { %2902 = vmatpush1.bf16.msra.mxu0 %v4004_v16  ;;  %s4400_s24 = sshll.u32 %s4475_s9, 4  ;;  %s4401_s24 = int_to_ptr.vmem [resolvable:$false] %s4400_s24 }
  0xea   : > { %3064 = vmatprep.subr.bf16.mxu0 %v4007_v18  ;;  %s4402_s26 = scalar_lea.vmem %s4401_s24, 16384  ;;  %p4403_p5 = scmp.lt.s32.totalorder %s6683_s11, %s4401_s24 }
  0xeb   : > { %1097 = vmatpush1.bf16.msra.mxu1 %v3954_v21  ;;  %p4404_p9 = scmp.lt.s32.totalorder %s4402_s26, %s4396_s8 }
  0xed   : > { %p4405_p12 = por %p4404_p9, %p4403_p5 }
  0xee   : > { %986 = vmatmul.mubr.bf16.gmra.mrb[32].mxu1 %v4769_v23 }
  0xef   : > { %995 = vmatprep.mubr.bf16.mxu1 %v4772_v24  ;;  %p4406_p2 = pnand %p4405_p12, %p4399_p3 }
  0xf6   : > { %996 = vmatmul.mubr.bf16.gmra.mrb[36].mxu1 %v4777_v29 }
  0xf7   : > { %1005 = vmatprep.mubr.bf16.mxu1 %v4780_v30 }
  0xfe   : > { %1006 = vmatmul.mubr.bf16.gmra.mrb[40].mxu1 %v4785_v37 }
  0xff   : > { %1015 = vmatprep.mubr.bf16.mxu1 %v4788_v38 }
 0x106   : > { %1016 = vmatmul.mubr.bf16.gmra.mrb[44].mxu1 %v4793_v44 }
 0x107   : > { %1025 = vmatprep.mubr.bf16.mxu1 %v4796_v45 }
 0x10e   : > { %1026 = vmatmul.mubr.bf16.gmra.mrb[48].mxu1 %v4801_v54 }
 0x10f   : > { %1035 = vmatprep.mubr.bf16.mxu1 %v4804_v55 }
 0x116   : > { %1036 = vmatmul.mubr.bf16.gmra.mrb[52].mxu1 %v4809_v62 }
 0x117   : > { %1045 = vmatprep.mubr.bf16.mxu1 %v4812_v63 }
 0x11e   : > { %1046 = vmatmul.mubr.bf16.gmra.mrb[56].mxu1 %v4817_v8 }
 0x11f   : > { %1055 = vmatprep.mubr.bf16.mxu1 %v4820_v9 }
 0x126   : > { %1056 = vmatmul.mubr.bf16.gmra.mrb[60].mxu1 %v4825_v17 }
 0x127   : > { %1098 = vmatprep.mubr.bf16.mxu1 %v4701_v13  ;;  %v373_v13 = vlaneseq }
 0x12e   : > { %1099 = vmatmul.mubr.bf16.vlgmr.msra.gmra.mrb[64].mxu1 %v4705_v34  ;;  %v4848_v34 = vshrl.u32 %v373_v13, 7 }
 0x12f   : > { %1108 = vmatprep.mubr.bf16.mxu1 %v4708_v36 }
 0x130   : > { %6758 = vst [vmem:[#allocation12_spill] sm:$0xff] %v4848_v34  ;;  %v6741_v36 = vsub.s32 0, %v4848_v34 }
 0x136   : > { %1109 = vmatmul.mubr.bf16.gmra.mrb[68].mxu1 %v4713_v40  ;;  %v371_v40 = vld [vmem:[%s6733_s2] sm:$0xf] }
 0x137   : > { %1118 = vmatprep.mubr.bf16.mxu1 %v4716_v41  ;;  %v6740_v41 = vsub.s32 1, %v4848_v34 }
 0x13e   : > { %1119 = vmatmul.mubr.bf16.gmra.mrb[72].mxu1 %v4721_v46  ;;  %v4859_v46 = vrot.slane %v371_v40, %v6741_v36 }
 0x13f   : > { %1128 = vmatprep.mubr.bf16.mxu1 %v4724_v47  ;;  %v4863_v47 = vrot.slane %v371_v40, %v6740_v41 }
 0x146   : > { %1129 = vmatmul.mubr.bf16.gmra.mrb[76].mxu1 %v4729_v52 }
 0x147   : > { %1138 = vmatprep.mubr.bf16.mxu1 %v4732_v53 }
 0x14e   : > { %1139 = vmatmul.mubr.bf16.gmra.mrb[80].mxu1 %v4737_v58 }
 0x14f   : > { %1148 = vmatprep.mubr.bf16.mxu1 %v4740_v59 }
 0x156   : > { %1149 = vmatmul.mubr.bf16.gmra.mrb[84].mxu1 %v4745_v0 }
 0x157   : > { %1158 = vmatprep.mubr.bf16.mxu1 %v4748_v1 }
 0x15e   : > { %1159 = vmatmul.mubr.bf16.gmra.mrb[88].mxu1 %v4753_v6 }
 0x15f   : > { %1168 = vmatprep.mubr.bf16.mxu1 %v4756_v7 }
 0x166   : > { %1169 = vmatmul.mubr.bf16.gmra.mrb[92].mxu1 %v4761_v14 }
 0x167   : > { %1178 = vmatprep.mubr.bf16.mxu1 %v4764_v15 }
 0x16e   : > { %1179 = vmatmul.mubr.bf16.gmra.mrb[96].mxu1 %v4769_v23 }
 0x16f   : > { %1188 = vmatprep.mubr.bf16.mxu1 %v4772_v24 }
 0x176   : > { %1189 = vmatmul.mubr.bf16.gmra.mrb[100].mxu1 %v4777_v29 }
 0x177   : > { %1198 = vmatprep.mubr.bf16.mxu1 %v4780_v30 }
 0x17e   : > { %1199 = vmatmul.mubr.bf16.gmra.mrb[104].mxu1 %v4785_v37 }
 0x17f   : > { %1208 = vmatprep.mubr.bf16.mxu1 %v4788_v38 }
 0x181   : > { %v907_v52 = vpop.f32.mrb[0].mxu1 }
 0x182   : > { %v4867_v53 = vadd.f32 %v907_v52, %v4859_v46  ;;  %v909_v58 = vpop.f32.mrb[1].mxu1 }
 0x183   : > { %v4870_v59 = vadd.f32 %v909_v58, %v4863_v47  ;;  %v911_v0 = vpop.f32.mrb[2].mxu1 }
 0x184   : > { %v1259_v1 = vmul.f32 %v4867_v53, %v4867_v53  ;;  %v4875_v6 = vadd.f32 %v911_v0, %v4859_v46  ;;  %v913_v7 = vpop.f32.mrb[3].mxu1 }
 0x185   : > { %v1260_v14 = vmul.f32 %v4870_v59, %v4870_v59  ;;  %v4880_v15 = vadd.f32 %v913_v7, %v4863_v47 }
 0x186   : > { %v1387_v19 = vmul.f32 %v1259_v1, %v4867_v53  ;;  %v1263_v20 = vmul.f32 %v4875_v6, %v4875_v6  ;;  %1209 = vmatmul.mubr.bf16.gmra.mrb[108].mxu1 %v4793_v44 }
 0x187   : > { %v1388_v21 = vmul.f32 %v1260_v14, %v4870_v59  ;;  %v1264_v22 = vmul.f32 %v4880_v15, %v4880_v15  ;;  %1218 = vmatprep.mubr.bf16.mxu1 %v4796_v45 }
 0x188   : > { %v1515_v23 = vmul.f32 0.044715, %v1387_v19  ;;  %v1391_v24 = vmul.f32 %v1263_v20, %v4875_v6 }
 0x189   : > { %v1516_v25 = vmul.f32 0.044715, %v1388_v21  ;;  %v1392_v26 = vmul.f32 %v1264_v22, %v4880_v15  ;;  %v917_v27 = vpop.f32.mrb[4].mxu1 }
 0x18a   : > { %v1643_v28 = vadd.f32 %v1515_v23, %v4867_v53  ;;  %v1519_v29 = vmul.f32 0.044715, %v1391_v24  ;;  %v4894_v30 = vadd.f32 %v917_v27, %v4859_v46  ;;  %v919_v31 = vpop.f32.mrb[5].mxu1 }
 0x18b   : > { %v1520_v32 = vmul.f32 0.044715, %v1392_v26  ;;  %v4897_v33 = vadd.f32 %v919_v31, %v4863_v47  ;;  %v921_v35 = vpop.f32.mrb[6].mxu1  ;;  %v1644_v37 = vadd.f32 %v1516_v25, %v4870_v59 }
 0x18c   : > { %v1771_v38 = vmul.f32 0.7978846, %v1643_v28  ;;  %v1647_v39 = vadd.f32 %v1519_v29, %v4875_v6  ;;  %v1267_v42 = vmul.f32 %v4894_v30, %v4894_v30  ;;  %v4904_v43 = vadd.f32 %v921_v35, %v4859_v46  ;;  %v923_v44 = vpop.f32.mrb[7].mxu1 }
 0x18d   : > { %v1268_v45 = vmul.f32 %v4897_v33, %v4897_v33  ;;  %v4909_v48 = vadd.f32 %v923_v44, %v4863_v47  ;;  %v1648_v49 = vadd.f32 %v1520_v32, %v4880_v15  ;;  %v1772_v50 = vmul.f32 0.7978846, %v1644_v37 }
 0x18e   : > { %4053 = vtanh.f32 %v1771_v38  ;;  %v1775_v51 = vmul.f32 0.7978846, %v1647_v39  ;;  %v1395_v56 = vmul.f32 %v1267_v42, %v4894_v30  ;;  %v1271_v57 = vmul.f32 %v4904_v43, %v4904_v43  ;;  %1219 = vmatmul.mubr.bf16.gmra.mrb[112].mxu1 %v4801_v54 }
 0x18f   : > { %v1396_v60 = vmul.f32 %v1268_v45, %v4897_v33  ;;  %v1272_v61 = vmul.f32 %v4909_v48, %v4909_v48  ;;  %1228 = vmatprep.mubr.bf16.mxu1 %v4804_v55  ;;  %v1776_v2 = vmul.f32 0.7978846, %v1648_v49  ;;  %4055 = vtanh.f32 %v1772_v50 }
 0x190   : > { %4057 = vtanh.f32 %v1775_v51  ;;  %v1523_v3 = vmul.f32 0.044715, %v1395_v56  ;;  %v1399_v4 = vmul.f32 %v1271_v57, %v4904_v43 }
 0x191   : > { %v1524_v5 = vmul.f32 0.044715, %v1396_v60  ;;  %v1400_v10 = vmul.f32 %v1272_v61, %v4909_v48  ;;  %v927_v11 = vpop.f32.mrb[8].mxu1  ;;  %4059 = vtanh.f32 %v1776_v2 }
 0x192   : > { %v1651_v12 = vadd.f32 %v1523_v3, %v4894_v30  ;;  %v1527_v54 = vmul.f32 0.044715, %v1399_v4  ;;  %v4924_v16 = vadd.f32 %v927_v11, %v4859_v46  ;;  %v929_v18 = vpop.f32.mrb[9].mxu1 }
 0x193   : > { %v1652_v13 = vadd.f32 %v1524_v5, %v4897_v33  ;;  %v1528_v55 = vmul.f32 0.044715, %v1400_v10  ;;  %v4928_v40 = vadd.f32 %v929_v18, %v4863_v47  ;;  %v931_v52 = vpop.f32.mrb[10].mxu1 }
 0x194   : > { %v1779_v58 = vmul.f32 0.7978846, %v1651_v12  ;;  %v1655_v0 = vadd.f32 %v1527_v54, %v4904_v43  ;;  %v1275_v1 = vmul.f32 %v4924_v16, %v4924_v16  ;;  %v4934_v7 = vadd.f32 %v931_v52, %v4859_v46  ;;  %v933_v14 = vpop.f32.mrb[11].mxu1 }
 0x195   : > { %v1780_v19 = vmul.f32 0.7978846, %v1652_v13  ;;  %v1656_v20 = vadd.f32 %v1528_v55, %v4909_v48  ;;  %v1276_v21 = vmul.f32 %v4928_v40, %v4928_v40  ;;  %v4940_v22 = vadd.f32 %v933_v14, %v4863_v47 }
 0x196   : > { %4061 = vtanh.f32 %v1779_v58  ;;  %v1783_v23 = vmul.f32 0.7978846, %v1655_v0  ;;  %v1403_v24 = vmul.f32 %v1275_v1, %v4924_v16  ;;  %v1279_v25 = vmul.f32 %v4934_v7, %v4934_v7  ;;  %1229 = vmatmul.mubr.bf16.gmra.mrb[116].mxu1 %v4809_v62 }
 0x197   : > { %4063 = vtanh.f32 %v1780_v19  ;;  %v1784_v26 = vmul.f32 0.7978846, %v1656_v20  ;;  %v1404_v27 = vmul.f32 %v1276_v21, %v4928_v40  ;;  %v1280_v28 = vmul.f32 %v4940_v22, %v4940_v22  ;;  %1238 = vmatprep.mubr.bf16.mxu1 %v4812_v63 }
 0x198   : > { %v4054_v29 = vpop.eup %4053  ;;  %4065 = vtanh.f32 %v1783_v23  ;;  %v1531_v31 = vmul.f32 0.044715, %v1403_v24  ;;  %v1407_v32 = vmul.f32 %v1279_v25, %v4934_v7 }
 0x199   : > { %v4056_v35 = vpop.eup %4055  ;;  %4067 = vtanh.f32 %v1784_v26  ;;  %v1532_v37 = vmul.f32 0.044715, %v1404_v27  ;;  %v1408_v38 = vmul.f32 %v1280_v28, %v4940_v22  ;;  %v937_v62 = vpop.f32.mrb[12].mxu1  ;;  %v4952_v39 = vadd.f32 1.0, %v4054_v29 }
 0x19a   : > { %v4058_v42 = vpop.eup %4057  ;;  %v1659_v44 = vadd.f32 %v1531_v31, %v4924_v16  ;;  %v1535_v45 = vmul.f32 0.044715, %v1407_v32  ;;  %v4956_v49 = vadd.f32 %v937_v62, %v4859_v46  ;;  %v939_v63 = vpop.f32.mrb[13].mxu1  ;;  %v2028_v50 = vadd.f32 1.0, %v4056_v35 }
 0x19b   : > { %v1660_v51 = vadd.f32 %v1532_v37, %v4928_v40  ;;  %v1536_v56 = vmul.f32 0.044715, %v1408_v38  ;;  %v4960_v57 = vadd.f32 %v939_v63, %v4863_v47  ;;  %v941_v60 = vpop.f32.mrb[14].mxu1  ;;  %v4962_v61 = vadd.f32 1.0, %v4058_v42  ;;  %v4060_v11 = vpop.eup %4059 }
 0x19c   : > { %v1787_v2 = vmul.f32 0.7978846, %v1659_v44  ;;  %v1663_v3 = vadd.f32 %v1535_v45, %v4934_v7  ;;  %v1283_v4 = vmul.f32 %v4956_v49, %v4956_v49  ;;  %v4968_v5 = vadd.f32 %v941_v60, %v4859_v46  ;;  %v943_v10 = vpop.f32.mrb[15].mxu1 }
 0x19d   : > { %v1788_v12 = vmul.f32 0.7978846, %v1660_v51  ;;  %v1664_v54 = vadd.f32 %v1536_v56, %v4940_v22  ;;  %v1284_v18 = vmul.f32 %v4960_v57, %v4960_v57  ;;  %v4974_v13 = vadd.f32 %v943_v10, %v4863_v47 }
 0x19e   : > { %4069 = vtanh.f32 %v1787_v2  ;;  %v1791_v55 = vmul.f32 0.7978846, %v1663_v3  ;;  %v1411_v52 = vmul.f32 %v1283_v4, %v4956_v49  ;;  %v1287_v58 = vmul.f32 %v4968_v5, %v4968_v5  ;;  %1239 = vmatmul.mubr.bf16.gmra.mrb[120].mxu1 %v4817_v8 }
 0x19f   : > { %4071 = vtanh.f32 %v1788_v12  ;;  %v1792_v0 = vmul.f32 0.7978846, %v1664_v54  ;;  %v1412_v1 = vmul.f32 %v1284_v18, %v4960_v57  ;;  %v1288_v14 = vmul.f32 %v4974_v13, %v4974_v13  ;;  %1248 = vmatprep.mubr.bf16.mxu1 %v4820_v9 }
 0x1a0   : > { %v4984_v19 = vpop.eup %4061  ;;  %4073 = vtanh.f32 %v1791_v55  ;;  %v1539_v20 = vmul.f32 0.044715, %v1411_v52  ;;  %v1415_v21 = vmul.f32 %v1287_v58, %v4968_v5  ;;  %v2032_v23 = vadd.f32 1.0, %v4060_v11 }
 0x1a1   : > { %v4987_v24 = vpop.eup %4063  ;;  %4075 = vtanh.f32 %v1792_v0  ;;  %v1540_v8 = vmul.f32 0.044715, %v1412_v1  ;;  %v1416_v25 = vmul.f32 %v1288_v14, %v4974_v13  ;;  %v947_v26 = vpop.f32.mrb[16].mxu1  ;;  %v2156_v27 = vmul.f32 0.5, %v2028_v50 }
 0x1a2   : > { %v4990_v28 = vpop.eup %4065  ;;  %v1667_v29 = vadd.f32 %v1539_v20, %v4956_v49  ;;  %v1543_v9 = vmul.f32 0.044715, %v1415_v21  ;;  %v4994_v31 = vadd.f32 %v947_v26, %v4859_v46  ;;  %v949_v32 = vpop.f32.mrb[17].mxu1  ;;  %v2160_v35 = vmul.f32 0.5, %v2032_v23 }
 0x1a3   : > { %v4996_v37 = vpop.eup %4067  ;;  %v1668_v38 = vadd.f32 %v1540_v8, %v4960_v57  ;;  %v1544_v62 = vmul.f32 0.044715, %v1416_v25  ;;  %v5000_v42 = vadd.f32 %v949_v32, %v4863_v47  ;;  %v951_v44 = vpop.f32.mrb[18].mxu1  ;;  %v2284_v45 = vmul.f32 %v2156_v27, %v4870_v59 }
 0x1a4   : > { %v1795_v63 = vmul.f32 0.7978846, %v1667_v29  ;;  %v1671_v50 = vadd.f32 %v1543_v9, %v4968_v5  ;;  %v1291_v51 = vmul.f32 %v4994_v31, %v4994_v31  ;;  %v5007_v56 = vadd.f32 %v951_v44, %v4859_v46  ;;  %v953_v60 = vpop.f32.mrb[19].mxu1 }
 0x1a5   : > { %v1796_v2 = vmul.f32 0.7978846, %v1668_v38  ;;  %v1672_v3 = vadd.f32 %v1544_v62, %v4974_v13  ;;  %v1292_v4 = vmul.f32 %v5000_v42, %v5000_v42  ;;  %v5013_v10 = vadd.f32 %v953_v60, %v4863_v47 }
 0x1a6   : > { %4077 = vtanh.f32 %v1795_v63  ;;  %v1799_v59 = vmul.f32 0.7978846, %v1671_v50  ;;  %v1419_v11 = vmul.f32 %v1291_v51, %v4994_v31  ;;  %v1295_v12 = vmul.f32 %v5007_v56, %v5007_v56  ;;  %1249 = vmatmul.mubr.bf16.gmra.mrb[124].mxu1 %v4825_v17 }
 0x1a7   : > { %4079 = vtanh.f32 %v1796_v2  ;;  %v1800_v54 = vmul.f32 0.7978846, %v1672_v3  ;;  %v1420_v18 = vmul.f32 %v1292_v4, %v5000_v42  ;;  %v1296_v55 = vmul.f32 %v5013_v10, %v5013_v10  ;;  %v4005_v2 = vld [vmem:[#allocation7 + $0x100] ss:$8 sps:$4 sm:$0xff]  }
 0x1a8   : > { %v5022_v52 = vpop.eup %4069  ;;  %4081 = vtanh.f32 %v1799_v59  ;;  %v1547_v58 = vmul.f32 0.044715, %v1419_v11  ;;  %v1423_v0 = vmul.f32 %v1295_v12, %v5007_v56  ;;  %v2288_v1 = vmul.f32 %v2160_v35, %v4880_v15  ;;  %v4010_v11 = vld [vmem:[#allocation7 + $0x114] ss:$8 sps:$4 sm:$0xff]  }
 0x1a9   : > { %v5026_v14 = vpop.eup %4071  ;;  %4083 = vtanh.f32 %v1800_v54  ;;  %v1548_v20 = vmul.f32 0.044715, %v1420_v18  ;;  %v1424_v17 = vmul.f32 %v1296_v55, %v5013_v10  ;;  %v2155_v21 = vmul.f32 0.5, %v4952_v39  ;;  %v957_v23 = vpop.f32.mrb[20].mxu1 }
 0x1aa   : > { %v5030_v8 = vpop.eup %4073  ;;  %v1675_v25 = vadd.f32 %v1547_v58, %v4994_v31  ;;  %v1551_v26 = vmul.f32 0.044715, %v1423_v0  ;;  %v2412_v27 = vpack.c.bf16 %v2288_v1, %v2284_v45  ;;  %v2159_v29 = vmul.f32 0.5, %v4962_v61  ;;  %v959_v9 = vpop.f32.mrb[21].mxu1 }
 0x1ab   : > { %v5034_v32 = vpop.eup %4075  ;;  %v1676_v15 = vadd.f32 %v1548_v20, %v5000_v42  ;;  %v1552_v35 = vmul.f32 0.044715, %v1424_v17  ;;  %v2283_v38 = vmul.f32 %v2155_v21, %v4867_v53  ;;  %v5039_v62 = vadd.f32 %v957_v23, %v4859_v46  ;;  %v961_v39 = vpop.f32.mrb[22].mxu1  ;;  %v4008_v20 = vld [vmem:[#allocation7 + $0x110] ss:$8 sps:$4 sm:$0xff]  }
 0x1ac   : > { %v1803_v44 = vmul.f32 0.7978846, %v1675_v25  ;;  %v1679_v63 = vadd.f32 %v1551_v26, %v5007_v56  ;;  %2903 = vmatprep.mubr.bf16.mxu0 %v2412_v27  ;;  %v2287_v45 = vmul.f32 %v2159_v29, %v4875_v6  ;;  %v5044_v61 = vadd.f32 %v959_v9, %v4863_v47  ;;  %v963_v50 = vpop.f32.mrb[23].mxu1  ;;  %v4013_v27 = vld [vmem:[#allocation7 + $0x124] ss:$8 sps:$4 sm:$0xff]  }
 0x1ad   : > { %v1804_v51 = vmul.f32 0.7978846, %v1676_v15  ;;  %v1680_v60 = vadd.f32 %v1552_v35, %v5013_v10  ;;  %v1299_v53 = vmul.f32 %v5039_v62, %v5039_v62  ;;  %v5050_v3 = vadd.f32 %v961_v39, %v4859_v46 }
 0x1ae   : > { %4085 = vtanh.f32 %v1803_v44  ;;  %v1807_v4 = vmul.f32 0.7978846, %v1679_v63  ;;  %v2411_v59 = vpack.c.bf16 %v2287_v45, %v2283_v38  ;;  %v1300_v6 = vmul.f32 %v5044_v61, %v5044_v61 }
 0x1af   : > { %4087 = vtanh.f32 %v1804_v51  ;;  %v1808_v12 = vmul.f32 0.7978846, %v1680_v60  ;;  %v1427_v54 = vmul.f32 %v1299_v53, %v5039_v62  ;;  %v1303_v18 = vmul.f32 %v5050_v3, %v5050_v3 }
 0x1b0   : > { %v5057_v55 = vpop.eup %4077  ;;  %4089 = vtanh.f32 %v1807_v4  ;;  %2904 = vmatmul.mubr.bf16.vlgmr.msra.gmra.mrb[0].mxu0 %v2411_v59  ;;  %v1428_v58 = vmul.f32 %v1300_v6, %v5044_v61  ;;  %v5061_v0 = vadd.f32 %v963_v50, %v4863_v47  ;;  %v2036_v1 = vadd.f32 1.0, %v4987_v24 }
 0x1b1   : > { %v5064_v17 = vpop.eup %4079  ;;  %4091 = vtanh.f32 %v1808_v12  ;;  %3065 = vmatpush1.bf16.msra.mxu0 %v4005_v2  ;;  %v1555_v21 = vmul.f32 0.044715, %v1427_v54  ;;  %v1431_v23 = vmul.f32 %v1303_v18, %v5050_v3  ;;  %v2040_v25 = vadd.f32 1.0, %v4996_v37  ;;  %v967_v26 = vpop.f32.mrb[24].mxu1  ;;  %v4011_v12 = vld [vmem:[#allocation7 + $0x120] ss:$8 sps:$4 sm:$0xff]  }
 0x1b2   : > { %v5068_v29 = vpop.eup %4081  ;;  %v1556_v9 = vmul.f32 0.044715, %v1428_v58  ;;  %v1304_v15 = vmul.f32 %v5061_v0, %v5061_v0  ;;  %v2164_v35 = vmul.f32 0.5, %v2036_v1  ;;  %v2035_v24 = vadd.f32 1.0, %v4984_v19  ;;  %3066 = vmatprep.subr.bf16.mxu0 %v4010_v11  ;;  %v969_v38 = vpop.f32.mrb[25].mxu1 }
 0x1b3   : > { %v5073_v39 = vpop.eup %4083  ;;  %v1683_v44 = vadd.f32 %v1555_v21, %v5039_v62  ;;  %v1559_v63 = vmul.f32 0.044715, %v1431_v23  ;;  %v2168_v45 = vmul.f32 0.5, %v2040_v25  ;;  %v2039_v37 = vadd.f32 1.0, %v4990_v28  ;;  %v971_v50 = vpop.f32.mrb[26].mxu1 }
 0x1b4   : > { %v1684_v51 = vadd.f32 %v1556_v9, %v5044_v61  ;;  %v1432_v60 = vmul.f32 %v1304_v15, %v5061_v0  ;;  %v2292_v2 = vmul.f32 %v2164_v35, %v4897_v33  ;;  %v2163_v53 = vmul.f32 0.5, %v2035_v24  ;;  %v973_v4 = vpop.f32.mrb[27].mxu1  ;;  %v4016_v1 = vld [vmem:[#allocation7 + $0x134] ss:$8 sps:$4 sm:$0xff]   ;;  %v4014_v35 = vld [vmem:[#allocation7 + $0x130] ss:$8 sps:$4 sm:$0xff]  }
 0x1b5   : > { %v1811_v19 = vmul.f32 0.7978846, %v1683_v44  ;;  %v1687_v59 = vadd.f32 %v1559_v63, %v5050_v3  ;;  %v2296_v6 = vmul.f32 %v2168_v45, %v4909_v48  ;;  %v2167_v11 = vmul.f32 0.5, %v2039_v37  ;;  %3067 = vmatpush1.bf16.msra.mxu0 %v4008_v20 }
 0x1b6   : > { %v1812_v54 = vmul.f32 0.7978846, %v1684_v51  ;;  %v1560_v18 = vmul.f32 0.044715, %v1432_v60  ;;  %v2291_v28 = vmul.f32 %v2163_v53, %v4894_v30  ;;  %v5084_v58 = vadd.f32 %v967_v26, %v4859_v46  ;;  %3068 = vmatprep.subr.bf16.mxu0 %v4013_v27 }
 0x1b7   : > { %4093 = vtanh.f32 %v1811_v19  ;;  %v1815_v33 = vmul.f32 0.7978846, %v1687_v59  ;;  %v2416_v21 = vpack.c.bf16 %v2296_v6, %v2292_v2  ;;  %v2295_v23 = vmul.f32 %v2167_v11, %v4904_v43 }
 0x1b8   : > { %v5087_v25 = vpop.eup %4085  ;;  %4095 = vtanh.f32 %v1812_v54  ;;  %v1688_v48 = vadd.f32 %v1560_v18, %v5061_v0  ;;  %v1307_v20 = vmul.f32 %v5084_v58, %v5084_v58  ;;  %v5093_v30 = vadd.f32 %v969_v38, %v4863_v47 }
 0x1b9   : > { %v5095_v26 = vpop.eup %4087  ;;  %4097 = vtanh.f32 %v1815_v33  ;;  %2913 = vmatprep.mubr.bf16.mxu0 %v2416_v21  ;;  %v2415_v27 = vpack.c.bf16 %v2295_v23, %v2291_v28  ;;  %v5098_v9 = vadd.f32 %v971_v50, %v4859_v46  ;;  %v5101_v43 = vadd.f32 %v973_v4, %v4863_v47  ;;  %3069 = vmatpush1.bf16.msra.mxu0 %v4011_v12  ;;  %v977_v15 = vpop.f32.mrb[28].mxu1  ;;  %v4019_v50 = vld [vmem:[#allocation7 + $0x144] ss:$8 sps:$4 sm:$0xff]   ;;  %v4022_v23 = vld [vmem:[#allocation7 + $0x154] ss:$8 sps:$4 sm:$0xff]  }
 0x1ba   : > { %v5103_v24 = vpop.eup %4089  ;;  %v1816_v44 = vmul.f32 0.7978846, %v1688_v48  ;;  %v1435_v38 = vmul.f32 %v1307_v20, %v5084_v58  ;;  %v1308_v63 = vmul.f32 %v5093_v30, %v5093_v30  ;;  %v2044_v45 = vadd.f32 1.0, %v5026_v14  ;;  %v979_v37 = vpop.f32.mrb[29].mxu1  ;;  %3070 = vmatprep.subr.bf16.mxu0 %v4016_v1  ;;  %v4017_v1 = vld [vmem:[#allocation7 + $0x140] ss:$8 sps:$4 sm:$0xff]  }
 0x1bb   : > { %v5109_v51 = vpop.eup %4091  ;;  %2914 = vmatmul.mubr.bf16.gmra.mrb[4].mxu0 %v2415_v27  ;;  %v1311_v60 = vmul.f32 %v5098_v9, %v5098_v9  ;;  %v1312_v2 = vmul.f32 %v5101_v43, %v5101_v43  ;;  %v2048_v53 = vadd.f32 1.0, %v5034_v32  ;;  %v2043_v4 = vadd.f32 1.0, %v5022_v52  ;;  %v981_v19 = vpop.f32.mrb[30].mxu1 }
 0x1bc   : > { %4099 = vtanh.f32 %v1816_v44  ;;  %v1563_v59 = vmul.f32 0.044715, %v1435_v38  ;;  %v1436_v14 = vmul.f32 %v1308_v63, %v5093_v30  ;;  %v2172_v6 = vmul.f32 0.5, %v2044_v45  ;;  %v983_v11 = vpop.f32.mrb[31].mxu1 }
 0x1bd   : > { %v1439_v12 = vmul.f32 %v1311_v60, %v5098_v9  ;;  %v1440_v54 = vmul.f32 %v1312_v2, %v5101_v43  ;;  %v2176_v18 = vmul.f32 0.5, %v2048_v53  ;;  %v2047_v28 = vadd.f32 1.0, %v5030_v8  ;;  %3071 = vmatpush1.bf16.msra.mxu0 %v4014_v35 }
 0x1be   : > { %v1691_v32 = vadd.f32 %v1563_v59, %v5084_v58  ;;  %v1564_v33 = vmul.f32 0.044715, %v1436_v14  ;;  %v2300_v52 = vmul.f32 %v2172_v6, %v4928_v40  ;;  %v2171_v21 = vmul.f32 0.5, %v2043_v4  ;;  %3072 = vmatprep.subr.bf16.mxu0 %v4019_v50  ;;  %v4025_v6 = vld [vmem:[#allocation7 + $0x164] ss:$8 sps:$4 sm:$0xff]  }
 0x1bf   : > { %v1567_v48 = vmul.f32 0.044715, %v1439_v12  ;;  %v1568_v20 = vmul.f32 0.044715, %v1440_v54  ;;  %v2304_v27 = vmul.f32 %v2176_v18, %v4940_v22  ;;  %v2175_v44 = vmul.f32 0.5, %v2047_v28 }
 0x1c0   : > { %v1819_v38 = vmul.f32 0.7978846, %v1691_v32  ;;  %v1692_v63 = vadd.f32 %v1564_v33, %v5093_v30  ;;  %v2299_v8 = vmul.f32 %v2171_v21, %v4924_v16  ;;  %v5127_v35 = vadd.f32 %v977_v15, %v4859_v46  ;;  %v4020_v22 = vld [vmem:[#allocation7 + $0x150] ss:$8 sps:$4 sm:$0xff]  }
 0x1c1   : > { %v5129_v45 = vpop.eup %4093  ;;  %v1695_v40 = vadd.f32 %v1567_v48, %v5098_v9  ;;  %v1696_v50 = vadd.f32 %v1568_v20, %v5101_v43  ;;  %v2420_v60 = vpack.c.bf16 %v2304_v27, %v2300_v52  ;;  %v2303_v2 = vmul.f32 %v2175_v44, %v4934_v7  ;;  %v987_v53 = vpop.f32.mrb[32].mxu1  ;;  %3073 = vmatpush1.bf16.msra.mxu0 %v4017_v1  ;;  %v4023_v44 = vld [vmem:[#allocation7 + $0x160] ss:$8 sps:$4 sm:$0xff]  }
 0x1c2   : > { %v5134_v4 = vpop.eup %4095  ;;  %4101 = vtanh.f32 %v1819_v38  ;;  %v1820_v59 = vmul.f32 0.7978846, %v1692_v63  ;;  %v1315_v16 = vmul.f32 %v5127_v35, %v5127_v35  ;;  %v5139_v15 = vadd.f32 %v979_v37, %v4863_v47  ;;  %v5141_v14 = vpop.f32.mrb[33].mxu1  ;;  %3074 = vmatprep.subr.bf16.mxu0 %v4022_v23 }
 0x1c3   : > { %v5143_v12 = vpop.eup %4097  ;;  %v1823_v7 = vmul.f32 0.7978846, %v1695_v40  ;;  %v1824_v54 = vmul.f32 0.7978846, %v1696_v50  ;;  %2923 = vmatprep.mubr.bf16.mxu0 %v2420_v60  ;;  %v2419_v18 = vpack.c.bf16 %v2303_v2, %v2299_v8  ;;  %v5146_v28 = vadd.f32 %v981_v19, %v4859_v46  ;;  %v991_v1 = vpop.f32.mrb[34].mxu1 }
 0x1c4   : > { %4103 = vtanh.f32 %v1820_v59  ;;  %v1443_v32 = vmul.f32 %v1315_v16, %v5127_v35  ;;  %v1316_v37 = vmul.f32 %v5139_v15, %v5139_v15  ;;  %v5152_v33 = vadd.f32 %v983_v11, %v4863_v47  ;;  %v993_v52 = vpop.f32.mrb[35].mxu1 }
 0x1c5   : > { %4105 = vtanh.f32 %v1823_v7  ;;  %2924 = vmatmul.mubr.bf16.gmra.mrb[8].mxu0 %v2419_v18  ;;  %v1319_v21 = vmul.f32 %v5146_v28, %v5146_v28  ;;  %v2052_v23 = vadd.f32 1.0, %v5064_v17  ;;  %v2056_v19 = vadd.f32 1.0, %v5073_v39  ;;  %v4028_v17 = vld [vmem:[#allocation7 + $0x174] ss:$8 sps:$4 sm:$0xff]   ;;  %v4026_v18 = vld [vmem:[#allocation7 + $0x170] ss:$8 sps:$4 sm:$0xff]  }
 0x1c6   : > { %v5158_v48 = vpop.eup %4099  ;;  %4107 = vtanh.f32 %v1824_v54  ;;  %v1571_v20 = vmul.f32 0.044715, %v1443_v32  ;;  %v1444_v27 = vmul.f32 %v1316_v37, %v5139_v15  ;;  %v1320_v11 = vmul.f32 %v5152_v33, %v5152_v33  ;;  %3075 = vmatpush1.bf16.msra.mxu0 %v4020_v22 }
 0x1c7   : > { %v1447_v38 = vmul.f32 %v1319_v21, %v5146_v28  ;;  %v2180_v63 = vmul.f32 0.5, %v2052_v23  ;;  %v2184_v8 = vmul.f32 0.5, %v2056_v19  ;;  %v2051_v40 = vadd.f32 1.0, %v5057_v55  ;;  %3076 = vmatprep.subr.bf16.mxu0 %v4025_v6 }
 0x1c8   : > { %v1699_v39 = vadd.f32 %v1571_v20, %v5127_v35  ;;  %v1572_v50 = vmul.f32 0.044715, %v1444_v27  ;;  %v1448_v60 = vmul.f32 %v1320_v11, %v5152_v33  ;;  %v2055_v2 = vadd.f32 1.0, %v5068_v29  ;;  %v4031_v20 = vld [vmem:[#allocation7 + $0x184] ss:$8 sps:$4 sm:$0xff]  }
 0x1c9   : > { %v1575_v59 = vmul.f32 0.044715, %v1447_v38  ;;  %v2308_v16 = vmul.f32 %v2180_v63, %v4960_v57  ;;  %v2312_v22 = vmul.f32 %v2184_v8, %v4974_v13  ;;  %v2179_v7 = vmul.f32 0.5, %v2051_v40  ;;  %v5170_v54 = vpop.f32.mrb[36].mxu1 }
 0x1ca   : > { %v1827_v32 = vmul.f32 0.7978846, %v1699_v39  ;;  %v1700_v55 = vadd.f32 %v1572_v50, %v5139_v15  ;;  %v1576_v6 = vmul.f32 0.044715, %v1448_v60  ;;  %v2183_v37 = vmul.f32 0.5, %v2055_v2  ;;  %v5173_v21 = vpop.f32.mrb[37].mxu1  ;;  %3077 = vmatpush1.bf16.msra.mxu0 %v4023_v44 }
 0x1cb   : > { %v1703_v23 = vadd.f32 %v1575_v59, %v5146_v28  ;;  %v2424_v29 = vpack.c.bf16 %v2312_v22, %v2308_v16  ;;  %v2307_v19 = vmul.f32 %v2179_v7, %v4956_v49  ;;  %v5178_v57 = vadd.f32 %v987_v53, %v4859_v46  ;;  %v5180_v13 = vpop.f32.mrb[38].mxu1  ;;  %3078 = vmatprep.subr.bf16.mxu0 %v4028_v17  ;;  %v4029_v60 = vld [vmem:[#allocation7 + $0x180] ss:$8 sps:$4 sm:$0xff]   ;;  %v4034_v16 = vld [vmem:[#allocation7 + $0x194] ss:$8 sps:$4 sm:$0xff]  }
 0x1cc   : > { %v5182_v27 = vpop.eup %4101  ;;  %4109 = vtanh.f32 %v1827_v32  ;;  %v1828_v11 = vmul.f32 0.7978846, %v1700_v55  ;;  %v1704_v38 = vadd.f32 %v1576_v6, %v5152_v33  ;;  %v2311_v44 = vmul.f32 %v2183_v37, %v4968_v5  ;;  %v5186_v63 = vpop.f32.mrb[39].mxu1 }
 0x1cd   : > { %v1831_v8 = vmul.f32 0.7978846, %v1703_v23  ;;  %2933 = vmatprep.mubr.bf16.mxu0 %v2424_v29  ;;  %v1323_v49 = vmul.f32 %v5178_v57, %v5178_v57  ;;  %v5192_v53 = vadd.f32 %v5141_v14, %v4863_v47  ;;  %v5195_v40 = vadd.f32 %v991_v1, %v4859_v46  ;;  %v4032_v29 = vld [vmem:[#allocation7 + $0x190] ss:$8 sps:$4 sm:$0xff]  }
 0x1ce   : > { %v5197_v17 = vpop.eup %4103  ;;  %4111 = vtanh.f32 %v1828_v11  ;;  %v1832_v39 = vmul.f32 0.7978846, %v1704_v38  ;;  %v2423_v50 = vpack.c.bf16 %v2311_v44, %v2307_v19  ;;  %v5200_v5 = vadd.f32 %v993_v52, %v4863_v47  ;;  %3079 = vmatpush1.bf16.msra.mxu0 %v4026_v18 }
 0x1cf   : > { %v5202_v2 = vpop.eup %4105  ;;  %4113 = vtanh.f32 %v1831_v8  ;;  %v1451_v59 = vmul.f32 %v1323_v49, %v5178_v57  ;;  %v1324_v14 = vmul.f32 %v5192_v53, %v5192_v53  ;;  %v1327_v1 = vmul.f32 %v5195_v40, %v5195_v40  ;;  %3080 = vmatprep.subr.bf16.mxu0 %v4031_v20 }
 0x1d0   : > { %v5209_v22 = vpop.eup %4107  ;;  %4115 = vtanh.f32 %v1832_v39  ;;  %2934 = vmatmul.mubr.bf16.gmra.mrb[12].mxu0 %v2423_v50  ;;  %v1328_v52 = vmul.f32 %v5200_v5, %v5200_v5  ;;  %v2060_v7 = vadd.f32 1.0, %v5095_v26  ;;  %v2064_v18 = vadd.f32 1.0, %v5109_v51  ;;  %v4037_v26 = vld [vmem:[#allocation7 + $0x1a4] ss:$8 sps:$4 sm:$0xff]  }
 0x1d1   : > { %v1579_v32 = vmul.f32 0.044715, %v1451_v59  ;;  %v1452_v55 = vmul.f32 %v1324_v14, %v5192_v53  ;;  %v1455_v6 = vmul.f32 %v1327_v1, %v5195_v40  ;;  %v2059_v37 = vadd.f32 1.0, %v5087_v25  ;;  %v5218_v23 = vpop.f32.mrb[40].mxu1 }
 0x1d2   : > { %v1456_v19 = vmul.f32 %v1328_v52, %v5200_v5  ;;  %v2188_v20 = vmul.f32 0.5, %v2060_v7  ;;  %v2192_v11 = vmul.f32 0.5, %v2064_v18  ;;  %v2063_v38 = vadd.f32 1.0, %v5103_v24  ;;  %v5222_v44 = vpop.f32.mrb[41].mxu1  ;;  %3081 = vmatpush1.bf16.msra.mxu0 %v4029_v60 }
 0x1d3   : > { %v1707_v51 = vadd.f32 %v1579_v32, %v5178_v57  ;;  %v1580_v8 = vmul.f32 0.044715, %v1452_v55  ;;  %v1583_v49 = vmul.f32 0.044715, %v1455_v6  ;;  %v2187_v39 = vmul.f32 0.5, %v2059_v37  ;;  %v5225_v50 = vpop.f32.mrb[42].mxu1  ;;  %3082 = vmatprep.subr.bf16.mxu0 %v4034_v16 }
 0x1d4   : > { %v1584_v25 = vmul.f32 0.044715, %v1456_v19  ;;  %v2316_v59 = vmul.f32 %v2188_v20, %v5000_v42  ;;  %v2320_v14 = vmul.f32 %v2192_v11, %v5013_v10  ;;  %v2191_v1 = vmul.f32 0.5, %v2063_v38  ;;  %v5229_v52 = vpop.f32.mrb[43].mxu1 }
 0x1d5   : > { %v1835_v24 = vmul.f32 0.7978846, %v1707_v51  ;;  %v1708_v60 = vadd.f32 %v1580_v8, %v5192_v53  ;;  %v1711_v7 = vadd.f32 %v1583_v49, %v5195_v40  ;;  %v2315_v18 = vmul.f32 %v2187_v39, %v4994_v31  ;;  %v4035_v31 = vld [vmem:[#allocation7 + $0x1a0] ss:$8 sps:$4 sm:$0xff]  }
 0x1d6   : > { %v5234_v32 = vpop.eup %4109  ;;  %v1712_v55 = vadd.f32 %v1584_v25, %v5200_v5  ;;  %v2428_v16 = vpack.c.bf16 %v2320_v14, %v2316_v59  ;;  %v2319_v6 = vmul.f32 %v2191_v1, %v5007_v56  ;;  %v5240_v42 = vadd.f32 %v5170_v54, %v4859_v46  ;;  %3083 = vmatpush1.bf16.msra.mxu0 %v4032_v29  ;;  %v4040_v29 = vld [vmem:[#allocation7 + $0x1b4] ss:$8 sps:$4 sm:$0xff]  }
 0x1d7   : > { %4117 = vtanh.f32 %v1835_v24  ;;  %v1836_v10 = vmul.f32 0.7978846, %v1708_v60  ;;  %v1839_v37 = vmul.f32 0.7978846, %v1711_v7  ;;  %v5244_v19 = vadd.f32 %v5173_v21, %v4863_v47  ;;  %3084 = vmatprep.subr.bf16.mxu0 %v4037_v26  ;;  %v4038_v60 = vld [vmem:[#allocation7 + $0x1b0] ss:$8 sps:$4 sm:$0xff]  }
 0x1d8   : > { %v5246_v20 = vpop.eup %4111  ;;  %v1840_v11 = vmul.f32 0.7978846, %v1712_v55  ;;  %2943 = vmatprep.mubr.bf16.mxu0 %v2428_v16  ;;  %v2427_v38 = vpack.c.bf16 %v2319_v6, %v2315_v18  ;;  %v1331_v56 = vmul.f32 %v5240_v42, %v5240_v42  ;;  %v5252_v54 = vadd.f32 %v5180_v13, %v4859_v46  ;;  %v4043_v7 = vld [vmem:[#allocation7 + $0x1c4] ss:$8 sps:$4 sm:$0xff]  }
 0x1d9   : > { %v5254_v51 = vpop.eup %4113  ;;  %4119 = vtanh.f32 %v1836_v10  ;;  %v1332_v21 = vmul.f32 %v5244_v19, %v5244_v19  ;;  %v5260_v26 = vadd.f32 %v5186_v63, %v4863_v47  ;;  %v2068_v8 = vadd.f32 1.0, %v5134_v4  ;;  %v5263_v49 = vpop.f32.mrb[44].mxu1 }
 0x1da   : > { %v5265_v39 = vpop.eup %4115  ;;  %4121 = vtanh.f32 %v1839_v37  ;;  %2944 = vmatmul.mubr.bf16.gmra.mrb[16].mxu0 %v2427_v38  ;;  %v1459_v13 = vmul.f32 %v1331_v56, %v5240_v42  ;;  %v1335_v25 = vmul.f32 %v5252_v54, %v5252_v54  ;;  %v2072_v59 = vadd.f32 1.0, %v5158_v48  ;;  %v5271_v14 = vpop.f32.mrb[45].mxu1 }
 0x1db   : > { %4123 = vtanh.f32 %v1840_v11  ;;  %v1460_v63 = vmul.f32 %v1332_v21, %v5244_v19  ;;  %v1336_v4 = vmul.f32 %v5260_v26, %v5260_v26  ;;  %v2196_v1 = vmul.f32 0.5, %v2068_v8  ;;  %v5276_v24 = vpop.f32.mrb[46].mxu1  ;;  %3085 = vmatpush1.bf16.msra.mxu0 %v4035_v31 }
 0x1dc   : > { %v1587_v18 = vmul.f32 0.044715, %v1459_v13  ;;  %v1463_v55 = vmul.f32 %v1335_v25, %v5252_v54  ;;  %v2200_v16 = vmul.f32 0.5, %v2072_v59  ;;  %v2067_v48 = vadd.f32 1.0, %v5129_v45  ;;  %v5280_v6 = vpop.f32.mrb[47].mxu1  ;;  %3086 = vmatprep.subr.bf16.mxu0 %v4040_v29 }
 0x1dd   : > { %v1588_v10 = vmul.f32 0.044715, %v1460_v63  ;;  %v1464_v37 = vmul.f32 %v1336_v4, %v5260_v26  ;;  %v2324_v11 = vmul.f32 %v2196_v1, %v5044_v61  ;;  %v2071_v38 = vadd.f32 1.0, %v5143_v12  ;;  %v4041_v59 = vld [vmem:[#allocation7 + $0x1c0] ss:$8 sps:$4 sm:$0xff]  }
 0x1de   : > { %v1715_v31 = vadd.f32 %v1587_v18, %v5240_v42  ;;  %v1591_v56 = vmul.f32 0.044715, %v1463_v55  ;;  %v2328_v21 = vmul.f32 %v2200_v16, %v5061_v0  ;;  %v2195_v8 = vmul.f32 0.5, %v2067_v48  ;;  %v4046_v1 = vld [vmem:[#allocation7 + $0x1d4] ss:$8 sps:$4 sm:$0xff]  }
 0x1df   : > { %v1716_v13 = vadd.f32 %v1588_v10, %v5244_v19  ;;  %v1592_v25 = vmul.f32 0.044715, %v1464_v37  ;;  %v2199_v45 = vmul.f32 0.5, %v2071_v38  ;;  %v5290_v29 = vadd.f32 %v5218_v23, %v4859_v46  ;;  %3087 = vmatpush1.bf16.msra.mxu0 %v4038_v60 }
 0x1e0   : > { %v1843_v63 = vmul.f32 0.7978846, %v1715_v31  ;;  %v1719_v61 = vadd.f32 %v1591_v56, %v5252_v54  ;;  %v2432_v12 = vpack.c.bf16 %v2328_v21, %v2324_v11  ;;  %v2323_v4 = vmul.f32 %v2195_v8, %v5039_v62  ;;  %3088 = vmatprep.subr.bf16.mxu0 %v4043_v7  ;;  %v4044_v56 = vld [vmem:[#allocation7 + $0x1d0] ss:$8 sps:$4 sm:$0xff]  }
 0x1e1   : > { %v5294_v0 = vpop.eup %4117  ;;  %v1844_v18 = vmul.f32 0.7978846, %v1716_v13  ;;  %v1720_v55 = vadd.f32 %v1592_v25, %v5260_v26  ;;  %v2327_v16 = vmul.f32 %v2199_v45, %v5050_v3  ;;  %v1339_v23 = vmul.f32 %v5290_v29, %v5290_v29  ;;  %v5300_v60 = vpop.f32.mrb[48].mxu1  ;;  %v4049_v25 = vld [vmem:[#allocation7 + $0x1e4] ss:$8 sps:$4 sm:$0xff]  }
 0x1e2   : > { %4125 = vtanh.f32 %v1843_v63  ;;  %v1847_v48 = vmul.f32 0.7978846, %v1719_v61  ;;  %2953 = vmatprep.mubr.bf16.mxu0 %v2432_v12  ;;  %v5304_v62 = vadd.f32 %v5222_v44, %v4863_v47  ;;  %v5308_v7 = vadd.f32 %v5225_v50, %v4859_v46  ;;  %v5310_v10 = vpop.f32.mrb[49].mxu1 }
 0x1e3   : > { %v5312_v37 = vpop.eup %4119  ;;  %4127 = vtanh.f32 %v1844_v18  ;;  %v1848_v3 = vmul.f32 0.7978846, %v1720_v55  ;;  %v2431_v11 = vpack.c.bf16 %v2327_v16, %v2323_v4  ;;  %v1467_v38 = vmul.f32 %v1339_v23, %v5290_v29  ;;  %v5315_v31 = vpop.f32.mrb[50].mxu1  ;;  %3089 = vmatpush1.bf16.msra.mxu0 %v4041_v59 }
 0x1e4   : > { %v5317_v21 = vpop.eup %4121  ;;  %4129 = vtanh.f32 %v1847_v48  ;;  %v1340_v44 = vmul.f32 %v5304_v62, %v5304_v62  ;;  %v1343_v50 = vmul.f32 %v5308_v7, %v5308_v7  ;;  %v5325_v8 = vadd.f32 %v5229_v52, %v4863_v47  ;;  %v5327_v13 = vpop.f32.mrb[51].mxu1  ;;  %3090 = vmatprep.subr.bf16.mxu0 %v4046_v1  ;;  %v4047_v1 = vld [vmem:[#allocation7 + $0x1e0] ss:$8 sps:$4 sm:$0xff]  }
 0x1e5   : > { %v5329_v45 = vpop.eup %4123  ;;  %4131 = vtanh.f32 %v1848_v3  ;;  %2954 = vmatmul.mubr.bf16.gmra.mrb[20].mxu0 %v2431_v11  ;;  %v1595_v59 = vmul.f32 0.044715, %v1467_v38  ;;  %v2076_v63 = vadd.f32 1.0, %v5197_v17  ;;  %v2080_v61 = vadd.f32 1.0, %v5209_v22  ;;  %v4052_v17 = vld [vmem:[#allocation7 + $0x1f4] ss:$8 sps:$4 sm:$0xff]  }
 0x1e6   : > { %v1468_v12 = vmul.f32 %v1340_v44, %v5304_v62  ;;  %v1471_v4 = vmul.f32 %v1343_v50, %v5308_v7  ;;  %v1344_v52 = vmul.f32 %v5325_v8, %v5325_v8  ;;  %v2075_v18 = vadd.f32 1.0, %v5182_v27 }
 0x1e7   : > { %v1723_v55 = vadd.f32 %v1595_v59, %v5290_v29  ;;  %v2204_v16 = vmul.f32 0.5, %v2076_v63  ;;  %v2208_v23 = vmul.f32 0.5, %v2080_v61  ;;  %v2079_v48 = vadd.f32 1.0, %v5202_v2  ;;  %3091 = vmatpush1.bf16.msra.mxu0 %v4044_v56 }
 0x1e8   : > { %v1596_v3 = vmul.f32 0.044715, %v1468_v12  ;;  %v1599_v22 = vmul.f32 0.044715, %v1471_v4  ;;  %v1472_v11 = vmul.f32 %v1344_v52, %v5325_v8  ;;  %v2203_v38 = vmul.f32 0.5, %v2075_v18  ;;  %3092 = vmatprep.subr.bf16.mxu0 %v4049_v25 }
 0x1e9   : > { %v1851_v44 = vmul.f32 0.7978846, %v1723_v55  ;;  %v2332_v50 = vmul.f32 %v2204_v16, %v5093_v30  ;;  %v2336_v27 = vmul.f32 %v2208_v23, %v5101_v43  ;;  %v2207_v41 = vmul.f32 0.5, %v2079_v48  ;;  %v5343_v36 = vpop.f32.mrb[52].mxu1  ;;  %v4050_v4 = vld [vmem:[#allocation7 + $0x1f0] ss:$8 sps:$4 sm:$0xff]  }
 0x1ea   : > { %v1724_v59 = vadd.f32 %v1596_v3, %v5304_v62  ;;  %v1727_v2 = vadd.f32 %v1599_v22, %v5308_v7  ;;  %v1600_v56 = vmul.f32 0.044715, %v1472_v11  ;;  %v2331_v63 = vmul.f32 %v2203_v38, %v5084_v58  ;;  %v5348_v61 = vpop.f32.mrb[53].mxu1 }
 0x1eb   : > { %4133 = vtanh.f32 %v1851_v44  ;;  %v2436_v12 = vpack.c.bf16 %v2336_v27, %v2332_v50  ;;  %v2335_v25 = vmul.f32 %v2207_v41, %v5098_v9  ;;  %v5353_v30 = vadd.f32 %v5263_v49, %v4859_v46  ;;  %v5355_v43 = vpop.f32.mrb[54].mxu1  ;;  %3093 = vmatpush1.bf16.msra.mxu0 %v4047_v1 }
 0x1ec   : > { %v5357_v52 = vpop.eup %4125  ;;  %v1852_v18 = vmul.f32 0.7978846, %v1724_v59  ;;  %v1855_v55 = vmul.f32 0.7978846, %v1727_v2  ;;  %v1728_v58 = vadd.f32 %v1600_v56, %v5325_v8  ;;  %v5362_v16 = vadd.f32 %v5271_v14, %v4863_v47  ;;  %v5364_v23 = vpop.f32.mrb[55].mxu1  ;;  %3094 = vmatprep.subr.bf16.mxu0 %v4052_v17 }
 0x1ed   : > { %v5366_v41 = vpop.eup %4127  ;;  %2963 = vmatprep.mubr.bf16.mxu0 %v2436_v12  ;;  %v2435_v9 = vpack.c.bf16 %v2335_v25, %v2331_v63  ;;  %v1347_v49 = vmul.f32 %v5353_v30, %v5353_v30  ;;  %v5372_v1 = vadd.f32 %v5276_v24, %v4859_v46  ;;  %v5376_v48 = vadd.f32 %v5280_v6, %v4863_v47 }
 0x1ee   : > { %v5378_v14 = vpop.eup %4129  ;;  %4135 = vtanh.f32 %v1852_v18  ;;  %v1856_v3 = vmul.f32 0.7978846, %v1728_v58  ;;  %v1348_v17 = vmul.f32 %v5362_v16, %v5362_v16  ;;  %v2084_v22 = vadd.f32 1.0, %v5246_v20 }
 0x1ef   : > { %v5383_v11 = vpop.eup %4131  ;;  %4137 = vtanh.f32 %v1855_v55  ;;  %2964 = vmatmul.mubr.bf16.gmra.mrb[24].mxu0 %v2435_v9  ;;  %v1475_v24 = vmul.f32 %v1347_v49, %v5353_v30  ;;  %v1351_v38 = vmul.f32 %v5372_v1, %v5372_v1  ;;  %v1352_v6 = vmul.f32 %v5376_v48, %v5376_v48 }
 0x1f0   : > { %4139 = vtanh.f32 %v1856_v3  ;;  %v1476_v44 = vmul.f32 %v1348_v17, %v5362_v16  ;;  %v2088_v50 = vadd.f32 1.0, %v5265_v39  ;;  %v2212_v27 = vmul.f32 0.5, %v2084_v22  ;;  %3095 = vmatpush1.bf16.msra.mxu0 %v4050_v4 }
 0x1f1   : > { %v1603_v20 = vmul.f32 0.044715, %v1475_v24  ;;  %v1479_v59 = vmul.f32 %v1351_v38, %v5372_v1  ;;  %v1480_v2 = vmul.f32 %v1352_v6, %v5376_v48  ;;  %v2083_v56 = vadd.f32 1.0, %v5234_v32  ;;  %v5395_v63 = vpop.f32.mrb[56].mxu1 }
 0x1f2   : > { %v1604_v12 = vmul.f32 0.044715, %v1476_v44  ;;  %v2216_v25 = vmul.f32 0.5, %v2088_v50  ;;  %v2340_v18 = vmul.f32 %v2212_v27, %v5139_v15  ;;  %v2087_v55 = vadd.f32 1.0, %v5254_v51  ;;  %v5399_v58 = vpop.f32.mrb[57].mxu1 }
 0x1f3   : > { %v1731_v39 = vadd.f32 %v1603_v20, %v5353_v30  ;;  %v1607_v4 = vmul.f32 0.044715, %v1479_v59  ;;  %v1608_v9 = vmul.f32 0.044715, %v1480_v2  ;;  %v2211_v49 = vmul.f32 0.5, %v2083_v56  ;;  %v5402_v3 = vpop.f32.mrb[58].mxu1 }
 0x1f4   : > { %v1732_v17 = vadd.f32 %v1604_v12, %v5362_v16  ;;  %v2344_v32 = vmul.f32 %v2216_v25, %v5152_v33  ;;  %v2215_v22 = vmul.f32 0.5, %v2087_v55  ;;  %v5408_v24 = vadd.f32 %v5300_v60, %v4859_v46  ;;  %v5410_v15 = vpop.f32.mrb[59].mxu1 }
 0x1f5   : > { %v5412_v51 = vpop.eup %4133  ;;  %v1859_v38 = vmul.f32 0.7978846, %v1731_v39  ;;  %v1735_v6 = vadd.f32 %v1607_v4, %v5372_v1  ;;  %v1736_v44 = vadd.f32 %v1608_v9, %v5376_v48  ;;  %v2339_v50 = vmul.f32 %v2211_v49, %v5127_v35 }
 0x1f6   : > { %v1860_v27 = vmul.f32 0.7978846, %v1732_v17  ;;  %v2440_v20 = vpack.c.bf16 %v2344_v32, %v2340_v18  ;;  %v2343_v33 = vmul.f32 %v2215_v22, %v5146_v28  ;;  %v1355_v59 = vmul.f32 %v5408_v24, %v5408_v24 }
 0x1f7   : > { %4141 = vtanh.f32 %v1859_v38  ;;  %v1863_v60 = vmul.f32 0.7978846, %v1735_v6  ;;  %v1864_v2 = vmul.f32 0.7978846, %v1736_v44  ;;  %v5422_v56 = vadd.f32 %v5310_v10, %v4863_v47 }
 0x1f8   : > { %v5424_v12 = vpop.eup %4135  ;;  %4143 = vtanh.f32 %v1860_v27  ;;  %2973 = vmatprep.mubr.bf16.mxu0 %v2440_v20  ;;  %v2439_v25 = vpack.c.bf16 %v2343_v33, %v2339_v50  ;;  %v1483_v35 = vmul.f32 %v1355_v59, %v5408_v24  ;;  %v5429_v28 = vadd.f32 %v5315_v31, %v4859_v46 }
 0x1f9   : > { %v5431_v18 = vpop.eup %4137  ;;  %4145 = vtanh.f32 %v1863_v60  ;;  %v1356_v55 = vmul.f32 %v5422_v56, %v5422_v56  ;;  %v5437_v10 = vadd.f32 %v5327_v13, %v4863_v47  ;;  %v2092_v39 = vadd.f32 1.0, %v5312_v37  ;;  %v5440_v4 = vpop.f32.mrb[60].mxu1 }
 0x1fa   : > { %6759 = vst [vmem:[#allocation13_spill] sm:$0xff] %v5429_v28  ;;  %v5442_v9 = vpop.eup %4139  ;;  %4147 = vtanh.f32 %v1864_v2  ;;  %2974 = vmatmul.mubr.bf16.gmra.mrb[28].mxu0 %v2439_v25  ;;  %v1611_v31 = vmul.f32 0.044715, %v1483_v35  ;;  %v1359_v49 = vmul.f32 %v5429_v28, %v5429_v28  ;;  %v2096_v17 = vadd.f32 1.0, %v5329_v45  ;;  %v5447_v32 = vpop.f32.mrb[61].mxu1 }
 0x1fb   : > { %v1484_v22 = vmul.f32 %v1356_v55, %v5422_v56  ;;  %v1360_v13 = vmul.f32 %v5437_v10, %v5437_v10  ;;  %v2220_v37 = vmul.f32 0.5, %v2092_v39  ;;  %v2091_v38 = vadd.f32 1.0, %v5294_v0  ;;  %v5453_v6 = vpop.f32.mrb[62].mxu1 }
 0x1fc   : > { %v1739_v44 = vadd.f32 %v1611_v31, %v5408_v24  ;;  %v1487_v50 = vmul.f32 %v1359_v49, %v5429_v28  ;;  %v2224_v27 = vmul.f32 0.5, %v2096_v17  ;;  %v2095_v20 = vadd.f32 1.0, %v5317_v21  ;;  %v5458_v45 = vpop.f32.mrb[63].mxu1 }
 0x1fd   : > { %v1612_v33 = vmul.f32 0.044715, %v1484_v22  ;;  %v1488_v59 = vmul.f32 %v1360_v13, %v5437_v10  ;;  %v2348_v60 = vmul.f32 %v2220_v37, %v5192_v53  ;;  %v2219_v2 = vmul.f32 0.5, %v2091_v38 }
 0x1fe   : > { %v1867_v25 = vmul.f32 0.7978846, %v1739_v44  ;;  %v1615_v35 = vmul.f32 0.044715, %v1487_v50  ;;  %v2352_v0 = vmul.f32 %v2224_v27, %v5200_v5  ;;  %v2223_v55 = vmul.f32 0.5, %v2095_v20 }
 0x1ff   : > { %v1740_v39 = vadd.f32 %v1612_v33, %v5422_v56  ;;  %v1616_v31 = vmul.f32 0.044715, %v1488_v59  ;;  %v2347_v49 = vmul.f32 %v2219_v2, %v5178_v57  ;;  %v5467_v21 = vadd.f32 %v5343_v36, %v4859_v46 }
 0x200   : > { %4149 = vtanh.f32 %v1867_v25  ;;  %v1743_v17 = vadd.f32 %v1615_v35, %v5429_v28  ;;  %v2444_v22 = vpack.c.bf16 %v2352_v0, %v2348_v60  ;;  %v2351_v53 = vmul.f32 %v2223_v55, %v5195_v40 }
 0x201   : > { %v5471_v13 = vpop.eup %4141  ;;  %v1868_v37 = vmul.f32 0.7978846, %v1740_v39  ;;  %v1744_v5 = vadd.f32 %v1616_v31, %v5437_v10  ;;  %v1363_v38 = vmul.f32 %v5467_v21, %v5467_v21  ;;  %v5478_v57 = vadd.f32 %v5348_v61, %v4863_v47  ;;  %v5480_v36 = vpop.f32.mrb[64].mxu1 }
 0x202   : > { %v5482_v44 = vpop.eup %4143  ;;  %v1871_v50 = vmul.f32 0.7978846, %v1743_v17  ;;  %2983 = vmatprep.mubr.bf16.mxu0 %v2444_v22  ;;  %v2443_v27 = vpack.c.bf16 %v2351_v53, %v2347_v49  ;;  %v5486_v40 = vadd.f32 %v5355_v43, %v4859_v46  ;;  %v5490_v20 = vadd.f32 %v5364_v23, %v4863_v47  ;;  %v5492_v33 = vpop.f32.mrb[65].mxu1 }
 0x203   : > { %v5494_v59 = vpop.eup %4145  ;;  %4151 = vtanh.f32 %v1868_v37  ;;  %v1872_v61 = vmul.f32 0.7978846, %v1744_v5  ;;  %v1491_v60 = vmul.f32 %v1363_v38, %v5467_v21  ;;  %v1364_v2 = vmul.f32 %v5478_v57, %v5478_v57  ;;  %v5499_v25 = vpop.f32.mrb[66].mxu1 }
 0x204   : > { %v5501_v35 = vpop.eup %4147  ;;  %4153 = vtanh.f32 %v1871_v50  ;;  %2984 = vmatmul.mubr.bf16.gmra.mrb[32].mxu0 %v2443_v27  ;;  %v1367_v43 = vmul.f32 %v5486_v40, %v5486_v40  ;;  %v1368_v23 = vmul.f32 %v5490_v20, %v5490_v20  ;;  %v2100_v0 = vadd.f32 1.0, %v5366_v41  ;;  %v5508_v55 = vpop.f32.mrb[67].mxu1 }
 0x205   : > { %4155 = vtanh.f32 %v1872_v61  ;;  %v1619_v39 = vmul.f32 0.044715, %v1491_v60  ;;  %v1492_v31 = vmul.f32 %v1364_v2, %v5478_v57  ;;  %v2104_v49 = vadd.f32 1.0, %v5383_v11 }
 0x206   : > { %v1495_v17 = vmul.f32 %v1367_v43, %v5486_v40  ;;  %v1496_v22 = vmul.f32 %v1368_v23, %v5490_v20  ;;  %v2228_v53 = vmul.f32 0.5, %v2100_v0  ;;  %v2099_v37 = vadd.f32 1.0, %v5357_v52 }
 0x207   : > { %v1747_v5 = vadd.f32 %v1619_v39, %v5467_v21  ;;  %v1620_v38 = vmul.f32 0.044715, %v1492_v31  ;;  %v2232_v50 = vmul.f32 0.5, %v2104_v49  ;;  %v2103_v41 = vadd.f32 1.0, %v5378_v14 }
 0x208   : > { %v1623_v27 = vmul.f32 0.044715, %v1495_v17  ;;  %v1624_v61 = vmul.f32 0.044715, %v1496_v22  ;;  %v2356_v60 = vmul.f32 %v2228_v53, %v5244_v19  ;;  %v2227_v2 = vmul.f32 0.5, %v2099_v37 }
 0x209   : > { %v1875_v28 = vmul.f32 0.7978846, %v1747_v5  ;;  %v1748_v11 = vadd.f32 %v1620_v38, %v5478_v57  ;;  %v2360_v43 = vmul.f32 %v2232_v50, %v5260_v26  ;;  %v2231_v23 = vmul.f32 0.5, %v2103_v41  ;;  %v5520_v0 = vpop.f32.mrb[68].mxu1 }
 0x20a   : > { %v5522_v52 = vpop.eup %4149  ;;  %v1751_v39 = vadd.f32 %v1623_v27, %v5486_v40  ;;  %v1752_v31 = vadd.f32 %v1624_v61, %v5490_v20  ;;  %v2355_v14 = vmul.f32 %v2227_v2, %v5240_v42  ;;  %v5529_v19 = vadd.f32 %v5395_v63, %v4859_v46  ;;  %v5531_v49 = vpop.f32.mrb[69].mxu1 }
 0x20b   : > { %4157 = vtanh.f32 %v1875_v28  ;;  %v1876_v17 = vmul.f32 0.7978846, %v1748_v11  ;;  %v2448_v26 = vpack.c.bf16 %v2360_v43, %v2356_v60  ;;  %v2359_v22 = vmul.f32 %v2231_v23, %v5252_v54  ;;  %v5534_v53 = vpop.f32.mrb[70].mxu1 }
 0x20c   : > { %v1879_v37 = vmul.f32 0.7978846, %v1751_v39  ;;  %v1880_v5 = vmul.f32 0.7978846, %v1752_v31  ;;  %v1371_v38 = vmul.f32 %v5529_v19, %v5529_v19  ;;  %v5540_v42 = vadd.f32 %v5399_v58, %v4863_v47  ;;  %v5542_v63 = vpop.f32.mrb[71].mxu1 }
 0x20d   : > { %v5544_v50 = vpop.eup %4151  ;;  %4159 = vtanh.f32 %v1876_v17  ;;  %2993 = vmatprep.mubr.bf16.mxu0 %v2448_v26  ;;  %v2447_v28 = vpack.c.bf16 %v2359_v22, %v2355_v14  ;;  %v5548_v54 = vadd.f32 %v5402_v3, %v4859_v46  ;;  %v5552_v41 = vadd.f32 %v5410_v15, %v4863_v47 }
 0x20e   : > { %v5554_v27 = vpop.eup %4153  ;;  %4161 = vtanh.f32 %v1879_v37  ;;  %v1499_v58 = vmul.f32 %v1371_v38, %v5529_v19  ;;  %v1372_v61 = vmul.f32 %v5540_v42, %v5540_v42  ;;  %v2108_v60 = vadd.f32 1.0, %v5424_v12 }
 0x20f   : > { %v5560_v2 = vpop.eup %4155  ;;  %4163 = vtanh.f32 %v1880_v5  ;;  %2994 = vmatmul.mubr.bf16.gmra.mrb[36].mxu0 %v2447_v28  ;;  %v1375_v3 = vmul.f32 %v5548_v54, %v5548_v54  ;;  %v1376_v15 = vmul.f32 %v5552_v41, %v5552_v41  ;;  %v2112_v11 = vadd.f32 1.0, %v5442_v9 }
 0x210   : > { %v1627_v43 = vmul.f32 0.044715, %v1499_v58  ;;  %v1500_v23 = vmul.f32 %v1372_v61, %v5540_v42  ;;  %v2236_v39 = vmul.f32 0.5, %v2108_v60  ;;  %v2107_v31 = vadd.f32 1.0, %v5412_v51 }
 0x211   : > { %v1503_v12 = vmul.f32 %v1375_v3, %v5548_v54  ;;  %v1504_v14 = vmul.f32 %v1376_v15, %v5552_v41  ;;  %v2240_v17 = vmul.f32 0.5, %v2112_v11  ;;  %v2111_v26 = vadd.f32 1.0, %v5431_v18  ;;  %v5572_v22 = vpop.f32.mrb[72].mxu1 }
 0x212   : > { %v1755_v37 = vadd.f32 %v1627_v43, %v5529_v19  ;;  %v1628_v5 = vmul.f32 0.044715, %v1500_v23  ;;  %v2364_v9 = vmul.f32 %v2236_v39, %v5304_v62  ;;  %v2235_v38 = vmul.f32 0.5, %v2107_v31  ;;  %v5576_v28 = vpop.f32.mrb[73].mxu1 }
 0x213   : > { %v1631_v58 = vmul.f32 0.044715, %v1503_v12  ;;  %v1632_v61 = vmul.f32 0.044715, %v1504_v14  ;;  %v2368_v51 = vmul.f32 %v2240_v17, %v5325_v8  ;;  %v2239_v60 = vmul.f32 0.5, %v2111_v26  ;;  %v5579_v3 = vpop.f32.mrb[74].mxu1 }
 0x214   : > { %v1883_v15 = vmul.f32 0.7978846, %v1755_v37  ;;  %v1756_v18 = vadd.f32 %v1628_v5, %v5540_v42  ;;  %v2363_v11 = vmul.f32 %v2235_v38, %v5290_v29  ;;  %v5585_v43 = vadd.f32 %v5440_v4, %v4859_v46  ;;  %v5587_v62 = vpop.f32.mrb[75].mxu1 }
 0x215   : > { %v5589_v23 = vpop.eup %4157  ;;  %v1759_v39 = vadd.f32 %v1631_v58, %v5548_v54  ;;  %v1760_v8 = vadd.f32 %v1632_v61, %v5552_v41  ;;  %v2452_v31 = vpack.c.bf16 %v2368_v51, %v2364_v9  ;;  %v2367_v12 = vmul.f32 %v2239_v60, %v5308_v7 }
 0x216   : > { %6760 = vst [vmem:[#allocation14_spill] sm:$0xff] %v5585_v43  ;;  %4165 = vtanh.f32 %v1883_v15  ;;  %v1884_v14 = vmul.f32 0.7978846, %v1756_v18  ;;  %v1379_v29 = vmul.f32 %v5585_v43, %v5585_v43  ;;  %v5598_v4 = vadd.f32 %v5447_v32, %v4863_v47 }
 0x217   : > { %v5600_v17 = vpop.eup %4159  ;;  %v1887_v26 = vmul.f32 0.7978846, %v1759_v39  ;;  %v1888_v37 = vmul.f32 0.7978846, %v1760_v8  ;;  %3003 = vmatprep.mubr.bf16.mxu0 %v2452_v31  ;;  %v2451_v5 = vpack.c.bf16 %v2367_v12, %v2363_v11  ;;  %v5604_v9 = vadd.f32 %v5453_v6, %v4859_v46 }
 0x218   : > { %v5606_v7 = vpop.eup %4161  ;;  %4167 = vtanh.f32 %v1884_v14  ;;  %v1507_v38 = vmul.f32 %v1379_v29, %v5585_v43  ;;  %v1380_v58 = vmul.f32 %v5598_v4, %v5598_v4  ;;  %v5613_v32 = vadd.f32 %v5458_v45, %v4863_v47 }
 0x219   : > { %v5615_v61 = vpop.eup %4163  ;;  %4169 = vtanh.f32 %v1887_v26  ;;  %3004 = vmatmul.mubr.bf16.gmra.mrb[40].mxu0 %v2451_v5  ;;  %v1383_v46 = vmul.f32 %v5604_v9, %v5604_v9  ;;  %v2116_v6 = vadd.f32 1.0, %v5482_v44  ;;  %v2120_v51 = vadd.f32 1.0, %v5501_v35  ;;  %v5621_v60 = vpop.f32.mrb[76].mxu1 }
 0x21a   : > { %4171 = vtanh.f32 %v1888_v37  ;;  %v1635_v15 = vmul.f32 0.044715, %v1507_v38  ;;  %v1508_v18 = vmul.f32 %v1380_v58, %v5598_v4  ;;  %v1384_v47 = vmul.f32 %v5613_v32, %v5613_v32  ;;  %v5626_v45 = vpop.f32.mrb[77].mxu1 }
 0x21b   : > { %v1511_v11 = vmul.f32 %v1383_v46, %v5604_v9  ;;  %v2244_v39 = vmul.f32 0.5, %v2116_v6  ;;  %v2248_v8 = vmul.f32 0.5, %v2120_v51  ;;  %v2115_v31 = vadd.f32 1.0, %v5471_v13  ;;  %v5630_v44 = vpop.f32.mrb[78].mxu1 }
 0x21c   : > { %v1763_v35 = vadd.f32 %v1635_v15, %v5585_v43  ;;  %v1636_v12 = vmul.f32 0.044715, %v1508_v18  ;;  %v1512_v14 = vmul.f32 %v1384_v47, %v5613_v32  ;;  %v2119_v29 = vadd.f32 1.0, %v5494_v59  ;;  %v5635_v26 = vpop.f32.mrb[79].mxu1 }
 0x21d   : > { %v1639_v37 = vmul.f32 0.044715, %v1511_v11  ;;  %v2372_v5 = vmul.f32 %v2244_v39, %v5362_v16  ;;  %v2376_v38 = vmul.f32 %v2248_v8, %v5376_v48  ;;  %v2243_v58 = vmul.f32 0.5, %v2115_v31  ;;  %v4309_v8 = vld [vmem:[%s6733_s2] sm:$0xf] }
 0x21e   : > { %v1891_v46 = vmul.f32 0.7978846, %v1763_v35  ;;  %v1764_v13 = vadd.f32 %v1636_v12, %v5598_v4  ;;  %v1640_v6 = vmul.f32 0.044715, %v1512_v14  ;;  %v2247_v51 = vmul.f32 0.5, %v2119_v29 }
 0x21f   : > { %v1767_v15 = vadd.f32 %v1639_v37, %v5604_v9  ;;  %v2456_v18 = vpack.c.bf16 %v2376_v38, %v2372_v5  ;;  %v2371_v47 = vmul.f32 %v2243_v58, %v5353_v30  ;;  %v383_v59 = vsub.s32 2, %v4848_v34 }
 0x220   : > { %v5643_v43 = vpop.eup %4165  ;;  %4173 = vtanh.f32 %v1891_v46  ;;  %v1892_v11 = vmul.f32 0.7978846, %v1764_v13  ;;  %v1768_v16 = vadd.f32 %v1640_v6, %v5613_v32  ;;  %v2375_v48 = vmul.f32 %v2247_v51, %v5372_v1 }
 0x221   : > { %v1895_v39 = vmul.f32 0.7978846, %v1767_v15  ;;  %3013 = vmatprep.mubr.bf16.mxu0 %v2456_v18  ;;  %v5650_v31 = vrot.slane %v4309_v8, %v383_v59  ;;  %v387_v30 = vsub.s32 3, %v4848_v34  ;;  %v2124_v35 = vadd.f32 1.0, %v5544_v50  ;;  %v5654_v12 = vpop.f32.mrb[80].mxu1 }
 0x222   : > { %v5656_v14 = vpop.eup %4167  ;;  %4175 = vtanh.f32 %v1892_v11  ;;  %v1896_v29 = vmul.f32 0.7978846, %v1768_v16  ;;  %v2455_v37 = vpack.c.bf16 %v2375_v48, %v2371_v47  ;;  %v2128_v1 = vadd.f32 1.0, %v5560_v2  ;;  %v5659_v5 = vpop.f32.mrb[81].mxu1 }
 0x223   : > { %v5661_v38 = vpop.eup %4169  ;;  %4177 = vtanh.f32 %v1895_v39  ;;  %v5665_v58 = vadd.f32 %v5480_v36, %v5650_v31  ;;  %v5667_v46 = vrot.slane %v4309_v8, %v387_v30  ;;  %v5671_v50 = vadd.f32 %v5499_v25, %v5650_v31  ;;  %v5673_v13 = vpop.f32.mrb[82].mxu1 }
 0x224   : > { %v5675_v6 = vpop.eup %4171  ;;  %4179 = vtanh.f32 %v1896_v29  ;;  %3014 = vmatmul.mubr.bf16.gmra.mrb[44].mxu0 %v2455_v37  ;;  %v2252_v2 = vmul.f32 0.5, %v2124_v35  ;;  %v2256_v51 = vmul.f32 0.5, %v2128_v1  ;;  %v2123_v15 = vadd.f32 1.0, %v5522_v52  ;;  %v5678_v18 = vpop.f32.mrb[83].mxu1 }
 0x225   : > { %v1261_v36 = vmul.f32 %v5665_v58, %v5665_v58  ;;  %v5684_v47 = vadd.f32 %v5492_v33, %v5667_v46  ;;  %v1265_v25 = vmul.f32 %v5671_v50, %v5671_v50  ;;  %v5690_v59 = vadd.f32 %v5508_v55, %v5667_v46 }
 0x226   : > { %v2380_v11 = vmul.f32 %v2252_v2, %v5422_v56  ;;  %v2384_v52 = vmul.f32 %v2256_v51, %v5437_v10  ;;  %v2127_v16 = vadd.f32 1.0, %v5554_v27  ;;  %v2251_v48 = vmul.f32 0.5, %v2123_v15  ;;  %v6762_v15 = vld [vmem:[#allocation13_spill] sm:$0xff] }
 0x227   : > { %6761 = vst [vmem:[#allocation15_spill] sm:$0xff] %v5690_v59  ;;  %v1389_v39 = vmul.f32 %v1261_v36, %v5665_v58  ;;  %v1262_v33 = vmul.f32 %v5684_v47, %v5684_v47  ;;  %v1393_v8 = vmul.f32 %v1265_v25, %v5671_v50  ;;  %v1266_v30 = vmul.f32 %v5690_v59, %v5690_v59 }
 0x228   : > { %v2460_v35 = vpack.c.bf16 %v2384_v52, %v2380_v11  ;;  %v2255_v55 = vmul.f32 0.5, %v2127_v16  ;;  %v2379_v29 = vmul.f32 %v2251_v48, %v5408_v24  ;;  %v5704_v56 = vadd.f32 %v5520_v0, %v5650_v31 }
 0x229   : > { %v1517_v10 = vmul.f32 0.044715, %v1389_v39  ;;  %v1390_v27 = vmul.f32 %v1262_v33, %v5684_v47  ;;  %v1521_v37 = vmul.f32 0.044715, %v1393_v8  ;;  %v1394_v1 = vmul.f32 %v1266_v30, %v5690_v59  ;;  %v5708_v2 = vpop.f32.mrb[84].mxu1 }
 0x22a   : > { %v5710_v51 = vpop.eup %4173  ;;  %3023 = vmatprep.mubr.bf16.mxu0 %v2460_v35  ;;  %v2383_v36 = vmul.f32 %v2255_v55, %v6762_v15  ;;  %v1269_v24 = vmul.f32 %v5704_v56, %v5704_v56  ;;  %v5717_v0 = vadd.f32 %v5531_v49, %v5667_v46  ;;  %v5721_v25 = vadd.f32 %v5534_v53, %v5650_v31  ;;  %v5723_v11 = vpop.f32.mrb[85].mxu1 }
 0x22b   : > { %v1645_v52 = vadd.f32 %v1517_v10, %v5665_v58  ;;  %v1518_v16 = vmul.f32 0.044715, %v1390_v27  ;;  %v1649_v48 = vadd.f32 %v1521_v37, %v5671_v50  ;;  %v1522_v39 = vmul.f32 0.044715, %v1394_v1  ;;  %v5727_v33 = vpop.f32.mrb[86].mxu1 }
 0x22c   : > { %6763 = vst [vmem:[#allocation13_spill] sm:$0xff] %v5727_v33  ;;  %v5729_v8 = vpop.eup %4175  ;;  %v2459_v30 = vpack.c.bf16 %v2383_v36, %v2379_v29  ;;  %v1397_v49 = vmul.f32 %v1269_v24, %v5704_v56  ;;  %v1270_v35 = vmul.f32 %v5717_v0, %v5717_v0  ;;  %v1273_v53 = vmul.f32 %v5721_v25, %v5721_v25  ;;  %v5736_v55 = vpop.f32.mrb[87].mxu1 }
 0x22d   : > { %6764 = vst [vmem:[#allocation16_spill] sm:$0xff] %v5736_v55  ;;  %v5738_v10 = vpop.eup %4177  ;;  %v1773_v27 = vmul.f32 0.7978846, %v1645_v52  ;;  %v1646_v37 = vadd.f32 %v1518_v16, %v5684_v47  ;;  %v1777_v1 = vmul.f32 0.7978846, %v1649_v48  ;;  %v1650_v15 = vadd.f32 %v1522_v39, %v5690_v59 }
 0x22e   : > { %v5742_v34 = vpop.eup %4179  ;;  %3024 = vmatmul.mubr.bf16.gmra.mrb[48].mxu0 %v2459_v30  ;;  %v1525_v29 = vmul.f32 0.044715, %v1397_v49  ;;  %v1398_v36 = vmul.f32 %v1270_v35, %v5717_v0  ;;  %v1401_v24 = vmul.f32 %v1273_v53, %v5721_v25  ;;  %v5748_v33 = vadd.f32 %v5542_v63, %v5667_v46 }
 0x22f   : > { %4181 = vtanh.f32 %v1773_v27  ;;  %v1774_v55 = vmul.f32 0.7978846, %v1646_v37  ;;  %v1778_v52 = vmul.f32 0.7978846, %v1650_v15  ;;  %v2132_v16 = vadd.f32 1.0, %v5600_v17 }
 0x230   : > { %4183 = vtanh.f32 %v1777_v1  ;;  %v1653_v48 = vadd.f32 %v1525_v29, %v5704_v56  ;;  %v1526_v39 = vmul.f32 0.044715, %v1398_v36  ;;  %v1529_v59 = vmul.f32 0.044715, %v1401_v24 }
 0x231   : > { %4185 = vtanh.f32 %v1774_v55  ;;  %v1274_v30 = vmul.f32 %v5748_v33, %v5748_v33  ;;  %v2136_v49 = vadd.f32 1.0, %v5615_v61  ;;  %v2260_v35 = vmul.f32 0.5, %v2132_v16  ;;  %v5755_v53 = vpop.f32.mrb[88].mxu1 }
 0x232   : > { %4187 = vtanh.f32 %v1778_v52  ;;  %v1781_v63 = vmul.f32 0.7978846, %v1653_v48  ;;  %v1654_v27 = vadd.f32 %v1526_v39, %v5717_v0  ;;  %v1657_v17 = vadd.f32 %v1529_v59, %v5721_v25  ;;  %v5759_v37 = vpop.f32.mrb[89].mxu1 }
 0x233   : > { %v1402_v1 = vmul.f32 %v1274_v30, %v5748_v33  ;;  %v2264_v15 = vmul.f32 0.5, %v2136_v49  ;;  %v2388_v55 = vmul.f32 %v2260_v35, %v5478_v57  ;;  %v2131_v29 = vadd.f32 1.0, %v5589_v23  ;;  %v5764_v36 = vpop.f32.mrb[90].mxu1 }
 0x234   : > { %4189 = vtanh.f32 %v1781_v63  ;;  %v1782_v61 = vmul.f32 0.7978846, %v1654_v27  ;;  %v1785_v24 = vmul.f32 0.7978846, %v1657_v17  ;;  %v2135_v52 = vadd.f32 1.0, %v5606_v7  ;;  %v5767_v16 = vpop.f32.mrb[91].mxu1 }
 0x235   : > { %v1530_v48 = vmul.f32 0.044715, %v1402_v1  ;;  %v2392_v59 = vmul.f32 %v2264_v15, %v5490_v20  ;;  %v2259_v39 = vmul.f32 0.5, %v2131_v29  ;;  %v5772_v30 = vadd.f32 %v5572_v22, %v5650_v31 }
 0x236   : > { %4191 = vtanh.f32 %v1782_v61  ;;  %v2263_v57 = vmul.f32 0.5, %v2135_v52  ;;  %v5776_v23 = vadd.f32 %v5576_v28, %v5667_v46  ;;  %v5780_v49 = vadd.f32 %v5579_v3, %v5650_v31 }
 0x237   : > { %4193 = vtanh.f32 %v1785_v24  ;;  %v1658_v7 = vadd.f32 %v1530_v48, %v5748_v33  ;;  %v2464_v35 = vpack.c.bf16 %v2392_v59, %v2388_v55  ;;  %v2387_v20 = vmul.f32 %v2259_v39, %v5467_v21 }
 0x238   : > { %v2391_v63 = vmul.f32 %v2263_v57, %v5486_v40  ;;  %v1277_v22 = vmul.f32 %v5772_v30, %v5772_v30  ;;  %v1278_v27 = vmul.f32 %v5776_v23, %v5776_v23  ;;  %v1281_v28 = vmul.f32 %v5780_v49, %v5780_v49 }
 0x239   : > { %v4182_v17 = vpop.eup %4181  ;;  %v1786_v3 = vmul.f32 0.7978846, %v1658_v7  ;;  %3033 = vmatprep.mubr.bf16.mxu0 %v2464_v35  ;;  %v5793_v1 = vadd.f32 %v5587_v62, %v5667_v46  ;;  %v2140_v21 = vadd.f32 1.0, %v5656_v14  ;;  %v2144_v40 = vadd.f32 1.0, %v5675_v6  ;;  %v5797_v15 = vpop.f32.mrb[92].mxu1 }
 0x23a   : > { %v4184_v55 = vpop.eup %4183  ;;  %v2029_v29 = vadd.f32 1.0, %v4182_v17  ;;  %v2463_v61 = vpack.c.bf16 %v2391_v63, %v2387_v20  ;;  %v1405_v24 = vmul.f32 %v1277_v22, %v5772_v30  ;;  %v1406_v52 = vmul.f32 %v1278_v27, %v5776_v23  ;;  %v5801_v48 = vpop.f32.mrb[93].mxu1 }
 0x23b   : > { %6765 = vst [vmem:[#allocation17_spill] sm:$0xff] %v5801_v48  ;;  %v5803_v59 = vpop.eup %4185  ;;  %v2033_v39 = vadd.f32 1.0, %v4184_v55  ;;  %4195 = vtanh.f32 %v1786_v3  ;;  %v1409_v62 = vmul.f32 %v1281_v28, %v5780_v49  ;;  %v1282_v14 = vmul.f32 %v5793_v1, %v5793_v1  ;;  %v5808_v6 = vpop.f32.mrb[94].mxu1 }
 0x23c   : > { %6766 = vst [vmem:[#allocation18_spill] sm:$0xff] %v5808_v6  ;;  %v5810_v57 = vpop.eup %4187  ;;  %v2157_v7 = vmul.f32 0.5, %v2029_v29  ;;  %3034 = vmatmul.mubr.bf16.gmra.mrb[52].mxu0 %v2463_v61  ;;  %v1533_v35 = vmul.f32 0.044715, %v1405_v24  ;;  %v1534_v20 = vmul.f32 0.044715, %v1406_v52 }
 0x23d   : > { %v2268_v63 = vmul.f32 0.5, %v2140_v21  ;;  %v2161_v22 = vmul.f32 0.5, %v2033_v39  ;;  %v1537_v27 = vmul.f32 0.044715, %v1409_v62  ;;  %v1410_v17 = vmul.f32 %v1282_v14, %v5793_v1  ;;  %v5813_v3 = vpop.f32.mrb[95].mxu1 }
 0x23e   : > { %v2272_v55 = vmul.f32 0.5, %v2144_v40  ;;  %v5815_v28 = vpop.eup %4189  ;;  %v5818_v48 = vmul.f32 %v2157_v7, %v5665_v58  ;;  %v1661_v6 = vadd.f32 %v1533_v35, %v5772_v30  ;;  %v1662_v29 = vadd.f32 %v1534_v20, %v5776_v23 }
 0x23f   : > { %v2396_v61 = vmul.f32 %v2268_v63, %v5540_v42  ;;  %v5824_v21 = vmul.f32 %v2161_v22, %v5671_v50  ;;  %v1665_v24 = vadd.f32 %v1537_v27, %v5780_v49  ;;  %v1538_v52 = vmul.f32 0.044715, %v1410_v17 }
 0x240   : > { %v2400_v40 = vmul.f32 %v2272_v55, %v5552_v41  ;;  %v5828_v39 = vpop.eup %4191  ;;  %v1789_v62 = vmul.f32 0.7978846, %v1661_v6  ;;  %v1790_v14 = vmul.f32 0.7978846, %v1662_v29  ;;  %v2139_v58 = vadd.f32 1.0, %v5643_v43 }
 0x241   : > { %v2143_v7 = vadd.f32 1.0, %v5661_v38  ;;  %v5832_v35 = vpop.eup %4193  ;;  %v1793_v50 = vmul.f32 0.7978846, %v1665_v24  ;;  %v1666_v20 = vadd.f32 %v1538_v52, %v5793_v1  ;;  %v5837_v22 = vpop.f32.mrb[96].mxu1  ;;  %v5841_v6 = vadd.f32 %v5621_v60, %v5650_v31 }
 0x242   : > { %v2468_v63 = vpack.c.bf16 %v2400_v40, %v2396_v61  ;;  %4197 = vtanh.f32 %v1789_v62  ;;  %v2267_v41 = vmul.f32 0.5, %v2139_v58  ;;  %v5843_v43 = vpop.f32.mrb[97].mxu1  ;;  %v5847_v17 = vadd.f32 %v5626_v45, %v5667_v46 }
 0x243   : > { %v2271_v27 = vmul.f32 0.5, %v2143_v7  ;;  %4199 = vtanh.f32 %v1790_v14  ;;  %v1794_v38 = vmul.f32 0.7978846, %v1666_v20  ;;  %v5851_v55 = vadd.f32 %v5630_v44, %v5650_v31  ;;  %v5853_v29 = vpop.f32.mrb[98].mxu1 }
 0x244   : > { %3043 = vmatprep.mubr.bf16.mxu0 %v2468_v63  ;;  %4201 = vtanh.f32 %v1793_v50  ;;  %v2395_v61 = vmul.f32 %v2267_v41, %v5529_v19  ;;  %v1285_v24 = vmul.f32 %v5841_v6, %v5841_v6  ;;  %v5859_v52 = vpop.f32.mrb[99].mxu1  ;;  %v1286_v45 = vmul.f32 %v5847_v17, %v5847_v17 }
 0x245   : > { %v2399_v60 = vmul.f32 %v2271_v27, %v5548_v54  ;;  %v5861_v40 = vpop.eup %4195  ;;  %4203 = vtanh.f32 %v1794_v38  ;;  %v1289_v44 = vmul.f32 %v5851_v55, %v5851_v55  ;;  %v5869_v62 = vadd.f32 %v5635_v26, %v5667_v46 }
 0x246   : > { %v1413_v54 = vmul.f32 %v1285_v24, %v5841_v6  ;;  %v2148_v14 = vadd.f32 1.0, %v5729_v8  ;;  %v2152_v58 = vadd.f32 1.0, %v5742_v34  ;;  %v1414_v7 = vmul.f32 %v1286_v45, %v5847_v17 }
 0x247   : > { %v2467_v19 = vpack.c.bf16 %v2399_v60, %v2395_v61  ;;  %v1417_v50 = vmul.f32 %v1289_v44, %v5851_v55  ;;  %v1290_v20 = vmul.f32 %v5869_v62, %v5869_v62  ;;  %v2147_v63 = vadd.f32 1.0, %v5710_v51 }
 0x248   : > { %v1541_v41 = vmul.f32 0.044715, %v1413_v54  ;;  %v2276_v26 = vmul.f32 0.5, %v2148_v14  ;;  %v2280_v27 = vmul.f32 0.5, %v2152_v58  ;;  %v2151_v38 = vadd.f32 1.0, %v5738_v10  ;;  %v6767_v58 = vld [vmem:[#allocation14_spill] sm:$0xff] }
 0x249   : > { %3044 = vmatmul.mubr.bf16.gmra.mrb[56].mxu0 %v2467_v19  ;;  %v1542_v61 = vmul.f32 0.044715, %v1414_v7  ;;  %v1545_v60 = vmul.f32 0.044715, %v1417_v50  ;;  %v1418_v8 = vmul.f32 %v1290_v20, %v5869_v62  ;;  %v2275_v34 = vmul.f32 0.5, %v2147_v63  ;;  %v5881_v24 = vpop.f32.mrb[100].mxu1 }
 0x24a   : > { %v1669_v45 = vadd.f32 %v1541_v41, %v5841_v6  ;;  %v2404_v44 = vmul.f32 %v2276_v26, %v5598_v4  ;;  %v2408_v42 = vmul.f32 %v2280_v27, %v5613_v32  ;;  %v2279_v51 = vmul.f32 0.5, %v2151_v38  ;;  %v5886_v19 = vpop.f32.mrb[101].mxu1 }
 0x24b   : > { %v1670_v54 = vadd.f32 %v1542_v61, %v5847_v17  ;;  %v1673_v10 = vadd.f32 %v1545_v60, %v5851_v55  ;;  %v1546_v14 = vmul.f32 0.044715, %v1418_v8  ;;  %v2403_v7 = vmul.f32 %v2275_v34, %v6767_v58  ;;  %v5891_v50 = vpop.f32.mrb[102].mxu1 }
 0x24c   : > { %v5893_v20 = vpop.eup %4197  ;;  %v1797_v63 = vmul.f32 0.7978846, %v1669_v45  ;;  %v2472_v41 = vpack.c.bf16 %v2408_v42, %v2404_v44  ;;  %v2407_v4 = vmul.f32 %v2279_v51, %v5604_v9  ;;  %v5898_v32 = vadd.f32 %v5654_v12, %v5650_v31  ;;  %v5900_v26 = vpop.f32.mrb[103].mxu1 }
 0x24d   : > { %v5902_v27 = vpop.eup %4199  ;;  %v1798_v38 = vmul.f32 0.7978846, %v1670_v54  ;;  %v1801_v61 = vmul.f32 0.7978846, %v1673_v10  ;;  %v1674_v60 = vadd.f32 %v1546_v14, %v5869_v62  ;;  %v5907_v8 = vadd.f32 %v5659_v5, %v5667_v46 }
 0x24e   : > { %v5909_v34 = vpop.eup %4201  ;;  %4205 = vtanh.f32 %v1797_v63  ;;  %3053 = vmatprep.mubr.bf16.mxu0 %v2472_v41  ;;  %v2471_v9 = vpack.c.bf16 %v2407_v4, %v2403_v7  ;;  %v1293_v12 = vmul.f32 %v5898_v32, %v5898_v32  ;;  %v5915_v42 = vadd.f32 %v5673_v13, %v5650_v31 }
 0x24f   : > { %v5917_v45 = vpop.eup %4203  ;;  %4207 = vtanh.f32 %v1798_v38  ;;  %v1802_v44 = vmul.f32 0.7978846, %v1674_v60  ;;  %v1294_v5 = vmul.f32 %v5907_v8, %v5907_v8  ;;  %v5923_v51 = vadd.f32 %v5678_v18, %v5667_v46 }
 0x250   : > { %4209 = vtanh.f32 %v1801_v61  ;;  %v1421_v54 = vmul.f32 %v1293_v12, %v5898_v32  ;;  %v1297_v10 = vmul.f32 %v5915_v42, %v5915_v42  ;;  %v2030_v13 = vadd.f32 1.0, %v5803_v59 }
 0x251   : > { %3054 = vmatmul.mubr.bf16.gmra.mrb[60].mxu0 %v2471_v9  ;;  %4211 = vtanh.f32 %v1802_v44  ;;  %v1422_v14 = vmul.f32 %v1294_v5, %v5907_v8  ;;  %v1298_v58 = vmul.f32 %v5923_v51, %v5923_v51  ;;  %v2034_v7 = vadd.f32 1.0, %v5810_v57  ;;  %v5933_v63 = vpop.f32.mrb[104].mxu1 }
 0x252   : > { %6768 = vst [vmem:[#allocation14_spill] sm:$0xff] %v5933_v63  ;;  %v1549_v18 = vmul.f32 0.044715, %v1421_v54  ;;  %v1425_v41 = vmul.f32 %v1297_v10, %v5915_v42  ;;  %v2158_v4 = vmul.f32 0.5, %v2030_v13  ;;  %v5938_v38 = vadd.f32 %v5708_v2, %v5650_v31  ;;  %v5940_v61 = vpop.f32.mrb[105].mxu1 }
 0x253   : > { %6770 = vst [vmem:[#allocation20_spill] sm:$0xff] %v5940_v61  ;;  %v1550_v59 = vmul.f32 0.044715, %v1422_v14  ;;  %v1426_v60 = vmul.f32 %v1298_v58, %v5923_v51  ;;  %v2162_v9 = vmul.f32 0.5, %v2034_v7  ;;  %v5945_v12 = vadd.f32 %v5723_v11, %v5667_v46  ;;  %v5947_v57 = vpop.f32.mrb[106].mxu1  ;;  %v6773_v58 = vld [vmem:[#allocation15_spill] sm:$0xff] }
 0x254   : > { %6769 = vst [vmem:[#allocation19_spill] sm:$0xff] %v5938_v38  ;;  %6771 = vst [vmem:[#allocation21_spill] sm:$0xff] %v5947_v57  ;;  %v1677_v44 = vadd.f32 %v1549_v18, %v5898_v32  ;;  %v1553_v5 = vmul.f32 0.044715, %v1425_v41  ;;  %v2286_v54 = vmul.f32 %v2158_v4, %v5684_v47  ;;  %v1301_v2 = vmul.f32 %v5938_v38, %v5938_v38  ;;  %v5953_v10 = vpop.f32.mrb[107].mxu1  ;;  %v6774_v47 = vld [vmem:[#allocation13_spill] sm:$0xff] }
 0x255   : > { %6772 = vst [vmem:[#allocation22_spill] sm:$0xff] %v5953_v10  ;;  %v1678_v13 = vadd.f32 %v1550_v59, %v5907_v8  ;;  %v1554_v14 = vmul.f32 0.044715, %v1426_v60  ;;  %v2290_v7 = vmul.f32 %v2162_v9, %v6773_v58  ;;  %v1302_v11 = vmul.f32 %v5945_v12, %v5945_v12 }
 0x256   : > { %v1805_v61 = vmul.f32 0.7978846, %v1677_v44  ;;  %v1681_v57 = vadd.f32 %v1553_v5, %v5915_v42  ;;  %v1429_v18 = vmul.f32 %v1301_v2, %v5938_v38  ;;  %v5963_v41 = vadd.f32 %v6774_v47, %v5650_v31 }
 0x257   : > { %v1806_v4 = vmul.f32 0.7978846, %v1678_v13  ;;  %v1682_v10 = vadd.f32 %v1554_v14, %v5923_v51  ;;  %v2414_v63 = vpack.c.bf16 %v2290_v7, %v2286_v54  ;;  %v1430_v59 = vmul.f32 %v1302_v11, %v5945_v12  ;;  %v6775_v13 = vld [vmem:[#allocation16_spill] sm:$0xff] }
 0x258   : > { %v5967_v60 = vpop.eup %4205  ;;  %4213 = vtanh.f32 %v1805_v61  ;;  %v1809_v9 = vmul.f32 0.7978846, %v1681_v57  ;;  %v1557_v58 = vmul.f32 0.044715, %v1429_v18  ;;  %v1305_v44 = vmul.f32 %v5963_v41, %v5963_v41 }
 0x259   : > { %v5971_v5 = vpop.eup %4207  ;;  %4215 = vtanh.f32 %v1806_v4  ;;  %v1810_v2 = vmul.f32 0.7978846, %v1682_v10  ;;  %3096 = vmatprep.mubr.bf16.mxu0 %v2414_v63  ;;  %v1558_v47 = vmul.f32 0.044715, %v1430_v59  ;;  %v5975_v14 = vadd.f32 %v6775_v13, %v5667_v46  ;;  %v5977_v54 = vpop.f32.mrb[108].mxu1 }
 0x25a   : > { %6776 = vst [vmem:[#allocation15_spill] sm:$0xff] %v5977_v54  ;;  %v5979_v7 = vpop.eup %4209  ;;  %4217 = vtanh.f32 %v1809_v9  ;;  %v6777_v61 = vpack.c.bf16 %v5824_v21, %v5818_v48  ;;  %v1685_v57 = vadd.f32 %v1557_v58, %v5938_v38  ;;  %v1433_v11 = vmul.f32 %v1305_v44, %v5963_v41  ;;  %v5987_v10 = vpop.f32.mrb[109].mxu1 }
 0x25b   : > { %v2038_v63 = vadd.f32 1.0, %v5828_v39  ;;  %6778 = vst [vmem:[#allocation13_spill] sm:$0xff] %v5987_v10  ;;  %v5989_v18 = vpop.eup %4211  ;;  %4219 = vtanh.f32 %v1810_v2  ;;  %v1686_v4 = vadd.f32 %v1558_v47, %v5945_v12  ;;  %v1306_v59 = vmul.f32 %v5975_v14, %v5975_v14  ;;  %v5995_v48 = vpop.f32.mrb[110].mxu1 }
 0x25c   : > { %3097 = vmatmul.mubr.bf16.vlgmr.msra.gmra.mrb[0].mxu0 %v6777_v61  ;;  %v2042_v9 = vadd.f32 1.0, %v5861_v40  ;;  %v1813_v21 = vmul.f32 0.7978846, %v1685_v57  ;;  %v1561_v58 = vmul.f32 0.044715, %v1433_v11  ;;  %v2037_v44 = vadd.f32 1.0, %v5815_v28 }
 0x25d   : > { %v2166_v13 = vmul.f32 0.5, %v2038_v63  ;;  %v1814_v39 = vmul.f32 0.7978846, %v1686_v4  ;;  %v1434_v61 = vmul.f32 %v1306_v59, %v5975_v14  ;;  %v2041_v2 = vadd.f32 1.0, %v5832_v35  ;;  %v6000_v54 = vpop.f32.mrb[111].mxu1 }
 0x25e   : > { %v2170_v10 = vmul.f32 0.5, %v2042_v9  ;;  %4221 = vtanh.f32 %v1813_v21  ;;  %v1689_v47 = vadd.f32 %v1561_v58, %v5963_v41  ;;  %v2165_v38 = vmul.f32 0.5, %v2037_v44 }
 0x25f   : > { %v2294_v40 = vmul.f32 %v2166_v13, %v5717_v0  ;;  %4223 = vtanh.f32 %v1814_v39  ;;  %v1562_v57 = vmul.f32 0.044715, %v1434_v61  ;;  %v2169_v63 = vmul.f32 0.5, %v2041_v2 }
 0x260   : > { %v2298_v11 = vmul.f32 %v2170_v10, %v5748_v33  ;;  %v1817_v28 = vmul.f32 0.7978846, %v1689_v47  ;;  %v2293_v4 = vmul.f32 %v2165_v38, %v5704_v56  ;;  %v6008_v59 = vadd.f32 %v5755_v53, %v5650_v31 }
 0x261   : > { %v6012_v35 = vadd.f32 %v5759_v37, %v5667_v46  ;;  %v1690_v9 = vadd.f32 %v1562_v57, %v5975_v14  ;;  %v2297_v21 = vmul.f32 %v2169_v63, %v5721_v25  ;;  %v6018_v33 = vadd.f32 %v5764_v36, %v5650_v31  ;;  %v6020_v10 = vpop.f32.mrb[112].mxu1 }
 0x262   : > { %v2418_v0 = vpack.c.bf16 %v2298_v11, %v2294_v40  ;;  %v6022_v56 = vpop.eup %4213  ;;  %4225 = vtanh.f32 %v1817_v28  ;;  %v1309_v53 = vmul.f32 %v6008_v59, %v6008_v59  ;;  %v6030_v38 = vadd.f32 %v5767_v16, %v5667_v46  ;;  %v6032_v25 = vpop.f32.mrb[113].mxu1 }
 0x263   : > { %v1310_v37 = vmul.f32 %v6012_v35, %v6012_v35  ;;  %6779 = vst [vmem:[#allocation16_spill] sm:$0xff] %v6032_v25  ;;  %v6034_v58 = vpop.eup %4215  ;;  %v1818_v36 = vmul.f32 0.7978846, %v1690_v9  ;;  %v2417_v13 = vpack.c.bf16 %v2297_v21, %v2293_v4  ;;  %v1313_v44 = vmul.f32 %v6018_v33, %v6018_v33  ;;  %v6039_v61 = vpop.f32.mrb[114].mxu1 }
 0x264   : > { %3106 = vmatprep.mubr.bf16.mxu0 %v2418_v0  ;;  %v2046_v39 = vadd.f32 1.0, %v5902_v27  ;;  %6780 = vst [vmem:[#allocation23_spill] sm:$0xff] %v6039_v61  ;;  %v6041_v2 = vpop.eup %4217  ;;  %v1437_v47 = vmul.f32 %v1309_v53, %v6008_v59  ;;  %v1314_v40 = vmul.f32 %v6030_v38, %v6030_v38  ;;  %v2050_v57 = vadd.f32 1.0, %v5917_v45  ;;  %v6048_v11 = vpop.f32.mrb[115].mxu1 }
 0x265   : > { %v1438_v16 = vmul.f32 %v1310_v37, %v6012_v35  ;;  %6781 = vst [vmem:[#allocation24_spill] sm:$0xff] %v6048_v11  ;;  %v6050_v63 = vpop.eup %4219  ;;  %4227 = vtanh.f32 %v1818_v36  ;;  %3107 = vmatmul.mubr.bf16.gmra.mrb[4].mxu0 %v2417_v13  ;;  %v1441_v27 = vmul.f32 %v1313_v44, %v6018_v33  ;;  %v2045_v4 = vadd.f32 1.0, %v5893_v20 }
 0x266   : > { %v2174_v28 = vmul.f32 0.5, %v2046_v39  ;;  %v1565_v9 = vmul.f32 0.044715, %v1437_v47  ;;  %v1442_v21 = vmul.f32 %v1314_v40, %v6030_v38  ;;  %v2178_v53 = vmul.f32 0.5, %v2050_v57 }
 0x267   : > { %v1566_v0 = vmul.f32 0.044715, %v1438_v16  ;;  %v1569_v37 = vmul.f32 0.044715, %v1441_v27  ;;  %v2049_v45 = vadd.f32 1.0, %v5909_v34  ;;  %v2173_v11 = vmul.f32 0.5, %v2045_v4 }
 0x268   : > { %v2302_v61 = vmul.f32 %v2174_v28, %v5776_v23  ;;  %v6057_v25 = vpop.eup %4221  ;;  %v1693_v36 = vadd.f32 %v1565_v9, %v6008_v59  ;;  %v1570_v44 = vmul.f32 0.044715, %v1442_v21  ;;  %v2306_v20 = vmul.f32 %v2178_v53, %v5793_v1 }
 0x269   : > { %v1694_v13 = vadd.f32 %v1566_v0, %v6012_v35  ;;  %v6062_v39 = vpop.eup %4223  ;;  %v1697_v47 = vadd.f32 %v1569_v37, %v6018_v33  ;;  %v2177_v16 = vmul.f32 0.5, %v2049_v45  ;;  %v2301_v40 = vmul.f32 %v2173_v11, %v5772_v30  ;;  %v6070_v34 = vpop.f32.mrb[116].mxu1  ;;  %v6782_v30 = vld [vmem:[#allocation17_spill] sm:$0xff] }
 0x26a   : > { %v6068_v23 = vadd.f32 %v5797_v15, %v5650_v31  ;;  %v1821_v57 = vmul.f32 0.7978846, %v1693_v36  ;;  %v1698_v28 = vadd.f32 %v1570_v44, %v6030_v38  ;;  %v2422_v4 = vpack.c.bf16 %v2306_v20, %v2302_v61  ;;  %v6073_v9 = vpop.f32.mrb[117].mxu1  ;;  %v6784_v61 = vld [vmem:[#allocation18_spill] sm:$0xff] }
 0x26b   : > { %v1822_v27 = vmul.f32 0.7978846, %v1694_v13  ;;  %v1825_v1 = vmul.f32 0.7978846, %v1697_v47  ;;  %v2305_v0 = vmul.f32 %v2177_v16, %v5780_v49  ;;  %v6080_v11 = vadd.f32 %v6782_v30, %v5667_v46  ;;  %v6082_v15 = vpop.f32.mrb[118].mxu1 }
 0x26c   : > { %v1317_v21 = vmul.f32 %v6068_v23, %v6068_v23  ;;  %6783 = vst [vmem:[#allocation17_spill] sm:$0xff] %v6082_v15  ;;  %v6084_v53 = vpop.eup %4225  ;;  %4229 = vtanh.f32 %v1821_v57  ;;  %v1826_v37 = vmul.f32 0.7978846, %v1698_v28  ;;  %3116 = vmatprep.mubr.bf16.mxu0 %v2422_v4  ;;  %v6088_v45 = vadd.f32 %v6784_v61, %v5650_v31  ;;  %v6094_v36 = vpop.f32.mrb[119].mxu1 }
 0x26d   : > { %v6092_v49 = vadd.f32 %v5813_v3, %v5667_v46  ;;  %6785 = vst [vmem:[#allocation18_spill] sm:$0xff] %v6094_v36  ;;  %4231 = vtanh.f32 %v1822_v27  ;;  %v2421_v13 = vpack.c.bf16 %v2305_v0, %v2301_v40  ;;  %v1318_v20 = vmul.f32 %v6080_v11, %v6080_v11 }
 0x26e   : > { %v1445_v44 = vmul.f32 %v1317_v21, %v6068_v23  ;;  %4233 = vtanh.f32 %v1825_v1  ;;  %v1321_v47 = vmul.f32 %v6088_v45, %v6088_v45  ;;  %v2054_v57 = vadd.f32 1.0, %v5971_v5 }
 0x26f   : > { %v1322_v16 = vmul.f32 %v6092_v49, %v6092_v49  ;;  %v6104_v3 = vpop.eup %4227  ;;  %4235 = vtanh.f32 %v1826_v37  ;;  %3117 = vmatmul.mubr.bf16.gmra.mrb[8].mxu0 %v2421_v13  ;;  %v1446_v40 = vmul.f32 %v1318_v20, %v6080_v11  ;;  %v2058_v28 = vadd.f32 1.0, %v5989_v18 }
 0x270   : > { %v1573_v27 = vmul.f32 0.044715, %v1445_v44  ;;  %v1449_v4 = vmul.f32 %v1321_v47, %v6088_v45  ;;  %v2182_v0 = vmul.f32 0.5, %v2054_v57  ;;  %v2053_v21 = vadd.f32 1.0, %v5967_v60 }
 0x271   : > { %v1450_v1 = vmul.f32 %v1322_v16, %v6092_v49  ;;  %v1574_v61 = vmul.f32 0.044715, %v1446_v40  ;;  %v2186_v5 = vmul.f32 0.5, %v2058_v28  ;;  %v2057_v36 = vadd.f32 1.0, %v5979_v7  ;;  %v6113_v37 = vpop.f32.mrb[120].mxu1 }
 0x272   : > { %v1701_v30 = vadd.f32 %v1573_v27, %v6068_v23  ;;  %v1577_v13 = vmul.f32 0.044715, %v1449_v4  ;;  %v2310_v20 = vmul.f32 %v2182_v0, %v5847_v17  ;;  %v2181_v18 = vmul.f32 0.5, %v2053_v21  ;;  %v6116_v15 = vpop.f32.mrb[121].mxu1 }
 0x273   : > { %v1578_v44 = vmul.f32 0.044715, %v1450_v1  ;;  %v1702_v16 = vadd.f32 %v1574_v61, %v6080_v11  ;;  %v2314_v60 = vmul.f32 %v2186_v5, %v5869_v62  ;;  %v2185_v57 = vmul.f32 0.5, %v2057_v36  ;;  %v6120_v27 = vpop.f32.mrb[122].mxu1 }
 0x274   : > { %v1829_v47 = vmul.f32 0.7978846, %v1701_v30  ;;  %v1705_v40 = vadd.f32 %v1577_v13, %v6088_v45  ;;  %v2309_v28 = vmul.f32 %v2181_v18, %v5841_v6  ;;  %v6127_v17 = vadd.f32 %v5837_v22, %v5650_v31  ;;  %v6129_v4 = vpop.f32.mrb[123].mxu1 }
 0x275   : > { %v1706_v7 = vadd.f32 %v1578_v44, %v6092_v49  ;;  %v1830_v1 = vmul.f32 0.7978846, %v1702_v16  ;;  %v2426_v0 = vpack.c.bf16 %v2314_v60, %v2310_v20  ;;  %v2313_v62 = vmul.f32 %v2185_v57, %v5851_v55 }
 0x276   : > { %4237 = vtanh.f32 %v1829_v47  ;;  %v6132_v36 = vpop.eup %4229  ;;  %v1833_v21 = vmul.f32 0.7978846, %v1705_v40  ;;  %v1325_v61 = vmul.f32 %v6127_v17, %v6127_v17  ;;  %v6138_v6 = vadd.f32 %v5843_v43, %v5667_v46 }
 0x277   : > { %v1834_v30 = vmul.f32 0.7978846, %v1706_v7  ;;  %v6140_v22 = vpop.eup %4231  ;;  %4239 = vtanh.f32 %v1830_v1  ;;  %3126 = vmatprep.mubr.bf16.mxu0 %v2426_v0  ;;  %v2425_v5 = vpack.c.bf16 %v2313_v62, %v2309_v28  ;;  %v6144_v13 = vadd.f32 %v5853_v29, %v5650_v31 }
 0x278   : > { %v6148_v55 = vadd.f32 %v5859_v52, %v5667_v46  ;;  %v6150_v44 = vpop.eup %4233  ;;  %4241 = vtanh.f32 %v1833_v21  ;;  %v1453_v20 = vmul.f32 %v1325_v61, %v6127_v17  ;;  %v1326_v43 = vmul.f32 %v6138_v6, %v6138_v6 }
 0x279   : > { %v2062_v18 = vadd.f32 1.0, %v6034_v58  ;;  %v6156_v47 = vpop.eup %4235  ;;  %4243 = vtanh.f32 %v1834_v30  ;;  %3127 = vmatmul.mubr.bf16.gmra.mrb[12].mxu0 %v2425_v5  ;;  %v1329_v29 = vmul.f32 %v6144_v13, %v6144_v13  ;;  %v2066_v16 = vadd.f32 1.0, %v6050_v63  ;;  %v6163_v60 = vpop.f32.mrb[124].mxu1 }
 0x27a   : > { %v1330_v52 = vmul.f32 %v6148_v55, %v6148_v55  ;;  %6786 = vst [vmem:[#allocation25_spill] sm:$0xff] %v6163_v60  ;;  %v1581_v57 = vmul.f32 0.044715, %v1453_v20  ;;  %v1454_v40 = vmul.f32 %v1326_v43, %v6138_v6  ;;  %v2061_v58 = vadd.f32 1.0, %v6022_v56  ;;  %v6167_v28 = vpop.f32.mrb[125].mxu1 }
 0x27b   : > { %v2190_v7 = vmul.f32 0.5, %v2062_v18  ;;  %6787 = vst [vmem:[#allocation26_spill] sm:$0xff] %v6167_v28  ;;  %v1457_v1 = vmul.f32 %v1329_v29, %v6144_v13  ;;  %v2194_v62 = vmul.f32 0.5, %v2066_v16  ;;  %v2065_v21 = vadd.f32 1.0, %v6041_v2  ;;  %v6172_v30 = vpop.f32.mrb[126].mxu1 }
 0x27c   : > { %v1458_v0 = vmul.f32 %v1330_v52, %v6148_v55  ;;  %v1709_v63 = vadd.f32 %v1581_v57, %v6127_v17  ;;  %v1582_v61 = vmul.f32 0.044715, %v1454_v40  ;;  %v2189_v20 = vmul.f32 0.5, %v2061_v58  ;;  %v6176_v43 = vpop.f32.mrb[127].mxu1 }
 0x27d   : > { %v2318_v5 = vmul.f32 %v2190_v7, %v5907_v8  ;;  %v1585_v56 = vmul.f32 0.044715, %v1457_v1  ;;  %v2322_v28 = vmul.f32 %v2194_v62, %v5923_v51  ;;  %v2193_v29 = vmul.f32 0.5, %v2065_v21 }
 0x27e   : > { %v1586_v18 = vmul.f32 0.044715, %v1458_v0  ;;  %v1837_v60 = vmul.f32 0.7978846, %v1709_v63  ;;  %v1710_v52 = vadd.f32 %v1582_v61, %v6138_v6  ;;  %v2317_v2 = vmul.f32 %v2189_v20, %v5898_v32 }
 0x27f   : > { %v6183_v16 = vadd.f32 %v5881_v24, %v5650_v31  ;;  %v1713_v8 = vadd.f32 %v1585_v56, %v6144_v13  ;;  %v2430_v7 = vpack.c.bf16 %v2322_v28, %v2318_v5  ;;  %v2321_v58 = vmul.f32 %v2193_v29, %v5915_v42 }
 0x280   : > { %v6185_v57 = vpop.eup %4237  ;;  %v1714_v40 = vadd.f32 %v1586_v18, %v6148_v55  ;;  %4245 = vtanh.f32 %v1837_v60  ;;  %v1838_v51 = vmul.f32 0.7978846, %v1710_v52  ;;  %v6194_v32 = vadd.f32 %v5886_v19, %v5667_v46 }
 0x281   : > { %v1333_v1 = vmul.f32 %v6183_v16, %v6183_v16  ;;  %v6196_v24 = vpop.eup %4239  ;;  %v1841_v0 = vmul.f32 0.7978846, %v1713_v8  ;;  %3136 = vmatprep.mubr.bf16.mxu0 %v2430_v7  ;;  %v2429_v21 = vpack.c.bf16 %v2321_v58, %v2317_v2  ;;  %v6200_v28 = vadd.f32 %v5891_v50, %v5650_v31 }
 0x282   : > { %v1842_v62 = vmul.f32 0.7978846, %v1714_v40  ;;  %v6202_v42 = vpop.eup %4241  ;;  %4247 = vtanh.f32 %v1838_v51  ;;  %v1334_v63 = vmul.f32 %v6194_v32, %v6194_v32  ;;  %v6209_v19 = vadd.f32 %v5900_v26, %v5667_v46 }
 0x283   : > { %v1461_v60 = vmul.f32 %v1333_v1, %v6183_v16  ;;  %v6211_v61 = vpop.eup %4243  ;;  %4249 = vtanh.f32 %v1841_v0  ;;  %3137 = vmatmul.mubr.bf16.gmra.mrb[16].mxu0 %v2429_v21  ;;  %v1337_v50 = vmul.f32 %v6200_v28, %v6200_v28  ;;  %v2070_v5 = vadd.f32 1.0, %v6062_v39 }
 0x284   : > { %v2074_v20 = vadd.f32 1.0, %v6104_v3  ;;  %4251 = vtanh.f32 %v1842_v62  ;;  %v1462_v18 = vmul.f32 %v1334_v63, %v6194_v32  ;;  %v1338_v29 = vmul.f32 %v6209_v19, %v6209_v19 }
 0x285   : > { %v1589_v56 = vmul.f32 0.044715, %v1461_v60  ;;  %v1465_v26 = vmul.f32 %v1337_v50, %v6200_v28  ;;  %v2198_v52 = vmul.f32 0.5, %v2070_v5  ;;  %v2069_v8 = vadd.f32 1.0, %v6057_v25  ;;  %v6788_v5 = vld [vmem:[#allocation19_spill] sm:$0xff] }
 0x286   : > { %v2202_v2 = vmul.f32 0.5, %v2074_v20  ;;  %v1590_v7 = vmul.f32 0.044715, %v1462_v18  ;;  %v1466_v39 = vmul.f32 %v1338_v29, %v6209_v19  ;;  %v2073_v3 = vadd.f32 1.0, %v6084_v53 }
 0x287   : > { %v1717_v40 = vadd.f32 %v1589_v56, %v6183_v16  ;;  %v1593_v58 = vmul.f32 0.044715, %v1465_v26  ;;  %v2326_v51 = vmul.f32 %v2198_v52, %v5945_v12  ;;  %v2197_v0 = vmul.f32 0.5, %v2069_v8  ;;  %v6789_v56 = vld [vmem:[#allocation14_spill] sm:$0xff] }
 0x288   : > { %v2330_v1 = vmul.f32 %v2202_v2, %v5975_v14  ;;  %v1718_v21 = vadd.f32 %v1590_v7, %v6194_v32  ;;  %v1594_v60 = vmul.f32 0.044715, %v1466_v39  ;;  %v2201_v63 = vmul.f32 0.5, %v2073_v3  ;;  %v6790_v2 = vld [vmem:[#allocation20_spill] sm:$0xff] }
 0x289   : > { %v1845_v62 = vmul.f32 0.7978846, %v1717_v40  ;;  %v1721_v25 = vadd.f32 %v1593_v58, %v6200_v28  ;;  %v2325_v20 = vmul.f32 %v2197_v0, %v6788_v5  ;;  %v6232_v18 = vadd.f32 %v6789_v56, %v5650_v31  ;;  %v6791_v40 = vld [vmem:[#allocation21_spill] sm:$0xff] }
 0x28a   : > { %v2434_v50 = vpack.c.bf16 %v2330_v1, %v2326_v51  ;;  %v6234_v53 = vpop.eup %4245  ;;  %v1846_v12 = vmul.f32 0.7978846, %v1718_v21  ;;  %v1722_v14 = vadd.f32 %v1594_v60, %v6209_v19  ;;  %v2329_v29 = vmul.f32 %v2201_v63, %v5963_v41  ;;  %v6792_v41 = vld [vmem:[#allocation22_spill] sm:$0xff] }
 0x28b   : > { %4253 = vtanh.f32 %v1845_v62  ;;  %v1849_v26 = vmul.f32 0.7978846, %v1721_v25  ;;  %v1341_v52 = vmul.f32 %v6232_v18, %v6232_v18  ;;  %v6242_v8 = vadd.f32 %v6790_v2, %v5667_v46 }
 0x28c   : > { %3146 = vmatprep.mubr.bf16.mxu0 %v2434_v50  ;;  %v6246_v7 = vadd.f32 %v6791_v40, %v5650_v31  ;;  %v6248_v39 = vpop.eup %4247  ;;  %4255 = vtanh.f32 %v1846_v12  ;;  %v1850_v3 = vmul.f32 0.7978846, %v1722_v14  ;;  %v2433_v58 = vpack.c.bf16 %v2329_v29, %v2325_v20 }
 0x28d   : > { %v6252_v51 = vadd.f32 %v6792_v41, %v5667_v46  ;;  %v6254_v1 = vpop.eup %4249  ;;  %4257 = vtanh.f32 %v1849_v26  ;;  %v1469_v0 = vmul.f32 %v1341_v52, %v6232_v18  ;;  %v1342_v62 = vmul.f32 %v6242_v8, %v6242_v8 }
 0x28e   : > { %v1345_v21 = vmul.f32 %v6246_v7, %v6246_v7  ;;  %v6261_v60 = vpop.eup %4251  ;;  %4259 = vtanh.f32 %v1850_v3  ;;  %3147 = vmatmul.mubr.bf16.gmra.mrb[20].mxu0 %v2433_v58  ;;  %v2078_v25 = vadd.f32 1.0, %v6140_v22  ;;  %v2082_v50 = vadd.f32 1.0, %v6156_v47 }
 0x28f   : > { %v1346_v63 = vmul.f32 %v6252_v51, %v6252_v51  ;;  %v1597_v5 = vmul.f32 0.044715, %v1469_v0  ;;  %v1470_v20 = vmul.f32 %v1342_v62, %v6242_v8  ;;  %v2077_v12 = vadd.f32 1.0, %v6132_v36 }
 0x290   : > { %v1473_v56 = vmul.f32 %v1345_v21, %v6246_v7  ;;  %v2206_v29 = vmul.f32 0.5, %v2078_v25  ;;  %v2210_v26 = vmul.f32 0.5, %v2082_v50  ;;  %v2081_v52 = vadd.f32 1.0, %v6150_v44 }
 0x291   : > { %v1474_v14 = vmul.f32 %v1346_v63, %v6252_v51  ;;  %v1725_v2 = vadd.f32 %v1597_v5, %v6232_v18  ;;  %v1598_v40 = vmul.f32 0.044715, %v1470_v20  ;;  %v2205_v22 = vmul.f32 0.5, %v2077_v12  ;;  %v6793_v20 = vld [vmem:[#allocation15_spill] sm:$0xff]  ;;  %v6794_v12 = vld [vmem:[#allocation13_spill] sm:$0xff] }
 0x292   : > { %v1601_v3 = vmul.f32 0.044715, %v1473_v56  ;;  %v2334_v47 = vmul.f32 %v2206_v29, %v6012_v35  ;;  %v2338_v41 = vmul.f32 %v2210_v26, %v6030_v38  ;;  %v2209_v0 = vmul.f32 0.5, %v2081_v52 }
 0x293   : > { %v1602_v58 = vmul.f32 0.044715, %v1474_v14  ;;  %v1853_v62 = vmul.f32 0.7978846, %v1725_v2  ;;  %v1726_v36 = vadd.f32 %v1598_v40, %v6242_v8  ;;  %v2333_v63 = vmul.f32 %v2205_v22, %v6008_v59 }
 0x294   : > { %v1729_v21 = vadd.f32 %v1601_v3, %v6246_v7  ;;  %v2438_v50 = vpack.c.bf16 %v2338_v41, %v2334_v47  ;;  %v2337_v5 = vmul.f32 %v2209_v0, %v6018_v33  ;;  %v6284_v35 = vadd.f32 %v6793_v20, %v5650_v31 }
 0x295   : > { %v6278_v25 = vpop.eup %4253  ;;  %v1730_v44 = vadd.f32 %v1602_v58, %v6252_v51  ;;  %4261 = vtanh.f32 %v1853_v62  ;;  %v1854_v38 = vmul.f32 0.7978846, %v1726_v36  ;;  %v6288_v14 = vadd.f32 %v6794_v12, %v5667_v46 }
 0x296   : > { %v1857_v56 = vmul.f32 0.7978846, %v1729_v21  ;;  %v6290_v29 = vpop.eup %4255  ;;  %3156 = vmatprep.mubr.bf16.mxu0 %v2438_v50  ;;  %v2437_v26 = vpack.c.bf16 %v2337_v5, %v2333_v63  ;;  %v1349_v52 = vmul.f32 %v6284_v35, %v6284_v35  ;;  %v6296_v33 = vadd.f32 %v5995_v48, %v5650_v31 }
 0x297   : > { %v1858_v59 = vmul.f32 0.7978846, %v1730_v44  ;;  %v6298_v2 = vpop.eup %4257  ;;  %4263 = vtanh.f32 %v1854_v38  ;;  %v1350_v40 = vmul.f32 %v6288_v14, %v6288_v14  ;;  %v6304_v3 = vadd.f32 %v6000_v54, %v5667_v46 }
 0x298   : > { %v2086_v22 = vadd.f32 1.0, %v6196_v24  ;;  %v6307_v58 = vpop.eup %4259  ;;  %4265 = vtanh.f32 %v1857_v56  ;;  %3157 = vmatmul.mubr.bf16.gmra.mrb[24].mxu0 %v2437_v26  ;;  %v1477_v47 = vmul.f32 %v1349_v52, %v6284_v35  ;;  %v1353_v48 = vmul.f32 %v6296_v33, %v6296_v33 }
 0x299   : > { %v2090_v41 = vadd.f32 1.0, %v6211_v61  ;;  %4267 = vtanh.f32 %v1858_v59  ;;  %v1478_v0 = vmul.f32 %v1350_v40, %v6288_v14  ;;  %v1354_v54 = vmul.f32 %v6304_v3, %v6304_v3 }
 0x29a   : > { %v2214_v62 = vmul.f32 0.5, %v2086_v22  ;;  %v1605_v36 = vmul.f32 0.044715, %v1477_v47  ;;  %v1481_v24 = vmul.f32 %v1353_v48, %v6296_v33  ;;  %v2085_v63 = vadd.f32 1.0, %v6185_v57 }
 0x29b   : > { %v2218_v21 = vmul.f32 0.5, %v2090_v41  ;;  %v1606_v44 = vmul.f32 0.044715, %v1478_v0  ;;  %v1482_v50 = vmul.f32 %v1354_v54, %v6304_v3  ;;  %v2089_v61 = vadd.f32 1.0, %v6202_v42 }
 0x29c   : > { %v2342_v5 = vmul.f32 %v2214_v62, %v6080_v11  ;;  %v1733_v20 = vadd.f32 %v1605_v36, %v6284_v35  ;;  %v1609_v38 = vmul.f32 0.044715, %v1481_v24  ;;  %v2213_v12 = vmul.f32 0.5, %v2085_v63  ;;  %v6796_v36 = vld [vmem:[#allocation23_spill] sm:$0xff] }
 0x29d   : > { %v2346_v56 = vmul.f32 %v2218_v21, %v6092_v49  ;;  %v1734_v59 = vadd.f32 %v1606_v44, %v6288_v14  ;;  %v1610_v26 = vmul.f32 0.044715, %v1482_v50  ;;  %v2217_v52 = vmul.f32 0.5, %v2089_v61  ;;  %v6797_v61 = vld [vmem:[#allocation24_spill] sm:$0xff] }
 0x29e   : > { %v6326_v57 = vadd.f32 %v6020_v10, %v5650_v31  ;;  %v1861_v40 = vmul.f32 0.7978846, %v1733_v20  ;;  %v1737_v22 = vadd.f32 %v1609_v38, %v6296_v33  ;;  %v2341_v42 = vmul.f32 %v2213_v12, %v6068_v23  ;;  %v6795_v10 = vld [vmem:[#allocation16_spill] sm:$0xff] }
 0x29f   : > { %v2442_v11 = vpack.c.bf16 %v2346_v56, %v2342_v5  ;;  %v6330_v47 = vpop.eup %4261  ;;  %v1862_v48 = vmul.f32 0.7978846, %v1734_v59  ;;  %v1738_v49 = vadd.f32 %v1610_v26, %v6304_v3  ;;  %v2345_v41 = vmul.f32 %v2217_v52, %v6088_v45 }
 0x2a0   : > { %v1357_v0 = vmul.f32 %v6326_v57, %v6326_v57  ;;  %4269 = vtanh.f32 %v1861_v40  ;;  %v1865_v54 = vmul.f32 0.7978846, %v1737_v22  ;;  %v6338_v62 = vadd.f32 %v6795_v10, %v5667_v46 }
 0x2a1   : > { %3166 = vmatprep.mubr.bf16.mxu0 %v2442_v11  ;;  %v6342_v23 = vadd.f32 %v6796_v36, %v5650_v31  ;;  %v6344_v24 = vpop.eup %4263  ;;  %4271 = vtanh.f32 %v1862_v48  ;;  %v1866_v21 = vmul.f32 0.7978846, %v1738_v49  ;;  %v2441_v63 = vpack.c.bf16 %v2345_v41, %v2341_v42 }
 0x2a2   : > { %v1485_v45 = vmul.f32 %v1357_v0, %v6326_v57  ;;  %v6347_v44 = vpop.eup %4265  ;;  %4273 = vtanh.f32 %v1865_v54  ;;  %v1358_v50 = vmul.f32 %v6338_v62, %v6338_v62  ;;  %v6355_v20 = vadd.f32 %v6797_v61, %v5667_v46 }
 0x2a3   : > { %v1361_v5 = vmul.f32 %v6342_v23, %v6342_v23  ;;  %v6357_v38 = vpop.eup %4267  ;;  %4275 = vtanh.f32 %v1866_v21  ;;  %3167 = vmatmul.mubr.bf16.gmra.mrb[28].mxu0 %v2441_v63  ;;  %v2094_v12 = vadd.f32 1.0, %v6248_v39  ;;  %v2098_v59 = vadd.f32 1.0, %v6261_v60 }
 0x2a4   : > { %v1613_v56 = vmul.f32 0.044715, %v1485_v45  ;;  %v1486_v26 = vmul.f32 %v1358_v50, %v6338_v62  ;;  %v1362_v40 = vmul.f32 %v6355_v20, %v6355_v20  ;;  %v2093_v22 = vadd.f32 1.0, %v6234_v53 }
 0x2a5   : > { %v1489_v52 = vmul.f32 %v1361_v5, %v6342_v23  ;;  %v2222_v42 = vmul.f32 0.5, %v2094_v12  ;;  %v2226_v48 = vmul.f32 0.5, %v2098_v59  ;;  %v2097_v49 = vadd.f32 1.0, %v6254_v1 }
 0x2a6   : > { %v1741_v11 = vadd.f32 %v1613_v56, %v6326_v57  ;;  %v1614_v41 = vmul.f32 0.044715, %v1486_v26  ;;  %v1490_v39 = vmul.f32 %v1362_v40, %v6355_v20  ;;  %v2221_v60 = vmul.f32 0.5, %v2093_v22  ;;  %v6799_v40 = vld [vmem:[#allocation18_spill] sm:$0xff] }
 0x2a7   : > { %v1617_v0 = vmul.f32 0.044715, %v1489_v52  ;;  %v2350_v10 = vmul.f32 %v2222_v42, %v6138_v6  ;;  %v2354_v36 = vmul.f32 %v2226_v48, %v6148_v55  ;;  %v2225_v21 = vmul.f32 0.5, %v2097_v49 }
 0x2a8   : > { %v1869_v54 = vmul.f32 0.7978846, %v1741_v11  ;;  %v1742_v63 = vadd.f32 %v1614_v41, %v6338_v62  ;;  %v1618_v45 = vmul.f32 0.044715, %v1490_v39  ;;  %v2349_v50 = vmul.f32 %v2221_v60, %v6127_v17 }
 0x2a9   : > { %v1745_v53 = vadd.f32 %v1617_v0, %v6342_v23  ;;  %v2446_v1 = vpack.c.bf16 %v2354_v36, %v2350_v10  ;;  %v2353_v5 = vmul.f32 %v2225_v21, %v6144_v13  ;;  %v6377_v61 = vadd.f32 %v6070_v34, %v5650_v31  ;;  %v6798_v34 = vld [vmem:[#allocation17_spill] sm:$0xff] }
 0x2aa   : > { %4277 = vtanh.f32 %v1869_v54  ;;  %v6379_v56 = vpop.eup %4269  ;;  %v1870_v6 = vmul.f32 0.7978846, %v1742_v63  ;;  %v1746_v12 = vadd.f32 %v1618_v45, %v6355_v20  ;;  %v6384_v59 = vadd.f32 %v6073_v9, %v5667_v46 }
 0x2ab   : > { %v1873_v55 = vmul.f32 0.7978846, %v1745_v53  ;;  %v6386_v26 = vpop.eup %4271  ;;  %3176 = vmatprep.mubr.bf16.mxu0 %v2446_v1  ;;  %v2445_v17 = vpack.c.bf16 %v2353_v5, %v2349_v50  ;;  %v1365_v13 = vmul.f32 %v6377_v61, %v6377_v61  ;;  %v6392_v52 = vadd.f32 %v6798_v34, %v5650_v31 }
 0x2ac   : > { %v6396_v22 = vadd.f32 %v6799_v40, %v5667_v46  ;;  %v6398_v11 = vpop.eup %4273  ;;  %4279 = vtanh.f32 %v1870_v6  ;;  %v1874_v9 = vmul.f32 0.7978846, %v1746_v12  ;;  %v1366_v42 = vmul.f32 %v6384_v59, %v6384_v59 }
 0x2ad   : > { %v2102_v48 = vadd.f32 1.0, %v6290_v29  ;;  %v6403_v49 = vpop.eup %4275  ;;  %4281 = vtanh.f32 %v1873_v55  ;;  %3177 = vmatmul.mubr.bf16.gmra.mrb[32].mxu0 %v2445_v17  ;;  %v1493_v41 = vmul.f32 %v1365_v13, %v6377_v61  ;;  %v1369_v0 = vmul.f32 %v6392_v52, %v6392_v52 }
 0x2ae   : > { %v1370_v39 = vmul.f32 %v6396_v22, %v6396_v22  ;;  %4283 = vtanh.f32 %v1874_v9  ;;  %v1494_v60 = vmul.f32 %v1366_v42, %v6384_v59  ;;  %v2106_v54 = vadd.f32 1.0, %v6307_v58 }
 0x2af   : > { %v2230_v10 = vmul.f32 0.5, %v2102_v48  ;;  %v1621_v36 = vmul.f32 0.044715, %v1493_v41  ;;  %v1497_v29 = vmul.f32 %v1369_v0, %v6392_v52  ;;  %v2101_v63 = vadd.f32 1.0, %v6278_v25 }
 0x2b0   : > { %v1498_v21 = vmul.f32 %v1370_v39, %v6396_v22  ;;  %v1622_v53 = vmul.f32 0.044715, %v1494_v60  ;;  %v2234_v45 = vmul.f32 0.5, %v2106_v54  ;;  %v2105_v1 = vadd.f32 1.0, %v6298_v2 }
 0x2b1   : > { %v2358_v50 = vmul.f32 %v2230_v10, %v6194_v32  ;;  %v1749_v5 = vadd.f32 %v1621_v36, %v6377_v61  ;;  %v1625_v6 = vmul.f32 0.044715, %v1497_v29  ;;  %v2229_v12 = vmul.f32 0.5, %v2101_v63 }
 0x2b2   : > { %v1626_v55 = vmul.f32 0.044715, %v1498_v21  ;;  %v1750_v58 = vadd.f32 %v1622_v53, %v6384_v59  ;;  %v2362_v17 = vmul.f32 %v2234_v45, %v6209_v19  ;;  %v2233_v13 = vmul.f32 0.5, %v2105_v1 }
 0x2b3   : > { %v6422_v34 = vadd.f32 %v6113_v37, %v5650_v31  ;;  %v1877_v40 = vmul.f32 0.7978846, %v1749_v5  ;;  %v1753_v32 = vadd.f32 %v1625_v6, %v6392_v52  ;;  %v2357_v9 = vmul.f32 %v2229_v12, %v6183_v16 }
 0x2b4   : > { %v6424_v25 = vpop.eup %4277  ;;  %v1754_v2 = vadd.f32 %v1626_v55, %v6396_v22  ;;  %v1878_v42 = vmul.f32 0.7978846, %v1750_v58  ;;  %v2450_v48 = vpack.c.bf16 %v2362_v17, %v2358_v50  ;;  %v2361_v41 = vmul.f32 %v2233_v13, %v6200_v28 }
 0x2b5   : > { %v1373_v19 = vmul.f32 %v6422_v34, %v6422_v34  ;;  %4285 = vtanh.f32 %v1877_v40  ;;  %v1881_v0 = vmul.f32 0.7978846, %v1753_v32  ;;  %v6434_v39 = vadd.f32 %v6116_v15, %v5667_v46 }
 0x2b6   : > { %v1882_v37 = vmul.f32 0.7978846, %v1754_v2  ;;  %v6436_v60 = vpop.eup %4279  ;;  %4287 = vtanh.f32 %v1878_v42  ;;  %3186 = vmatprep.mubr.bf16.mxu0 %v2450_v48  ;;  %v2449_v54 = vpack.c.bf16 %v2361_v41, %v2357_v9  ;;  %v6441_v28 = vadd.f32 %v6120_v27, %v5650_v31  ;;  %v6800_v48 = vld [vmem:[#allocation25_spill] sm:$0xff] }
 0x2b7   : > { %v1501_v16 = vmul.f32 %v1373_v19, %v6422_v34  ;;  %v6443_v10 = vpop.eup %4281  ;;  %4289 = vtanh.f32 %v1881_v0  ;;  %v1374_v36 = vmul.f32 %v6434_v39, %v6434_v39  ;;  %v6449_v15 = vadd.f32 %v6129_v4, %v5667_v46 }
 0x2b8   : > { %v2110_v29 = vadd.f32 1.0, %v6344_v24  ;;  %v6452_v21 = vpop.eup %4283  ;;  %4291 = vtanh.f32 %v1882_v37  ;;  %3187 = vmatmul.mubr.bf16.gmra.mrb[36].mxu0 %v2449_v54  ;;  %v1377_v27 = vmul.f32 %v6441_v28, %v6441_v28  ;;  %v2114_v53 = vadd.f32 1.0, %v6357_v38 }
 0x2b9   : > { %v1629_v63 = vmul.f32 0.044715, %v1501_v16  ;;  %v1502_v45 = vmul.f32 %v1374_v36, %v6434_v39  ;;  %v1378_v50 = vmul.f32 %v6449_v15, %v6449_v15  ;;  %v2109_v4 = vadd.f32 1.0, %v6330_v47 }
 0x2ba   : > { %v2238_v1 = vmul.f32 0.5, %v2110_v29  ;;  %v1505_v5 = vmul.f32 %v1377_v27, %v6441_v28  ;;  %v2242_v6 = vmul.f32 0.5, %v2114_v53  ;;  %v2113_v55 = vadd.f32 1.0, %v6347_v44 }
 0x2bb   : > { %v1757_v24 = vadd.f32 %v1629_v63, %v6422_v34  ;;  %v1630_v12 = vmul.f32 0.044715, %v1502_v45  ;;  %v1506_v58 = vmul.f32 %v1378_v50, %v6449_v15  ;;  %v2237_v17 = vmul.f32 0.5, %v2109_v4 }
 0x2bc   : > { %v2366_v38 = vmul.f32 %v2238_v1, %v6242_v8  ;;  %v1633_v40 = vmul.f32 0.044715, %v1505_v5  ;;  %v2370_v32 = vmul.f32 %v2242_v6, %v6252_v51  ;;  %v2241_v2 = vmul.f32 0.5, %v2113_v55 }
 0x2bd   : > { %v1885_v13 = vmul.f32 0.7978846, %v1757_v24  ;;  %v1758_v47 = vadd.f32 %v1630_v12, %v6434_v39  ;;  %v1634_v9 = vmul.f32 0.044715, %v1506_v58  ;;  %v2365_v42 = vmul.f32 %v2237_v17, %v6232_v18  ;;  %v6801_v18 = vld [vmem:[#allocation26_spill] sm:$0xff] }
 0x2be   : > { %v6471_v41 = vadd.f32 %v6800_v48, %v5650_v31  ;;  %v1761_v44 = vadd.f32 %v1633_v40, %v6441_v28  ;;  %v2454_v19 = vpack.c.bf16 %v2370_v32, %v2366_v38  ;;  %v2369_v8 = vmul.f32 %v2241_v2, %v6246_v7 }
 0x2bf   : > { %4293 = vtanh.f32 %v1885_v13  ;;  %v6475_v0 = vpop.eup %4285  ;;  %v1886_v37 = vmul.f32 0.7978846, %v1758_v47  ;;  %v1762_v51 = vadd.f32 %v1634_v9, %v6449_v15  ;;  %v6482_v16 = vadd.f32 %v6801_v18, %v5667_v46 }
 0x2c0   : > { %v1381_v54 = vmul.f32 %v6471_v41, %v6471_v41  ;;  %v4288_v36 = vpop.eup %4287  ;;  %v1889_v29 = vmul.f32 0.7978846, %v1761_v44  ;;  %3196 = vmatprep.mubr.bf16.mxu0 %v2454_v19  ;;  %v2453_v63 = vpack.c.bf16 %v2369_v8, %v2365_v42  ;;  %v6486_v27 = vadd.f32 %v6172_v30, %v5650_v31 }
 0x2c1   : > { %v6490_v7 = vadd.f32 %v6176_v43, %v5667_v46  ;;  %v6492_v53 = vpop.eup %4289  ;;  %4295 = vtanh.f32 %v1886_v37  ;;  %v1890_v45 = vmul.f32 0.7978846, %v1762_v51  ;;  %v1382_v1 = vmul.f32 %v6482_v16, %v6482_v16 }
 0x2c2   : > { %v1509_v50 = vmul.f32 %v1381_v54, %v6471_v41  ;;  %v4292_v4 = vpop.eup %4291  ;;  %4297 = vtanh.f32 %v1889_v29  ;;  %3197 = vmatmul.mubr.bf16.gmra.mrb[40].mxu0 %v2453_v63  ;;  %v1385_v31 = vmul.f32 %v6486_v27, %v6486_v27  ;;  %v2118_v46 = vadd.f32 1.0, %v6386_v26 }
 0x2c3   : > { %v1386_v30 = vmul.f32 %v6490_v7, %v6490_v7  ;;  %4299 = vtanh.f32 %v1890_v45  ;;  %v1510_v24 = vmul.f32 %v1382_v1, %v6482_v16  ;;  %v2122_v5 = vadd.f32 1.0, %v6403_v49 }
 0x2c4   : > { %v1637_v43 = vmul.f32 0.044715, %v1509_v50  ;;  %v1513_v6 = vmul.f32 %v1385_v31, %v6486_v27  ;;  %v2246_v12 = vmul.f32 0.5, %v2118_v46  ;;  %v2117_v58 = vadd.f32 1.0, %v6379_v56 }
 0x2c5   : > { %v1514_v55 = vmul.f32 %v1386_v30, %v6490_v7  ;;  %v1638_v17 = vmul.f32 0.044715, %v1510_v24  ;;  %v2250_v13 = vmul.f32 0.5, %v2122_v5  ;;  %v2121_v40 = vadd.f32 1.0, %v6398_v11 }
 0x2c6   : > { %v1765_v38 = vadd.f32 %v1637_v43, %v6471_v41  ;;  %v1641_v26 = vmul.f32 0.044715, %v1513_v6  ;;  %v2374_v2 = vmul.f32 %v2246_v12, %v6288_v14  ;;  %v2245_v47 = vmul.f32 0.5, %v2117_v58 }
 0x2c7   : > { %v1642_v32 = vmul.f32 0.044715, %v1514_v55  ;;  %v1766_v49 = vadd.f32 %v1638_v17, %v6482_v16  ;;  %v2378_v42 = vmul.f32 %v2250_v13, %v6304_v3  ;;  %v2249_v48 = vmul.f32 0.5, %v2121_v40 }
 0x2c8   : > { %v1893_v9 = vmul.f32 0.7978846, %v1765_v38  ;;  %v1769_v56 = vadd.f32 %v1641_v26, %v6486_v27  ;;  %v2373_v8 = vmul.f32 %v2245_v47, %v6284_v35  ;;  %v2126_v11 = vadd.f32 1.0, %v6436_v60 }
 0x2c9   : > { %v4294_v44 = vpop.eup %4293  ;;  %v1770_v19 = vadd.f32 %v1642_v32, %v6490_v7  ;;  %v1894_v37 = vmul.f32 0.7978846, %v1766_v49  ;;  %v2458_v51 = vpack.c.bf16 %v2378_v42, %v2374_v2  ;;  %v2377_v14 = vmul.f32 %v2249_v48, %v6296_v33 }
 0x2ca   : > { %4301 = vtanh.f32 %v1893_v9  ;;  %v1897_v54 = vmul.f32 0.7978846, %v1769_v56  ;;  %v2130_v29 = vadd.f32 1.0, %v6452_v21  ;;  %v2254_v3 = vmul.f32 0.5, %v2126_v11 }
 0x2cb   : > { %v1898_v18 = vmul.f32 0.7978846, %v1770_v19  ;;  %v4296_v63 = vpop.eup %4295  ;;  %4303 = vtanh.f32 %v1894_v37  ;;  %3206 = vmatprep.mubr.bf16.mxu0 %v2458_v51  ;;  %v2457_v45 = vpack.c.bf16 %v2377_v14, %v2373_v8  ;;  %v2125_v50 = vadd.f32 1.0, %v6424_v25 }
 0x2cc   : > { %v2129_v35 = vadd.f32 1.0, %v6443_v10  ;;  %v4298_v1 = vpop.eup %4297  ;;  %4305 = vtanh.f32 %v1897_v54  ;;  %v2258_v60 = vmul.f32 0.5, %v2130_v29  ;;  %v2382_v31 = vmul.f32 %v2254_v3, %v6338_v62 }
 0x2cd   : > { %v2134_v30 = vadd.f32 1.0, %v4288_v36  ;;  %v4300_v33 = vpop.eup %4299  ;;  %4307 = vtanh.f32 %v1898_v18  ;;  %3207 = vmatmul.mubr.bf16.gmra.mrb[44].mxu0 %v2457_v45  ;;  %v2253_v46 = vmul.f32 0.5, %v2125_v50  ;;  %v2138_v43 = vadd.f32 1.0, %v4292_v4  ;;  %v2539_v45 = vld [vmem:[%s6735_s4] sm:$0x3] }
 0x2ce   : > { %v2257_v21 = vmul.f32 0.5, %v2129_v35  ;;  %v2386_v24 = vmul.f32 %v2258_v60, %v6355_v20  ;;  %v2133_v6 = vadd.f32 1.0, %v6475_v0  ;;  %v2137_v25 = vadd.f32 1.0, %v6492_v53  ;;  %v6802_v50 = vld [vmem:[#allocation12_spill] sm:$0xff] }
 0x2cf   : > { %v2262_v5 = vmul.f32 0.5, %v2134_v30  ;;  %v2381_v10 = vmul.f32 %v2253_v46, %v6326_v57  ;;  %v2266_v12 = vmul.f32 0.5, %v2138_v43  ;;  %v2142_v62 = vadd.f32 1.0, %v4296_v63 }
 0x2d0   : > { %v2385_v55 = vmul.f32 %v2257_v21, %v6342_v23  ;;  %v2462_v36 = vpack.c.bf16 %v2386_v24, %v2382_v31  ;;  %v2261_v38 = vmul.f32 0.5, %v2133_v6  ;;  %v2265_v17 = vmul.f32 0.5, %v2137_v25 }
 0x2d1   : > { %v2390_v58 = vmul.f32 %v2262_v5, %v6384_v59  ;;  %v2394_v4 = vmul.f32 %v2266_v12, %v6396_v22  ;;  %v2146_v20 = vadd.f32 1.0, %v4300_v33  ;;  %v2270_v40 = vmul.f32 0.5, %v2142_v62 }
 0x2d2   : > { %v2461_v13 = vpack.c.bf16 %v2385_v55, %v2381_v10  ;;  %3216 = vmatprep.mubr.bf16.mxu0 %v2462_v36  ;;  %v2389_v0 = vmul.f32 %v2261_v38, %v6377_v61  ;;  %v2393_v53 = vmul.f32 %v2265_v17, %v6392_v52  ;;  %v2141_v57 = vadd.f32 1.0, %v4294_v44 }
 0x2d3   : > { %v2145_v26 = vadd.f32 1.0, %v4298_v1  ;;  %v2466_v32 = vpack.c.bf16 %v2394_v4, %v2390_v58  ;;  %v2274_v2 = vmul.f32 0.5, %v2146_v20  ;;  %v2398_v22 = vmul.f32 %v2270_v40, %v6434_v39 }
 0x2d4   : > { %v4302_v23 = vpop.eup %4301  ;;  %v2465_v47 = vpack.c.bf16 %v2393_v53, %v2389_v0  ;;  %v2269_v9 = vmul.f32 0.5, %v2141_v57 }
 0x2d5   : > { %v2273_v59 = vmul.f32 0.5, %v2145_v26  ;;  %v2149_v49 = vadd.f32 1.0, %v4302_v23  ;;  %v4304_v42 = vpop.eup %4303  ;;  %3217 = vmatmul.mubr.bf16.gmra.mrb[48].mxu0 %v2461_v13  ;;  %v2402_v48 = vmul.f32 %v2274_v2, %v6449_v15 }
 0x2d6   : > { %v4306_v56 = vpop.eup %4305  ;;  %3226 = vmatprep.mubr.bf16.mxu0 %v2466_v32  ;;  %v2397_v61 = vmul.f32 %v2269_v9, %v6422_v34  ;;  %v2150_v44 = vadd.f32 1.0, %v4304_v42 }
 0x2d7   : > { %v2401_v52 = vmul.f32 %v2273_v59, %v6441_v28  ;;  %v4308_v19 = vpop.eup %4307  ;;  %v2470_v8 = vpack.c.bf16 %v2402_v48, %v2398_v22  ;;  %v2153_v11 = vadd.f32 1.0, %v4306_v56  ;;  %v2277_v37 = vmul.f32 0.5, %v2149_v49 }
 0x2d8   : > { %v2154_v14 = vadd.f32 1.0, %v4308_v19  ;;  %v2278_v54 = vmul.f32 0.5, %v2150_v44 }
 0x2d9   : > { %v2469_v51 = vpack.c.bf16 %v2401_v52, %v2397_v61  ;;  %v2281_v18 = vmul.f32 0.5, %v2153_v11  ;;  %v2405_v39 = vmul.f32 %v2277_v37, %v6471_v41  ;;  %v6803_v41 = vsub.s32 0, %v6802_v50 }
 0x2da   : > { %v2282_v29 = vmul.f32 0.5, %v2154_v14  ;;  %v2406_v3 = vmul.f32 %v2278_v54, %v6482_v16  ;;  %v6804_v16 = vsub.s32 1, %v6802_v50 }
 0x2db   : > { %v2409_v15 = vmul.f32 %v2281_v18, %v6486_v27  ;;  %v6544_v35 = vrot.slane %v2539_v45, %v6803_v41 }
 0x2dc   : > { %v2410_v34 = vmul.f32 %v2282_v29, %v6490_v7  ;;  %v6548_v27 = vrot.slane %v2539_v45, %v6804_v16 }
 0x2dd   : > { %3227 = vmatmul.mubr.bf16.gmra.mrb[52].mxu0 %v2465_v47  ;;  %v2473_v28 = vpack.c.bf16 %v2409_v15, %v2405_v39 }
 0x2de   : > { %3236 = vmatprep.mubr.bf16.mxu0 %v2470_v8  ;;  %v2474_v63 = vpack.c.bf16 %v2410_v34, %v2406_v3 }
 0x2e5   : > { %3237 = vmatmul.mubr.bf16.gmra.mrb[56].mxu0 %v2469_v51 }
 0x2e6   : > { %3246 = vmatprep.mubr.bf16.mxu0 %v2474_v63 }
 0x2ed   : > { %3247 = vmatmul.mubr.bf16.gmra.mrb[60].mxu0 %v2473_v28 }
 0x32f   : > { %v3098_v7 = vpop.f32.mrb[0].mxu0 }
 0x330   : > { %v3612_v1 = vadd.f32 %v3098_v7, %v6544_v35  ;;  %v3100_v60 = vpop.f32.mrb[1].mxu0 }
 0x331   : > { %v3613_v31 = vadd.f32 %v3100_v60, %v6548_v27  ;;  %v3102_v30 = vpop.f32.mrb[2].mxu0 }
 0x332   : > { %3257 = vst [vmem:[%s6552_s15] sm:$0xff] %v3612_v1  ;;  %v3614_v33 = vadd.f32 %v3102_v30, %v6544_v35  ;;  %v3104_v46 = vpop.f32.mrb[3].mxu0 }
 0x333   : > { %3258 = vst [vmem:[%s6552_s15 + $0x8] sm:$0xff] %v3613_v31  ;;  %v3615_v21 = vadd.f32 %v3104_v46, %v6548_v27 }
 0x334   : > { %3259 = vst [vmem:[%s6552_s15 + $0x10] sm:$0xff] %v3614_v33 }
 0x335   : > { %3260 = vst [vmem:[%s6552_s15 + $0x18] sm:$0xff] %v3615_v21 }
 0x338   : > { %v3108_v43 = vpop.f32.mrb[4].mxu0 }
 0x339   : > { %v3616_v24 = vadd.f32 %v3108_v43, %v6544_v35  ;;  %v3110_v5 = vpop.f32.mrb[5].mxu0 }
 0x33a   : > { %v3617_v6 = vadd.f32 %v3110_v5, %v6548_v27  ;;  %v3112_v25 = vpop.f32.mrb[6].mxu0 }
 0x33b   : > { %3261 = vst [vmem:[%s6552_s15 + $0x20] sm:$0xff] %v3616_v24  ;;  %v3618_v10 = vadd.f32 %v3112_v25, %v6544_v35  ;;  %v3114_v55 = vpop.f32.mrb[7].mxu0 }
 0x33c   : > { %3262 = vst [vmem:[%s6552_s15 + $0x28] sm:$0xff] %v3617_v6  ;;  %v3619_v12 = vadd.f32 %v3114_v55, %v6548_v27 }
 0x33d   : > { %3263 = vst [vmem:[%s6552_s15 + $0x30] sm:$0xff] %v3618_v10 }
 0x33e   : > { %3264 = vst [vmem:[%s6552_s15 + $0x38] sm:$0xff] %v3619_v12 }
 0x342   : > { %v3118_v62 = vpop.f32.mrb[8].mxu0 }
 0x343   : > { %v3620_v36 = vadd.f32 %v3118_v62, %v6544_v35  ;;  %v3120_v58 = vpop.f32.mrb[9].mxu0 }
 0x344   : > { %v3621_v38 = vadd.f32 %v3120_v58, %v6548_v27  ;;  %v3122_v17 = vpop.f32.mrb[10].mxu0 }
 0x345   : > { %3265 = vst [vmem:[%s6552_s15 + $0x40] sm:$0xff] %v3620_v36  ;;  %v3622_v13 = vadd.f32 %v3122_v17, %v6544_v35  ;;  %v3124_v4 = vpop.f32.mrb[11].mxu0 }
 0x346   : > { %3266 = vst [vmem:[%s6552_s15 + $0x48] sm:$0xff] %v3621_v38  ;;  %v3623_v20 = vadd.f32 %v3124_v4, %v6548_v27 }
 0x347   : > { %3267 = vst [vmem:[%s6552_s15 + $0x50] sm:$0xff] %v3622_v13 }
 0x348   : > { %3268 = vst [vmem:[%s6552_s15 + $0x58] sm:$0xff] %v3623_v20 }
 0x34c   : > { %v3128_v40 = vpop.f32.mrb[12].mxu0 }
 0x34d   : > { %v3624_v0 = vadd.f32 %v3128_v40, %v6544_v35  ;;  %v3130_v53 = vpop.f32.mrb[13].mxu0 }
 0x34e   : > { %v3625_v57 = vadd.f32 %v3130_v53, %v6548_v27  ;;  %v3132_v26 = vpop.f32.mrb[14].mxu0 }
 0x34f   : > { %3269 = vst [vmem:[%s6552_s15 + $0x60] sm:$0xff] %v3624_v0  ;;  %v3626_v23 = vadd.f32 %v3132_v26, %v6544_v35  ;;  %v3134_v32 = vpop.f32.mrb[15].mxu0 }
 0x350   : > { %3270 = vst [vmem:[%s6552_s15 + $0x68] sm:$0xff] %v3625_v57  ;;  %v3627_v2 = vadd.f32 %v3134_v32, %v6548_v27 }
 0x351   : > { %3271 = vst [vmem:[%s6552_s15 + $0x70] sm:$0xff] %v3626_v23 }
 0x352   : > { %3272 = vst [vmem:[%s6552_s15 + $0x78] sm:$0xff] %v3627_v2 }
 0x356   : > { %v3138_v47 = vpop.f32.mrb[16].mxu0 }
 0x357   : > { %v3628_v9 = vadd.f32 %v3138_v47, %v6544_v35  ;;  %v3140_v59 = vpop.f32.mrb[17].mxu0 }
 0x358   : > { %v3629_v49 = vadd.f32 %v3140_v59, %v6548_v27  ;;  %v3142_v42 = vpop.f32.mrb[18].mxu0 }
 0x359   : > { %3273 = vst [vmem:[%s6552_s15 + $0x80] sm:$0xff] %v3628_v9  ;;  %v3630_v22 = vadd.f32 %v3142_v42, %v6544_v35  ;;  %v3144_v48 = vpop.f32.mrb[19].mxu0 }
 0x35a   : > { %3274 = vst [vmem:[%s6552_s15 + $0x88] sm:$0xff] %v3629_v49  ;;  %v3631_v56 = vadd.f32 %v3144_v48, %v6548_v27 }
 0x35b   : > { %3275 = vst [vmem:[%s6552_s15 + $0x90] sm:$0xff] %v3630_v22 }
 0x35c   : > { %3276 = vst [vmem:[%s6552_s15 + $0x98] sm:$0xff] %v3631_v56 }
 0x361   : > { %v3148_v61 = vpop.f32.mrb[20].mxu0 }
 0x362   : > { %v3632_v52 = vadd.f32 %v3148_v61, %v6544_v35  ;;  %v3150_v44 = vpop.f32.mrb[21].mxu0 }
 0x363   : > { %v3633_v19 = vadd.f32 %v3150_v44, %v6548_v27  ;;  %v3152_v8 = vpop.f32.mrb[22].mxu0 }
 0x364   : > { %3277 = vst [vmem:[%s6552_s15 + $0xa0] sm:$0xff] %v3632_v52  ;;  %v3634_v11 = vadd.f32 %v3152_v8, %v6544_v35  ;;  %v3154_v37 = vpop.f32.mrb[23].mxu0 }
 0x365   : > { %3278 = vst [vmem:[%s6552_s15 + $0xa8] sm:$0xff] %v3633_v19  ;;  %v3635_v51 = vadd.f32 %v3154_v37, %v6548_v27 }
 0x366   : > { %3279 = vst [vmem:[%s6552_s15 + $0xb0] sm:$0xff] %v3634_v11 }
 0x367   : > { %3280 = vst [vmem:[%s6552_s15 + $0xb8] sm:$0xff] %v3635_v51 }
 0x36b   : > { %v3158_v14 = vpop.f32.mrb[24].mxu0 }
 0x36c   : > { %v3636_v54 = vadd.f32 %v3158_v14, %v6544_v35  ;;  %v3160_v18 = vpop.f32.mrb[25].mxu0 }
 0x36d   : > { %v3637_v29 = vadd.f32 %v3160_v18, %v6548_v27  ;;  %v3162_v39 = vpop.f32.mrb[26].mxu0 }
 0x36e   : > { %3281 = vst [vmem:[%s6552_s15 + $0xc0] sm:$0xff] %v3636_v54  ;;  %v3638_v15 = vadd.f32 %v3162_v39, %v6544_v35  ;;  %v3164_v3 = vpop.f32.mrb[27].mxu0 }
 0x36f   : > { %3282 = vst [vmem:[%s6552_s15 + $0xc8] sm:$0xff] %v3637_v29  ;;  %v3639_v34 = vadd.f32 %v3164_v3, %v6548_v27 }
 0x370   : > { %3283 = vst [vmem:[%s6552_s15 + $0xd0] sm:$0xff] %v3638_v15 }
 0x371   : > { %3284 = vst [vmem:[%s6552_s15 + $0xd8] sm:$0xff] %v3639_v34 }
 0x376   : > { %v3168_v28 = vpop.f32.mrb[28].mxu0 }
 0x377   : > { %v3640_v63 = vadd.f32 %v3168_v28, %v6544_v35  ;;  %v3170_v45 = vpop.f32.mrb[29].mxu0 }
 0x378   : > { %v3641_v50 = vadd.f32 %v3170_v45, %v6548_v27  ;;  %v3172_v41 = vpop.f32.mrb[30].mxu0 }
 0x379   : > { %3285 = vst [vmem:[%s6552_s15 + $0xe0] sm:$0xff] %v3640_v63  ;;  %v3642_v16 = vadd.f32 %v3172_v41, %v6544_v35  ;;  %v3174_v7 = vpop.f32.mrb[31].mxu0 }
 0x37a   : > { %3286 = vst [vmem:[%s6552_s15 + $0xe8] sm:$0xff] %v3641_v50  ;;  %v3643_v1 = vadd.f32 %v3174_v7, %v6548_v27 }
 0x37b   : > { %3287 = vst [vmem:[%s6552_s15 + $0xf0] sm:$0xff] %v3642_v16 }
 0x37c   : > { %3288 = vst [vmem:[%s6552_s15 + $0xf8] sm:$0xff] %v3643_v1 }
 0x380   : > { %v3178_v60 = vpop.f32.mrb[32].mxu0 }
 0x381   : > { %v3644_v31 = vadd.f32 %v3178_v60, %v6544_v35  ;;  %v3180_v30 = vpop.f32.mrb[33].mxu0 }
 0x382   : > { %v3645_v33 = vadd.f32 %v3180_v30, %v6548_v27  ;;  %v3182_v46 = vpop.f32.mrb[34].mxu0 }
 0x383   : > { %3289 = vst [vmem:[%s6552_s15 + $0x100] sm:$0xff] %v3644_v31  ;;  %v3646_v21 = vadd.f32 %v3182_v46, %v6544_v35  ;;  %v3184_v43 = vpop.f32.mrb[35].mxu0 }
 0x384   : > { %3290 = vst [vmem:[%s6552_s15 + $0x108] sm:$0xff] %v3645_v33  ;;  %v3647_v24 = vadd.f32 %v3184_v43, %v6548_v27 }
 0x385   : > { %3291 = vst [vmem:[%s6552_s15 + $0x110] sm:$0xff] %v3646_v21 }
 0x386   : > { %3292 = vst [vmem:[%s6552_s15 + $0x118] sm:$0xff] %v3647_v24 }
 0x38b   : > { %v3188_v5 = vpop.f32.mrb[36].mxu0 }
 0x38c   : > { %v3648_v6 = vadd.f32 %v3188_v5, %v6544_v35  ;;  %v3190_v25 = vpop.f32.mrb[37].mxu0 }
 0x38d   : > { %v3649_v10 = vadd.f32 %v3190_v25, %v6548_v27  ;;  %v3192_v55 = vpop.f32.mrb[38].mxu0 }
 0x38e   : > { %3293 = vst [vmem:[%s6552_s15 + $0x120] sm:$0xff] %v3648_v6  ;;  %v3650_v12 = vadd.f32 %v3192_v55, %v6544_v35  ;;  %v3194_v62 = vpop.f32.mrb[39].mxu0 }
 0x38f   : > { %3294 = vst [vmem:[%s6552_s15 + $0x128] sm:$0xff] %v3649_v10  ;;  %v3651_v36 = vadd.f32 %v3194_v62, %v6548_v27 }
 0x390   : > { %3295 = vst [vmem:[%s6552_s15 + $0x130] sm:$0xff] %v3650_v12 }
 0x391   : > { %3296 = vst [vmem:[%s6552_s15 + $0x138] sm:$0xff] %v3651_v36 }
 0x395   : > { %v3198_v58 = vpop.f32.mrb[40].mxu0 }
 0x396   : > { %v3652_v38 = vadd.f32 %v3198_v58, %v6544_v35  ;;  %v3200_v17 = vpop.f32.mrb[41].mxu0 }
 0x397   : > { %v3653_v13 = vadd.f32 %v3200_v17, %v6548_v27  ;;  %v3202_v4 = vpop.f32.mrb[42].mxu0 }
 0x398   : > { %3297 = vst [vmem:[%s6552_s15 + $0x140] sm:$0xff] %v3652_v38  ;;  %v3654_v20 = vadd.f32 %v3202_v4, %v6544_v35  ;;  %v3204_v40 = vpop.f32.mrb[43].mxu0 }
 0x399   : > { %3298 = vst [vmem:[%s6552_s15 + $0x148] sm:$0xff] %v3653_v13  ;;  %v3655_v0 = vadd.f32 %v3204_v40, %v6548_v27 }
 0x39a   : > { %3299 = vst [vmem:[%s6552_s15 + $0x150] sm:$0xff] %v3654_v20 }
 0x39b   : > { %3300 = vst [vmem:[%s6552_s15 + $0x158] sm:$0xff] %v3655_v0 }
 0x3a0   : > { %v3208_v53 = vpop.f32.mrb[44].mxu0 }
 0x3a1   : > { %v3656_v57 = vadd.f32 %v3208_v53, %v6544_v35  ;;  %v3210_v26 = vpop.f32.mrb[45].mxu0 }
 0x3a2   : > { %v3657_v23 = vadd.f32 %v3210_v26, %v6548_v27  ;;  %v3212_v32 = vpop.f32.mrb[46].mxu0 }
 0x3a3   : > { %3301 = vst [vmem:[%s6552_s15 + $0x160] sm:$0xff] %v3656_v57  ;;  %v3658_v2 = vadd.f32 %v3212_v32, %v6544_v35  ;;  %v3214_v47 = vpop.f32.mrb[47].mxu0 }
 0x3a4   : > { %3302 = vst [vmem:[%s6552_s15 + $0x168] sm:$0xff] %v3657_v23  ;;  %v3659_v9 = vadd.f32 %v3214_v47, %v6548_v27 }
 0x3a5   : > { %3303 = vst [vmem:[%s6552_s15 + $0x170] sm:$0xff] %v3658_v2 }
 0x3a6   : > { %3304 = vst [vmem:[%s6552_s15 + $0x178] sm:$0xff] %v3659_v9 }
 0x3a8   : > { %v3218_v59 = vpop.f32.mrb[48].mxu0 }
 0x3a9   : > { %v3660_v49 = vadd.f32 %v3218_v59, %v6544_v35  ;;  %v3220_v42 = vpop.f32.mrb[49].mxu0 }
 0x3aa   : > { %v3661_v22 = vadd.f32 %v3220_v42, %v6548_v27  ;;  %v3222_v48 = vpop.f32.mrb[50].mxu0 }
 0x3ab   : > { %3305 = vst [vmem:[%s6552_s15 + $0x180] sm:$0xff] %v3660_v49  ;;  %v3662_v56 = vadd.f32 %v3222_v48, %v6544_v35  ;;  %v3224_v61 = vpop.f32.mrb[51].mxu0 }
 0x3ac   : > { %3306 = vst [vmem:[%s6552_s15 + $0x188] sm:$0xff] %v3661_v22  ;;  %v3663_v52 = vadd.f32 %v3224_v61, %v6548_v27 }
 0x3ad   : > { %3307 = vst [vmem:[%s6552_s15 + $0x190] sm:$0xff] %v3662_v56 }
 0x3ae   : > { %3308 = vst [vmem:[%s6552_s15 + $0x198] sm:$0xff] %v3663_v52 }
 0x3b0   : > { %v3228_v44 = vpop.f32.mrb[52].mxu0 }
 0x3b1   : > { %v3664_v19 = vadd.f32 %v3228_v44, %v6544_v35  ;;  %v3230_v8 = vpop.f32.mrb[53].mxu0 }
 0x3b2   : > { %v3665_v11 = vadd.f32 %v3230_v8, %v6548_v27  ;;  %v3232_v37 = vpop.f32.mrb[54].mxu0 }
 0x3b3   : > { %3309 = vst [vmem:[%s6552_s15 + $0x1a0] sm:$0xff] %v3664_v19  ;;  %v3666_v51 = vadd.f32 %v3232_v37, %v6544_v35  ;;  %v3234_v14 = vpop.f32.mrb[55].mxu0 }
 0x3b4   : > { %3310 = vst [vmem:[%s6552_s15 + $0x1a8] sm:$0xff] %v3665_v11  ;;  %v3667_v54 = vadd.f32 %v3234_v14, %v6548_v27 }
 0x3b5   : > { %3311 = vst [vmem:[%s6552_s15 + $0x1b0] sm:$0xff] %v3666_v51 }
 0x3b6   : > { %3312 = vst [vmem:[%s6552_s15 + $0x1b8] sm:$0xff] %v3667_v54 }
 0x3b8   : > { %v3238_v18 = vpop.f32.mrb[56].mxu0 }
 0x3b9   : > { %v3668_v29 = vadd.f32 %v3238_v18, %v6544_v35  ;;  %v3240_v39 = vpop.f32.mrb[57].mxu0 }
 0x3ba   : > { %v3669_v15 = vadd.f32 %v3240_v39, %v6548_v27  ;;  %v3242_v3 = vpop.f32.mrb[58].mxu0 }
 0x3bb   : > { %3313 = vst [vmem:[%s6552_s15 + $0x1c0] sm:$0xff] %v3668_v29  ;;  %v3670_v34 = vadd.f32 %v3242_v3, %v6544_v35  ;;  %v3244_v28 = vpop.f32.mrb[59].mxu0 }
 0x3bc   : > { %3314 = vst [vmem:[%s6552_s15 + $0x1c8] sm:$0xff] %v3669_v15  ;;  %v3671_v63 = vadd.f32 %v3244_v28, %v6548_v27 }
 0x3bd   : > { %3315 = vst [vmem:[%s6552_s15 + $0x1d0] sm:$0xff] %v3670_v34 }
 0x3be   : > { %3316 = vst [vmem:[%s6552_s15 + $0x1d8] sm:$0xff] %v3671_v63 }
 0x3c0   : > { %v3248_v45 = vpop.f32.mrb[60].mxu0 }
 0x3c1   : > { %v3672_v50 = vadd.f32 %v3248_v45, %v6544_v35  ;;  %v3250_v41 = vpop.f32.mrb[61].mxu0 }
 0x3c2   : > { %v3673_v16 = vadd.f32 %v3250_v41, %v6548_v27  ;;  %v3252_v7 = vpop.f32.mrb[62].mxu0 }
 0x3c3   : > { %3317 = vst [vmem:[%s6552_s15 + $0x1e0] sm:$0xff] %v3672_v50  ;;  %v3674_v1 = vadd.f32 %v3252_v7, %v6544_v35  ;;  %v3254_v60 = vpop.f32.mrb[63].mxu0 }
 0x3c4   : > { %3318 = vst [vmem:[%s6552_s15 + $0x1e8] sm:$0xff] %v3673_v16  ;;  %v3675_v31 = vadd.f32 %v3254_v60, %v6548_v27 }
 0x3c5   : > { %3319 = vst [vmem:[%s6552_s15 + $0x1f0] sm:$0xff] %v3674_v1 }
 0x3c6   : > { %3320 = vst [vmem:[%s6552_s15 + $0x1f8] sm:$0xff] %v3675_v31 }
 0x3c7   : > { %4409 = shalt.err (!%p4406_p2)
}
 0x3c8   : > { %s4410_s12 = scalar_lea.hbm %s6681_s6, 8192  ;;  %s4414_s28 = scalar_lea.hbm %s6736_s5, 16384 }
 0x3c9   : > { %p4411_p13 = scmp.ne.s32.totalorder %s6681_s6, %s4410_s12  ;;  %p4415_p4 = scmp.lt.u32.totalorder %s6681_s6, %s6736_s5 }
 0x3ca   : > { %p4416_p7 = scmp.lt.u32.totalorder %s4414_s28, %s4410_s12  ;;  %p4418_p11 = scmp.lt.u32.totalorder %s4410_s12, %s6681_s6 }
 0x3cb   : > { %p4412_p6 = pnand %p4411_p13, %p6805_p0 }
 0x3cc   : > { %p4417_p8 = por %p4416_p7, %p4415_p4 }
 0x3cd   : > { %p4413_p10 = pneg %p4412_p6 }
 0x3ce   : > { %p4419_p1 = por %p4418_p11, %p4417_p8 }
 0x3d0   : > { %p4420_p3 = pnand %p4419_p1, %p4413_p10 }
 0x3d2   : > { %4423 = shalt.err (!%p4420_p3)
}
 0x3d3   : > { %s4476_s30 = smov 256   ;;  %s4477_s23 = smov 16  }
 0x3d4   : > { %3750 = dma.vmem_to_hbm [thread:$0]  (%p6805_p0), %s6683_s11, 8192, %s6681_s6, %s3322_s22, %s4476_s30, %s4476_s30, %s4477_s23  }
 0x3d5 PF: > { %s3351_s7 = sand.u32 1, %s4454_s18   ;;  %p6806_p5 = scmp.ne.s32.totalorder %s6749_s25, 0 }
 0x3d6   : > { %p6807_p9 = scmp.ge.s32.totalorder %s4466_s21, 2  ;;  %s3352_s8 = scalar_lea.sflag [#allocation4], %s3351_s7 }
 0x3d8   : > { %p3764_p12 = pnand %p6807_p9, %p6806_p5 }
 0x3da   : > { %4449 = dma.done.wait (!%p3764_p12), %s3352_s8, 8192  }
 0x3db   : > { %4451 = vsyncadd (!%p3764_p12), %s3352_s8, 4294959104  ;;  %p19_p2 = scmp.ge.s32.totalorder %s4621_s16, 4   ;;  %s6808_s18 = smov %s4458_s19 }
 0x3dc   : > { %s6809_s19 = smov %s4462_s20  ;;  %s6810_s20 = smov %s4630_s27 }
 0x3dd   : > { %s6811_s21 = smov %s4621_s16  ;;  %21 = sbr.rel (!%p19_p2) target bundleno = 6 (0x6), region = 93 }
 0x3e4   :  { %3357 = vsyncpa [#allocation3], 1 }
 0x3e5   :  { %3359 = vsyncpa [#allocation3 + $0x1], 1 }
 0x3e6   :  { %3360 = vsyncpa [#allocation6], 1 }
 0x3e7   :  { %3361 = vsyncpa [#allocation4], 1 }
 0x3e8   :  { %3363 = vsyncpa [#allocation4 + $0x1], 1 }

</bundles_post_ra>
